<compile_context>
chip_gen: v7x
topology: tpu7x:2x2x1
jax: 0.10.0
libtpu: 0.0.40
codegen_flags: <defaults>
</compile_context>

<pallas_src>
import functools

import jax
import jax.numpy as jnp
from jax import lax
from jax.experimental import pallas as pl
from jax.experimental.pallas import tpu as pltpu

SOS_token = 1

# Contract over the last dim of both operands (A @ B^T).
_NT_DIM_NUMBERS = (((1,), (1,)), ((), ()))


def _gru_recurrent(gi, h, w_hh_ref, b_hh_ref):
    """One GRU step given precomputed input projection gi = x @ W_ih + b_ih.

    gi: (1, 3H) f32; h: (1, H) f32; w_hh_ref: (H, 3H) bf16; b_hh_ref: (1, 3H) f32.
    Gate order (r, z, n), as in torch.nn.GRU.
    """
    hd = h.shape[1]
    gh = jnp.dot(h.astype(w_hh_ref.dtype), w_hh_ref[...],
                 preferred_element_type=jnp.float32) + b_hh_ref[...]
    r = jax.nn.sigmoid(gi[:, :hd] + gh[:, :hd])
    z = jax.nn.sigmoid(gi[:, hd:2 * hd] + gh[:, hd:2 * hd])
    n = jnp.tanh(gi[:, 2 * hd:] + r * gh[:, 2 * hd:])
    return (1.0 - z) * n + z * h


def _greedy_kernel(sos_token, unroll_enc, unroll_dec,
                   emb_enc_ref, emb_tab_ref,
                   wf_ih_ref, wf_hh_ref, bf_ih_ref, bf_hh_ref,
                   wb_ih_ref, wb_hh_ref, bb_ih_ref, bb_hh_ref,
                   wd_ih_ref, wd_hh_ref, bd_ih_ref, bd_hh_ref,
                   wc_r_ref, wc_c_ref, bc_ref, wo_ref, bo_ref,
                   tokens_ref, scores_ref,
                   gi_f_ref, gi_b_ref, enc_f_ref, enc_b_ref):
    T, H = emb_enc_ref.shape
    V = emb_tab_ref.shape[0]
    max_length = tokens_ref.shape[0]

    # ---------------- Encoder: bidirectional GRU ----------------
    # Hoisted input projections: two well-shaped (T, 3H) bf16 matmuls, once.
    emb_enc = emb_enc_ref[...]                                           # (T, H) bf16
    gi_f_ref[...] = (jnp.dot(emb_enc, wf_ih_ref[...],
                             preferred_element_type=jnp.float32) + bf_ih_ref[...])
    gi_b_ref[...] = (jnp.dot(emb_enc, wb_ih_ref[...],
                             preferred_element_type=jnp.float32) + bb_ih_ref[...])

    # Merged forward/backward loop: two independent recurrent chains per
    # iteration so the scheduler can hide one direction's MXU/EUP latency
    # under the other.  No in-loop read-modify-write of a shared buffer.
    def enc_body(i, carry):
        h_f, h_b = carry
        tb = T - 1 - i
        h_f = _gru_recurrent(gi_f_ref[pl.ds(i, 1), :], h_f, wf_hh_ref, bf_hh_ref)
        h_b = _gru_recurrent(gi_b_ref[pl.ds(tb, 1), :], h_b, wb_hh_ref, bb_hh_ref)
        enc_f_ref[pl.ds(i, 1), :] = h_f
        enc_b_ref[pl.ds(tb, 1), :] = h_b
        return h_f, h_b

    h0 = jnp.zeros((1, H), jnp.float32)
    h_f, _ = lax.fori_loop(0, T, enc_body, (h0, h0), unroll=unroll_enc)

    # encoder_outputs = outputs[:, :, :H] + outputs[:, :, H:]  (single add)
    enc_f_ref[...] = enc_f_ref[...] + enc_b_ref[...]

    # decoder_hidden = encoder_hidden[:n_layers] -> forward-direction final h.
    lane_iota_v = lax.broadcasted_iota(jnp.int32, (1, V), 1)   # hoisted

    # ---------------- Greedy decoding loop ----------------
    def dec_body(step, carry):
        h_dec, tok = carry

        # Embedding lookup of the data-dependent token: dynamic row gather
        # (single VMEM sublane slice) instead of a one-hot (1,V)@(V,H) matmul.
        x = emb_tab_ref[pl.ds(tok, 1), :]                                  # (1, H) f32

        # Decoder GRU step (dropout is a no-op in eval mode).
        gi = jnp.dot(x.astype(wd_ih_ref.dtype), wd_ih_ref[...],
                     preferred_element_type=jnp.float32) + bd_ih_ref[...]
        h_dec = _gru_recurrent(gi, h_dec, wd_hh_ref, bd_hh_ref)           # (1, H)

        # Luong "dot" attention, lane-dense: (1, T) score row on the MXU.
        enc_out = enc_f_ref[...]                                           # (T, H) f32
        e = lax.dot_general(h_dec, enc_out, _NT_DIM_NUMBERS,
                            preferred_element_type=jnp.float32)            # (1, T)
        e = e - jnp.max(e, axis=1, keepdims=True)
        ew = jnp.exp(e)
        attn = ew * pl.reciprocal(jnp.sum(ew, axis=1, keepdims=True),
                                  approx=True)                             # (1, T)
        context = jnp.dot(attn, enc_out,
                          preferred_element_type=jnp.float32)              # (1, H)

        # Concat layer as two matmuls (same total MXU work, no lane-unaligned
        # concatenate): tanh(h_dec @ Wc_r + context @ Wc_c + bc).
        concat_out = jnp.tanh(
            jnp.dot(h_dec.astype(wc_r_ref.dtype), wc_r_ref[...],
                    preferred_element_type=jnp.float32)
            + jnp.dot(context.astype(wc_c_ref.dtype), wc_c_ref[...],
                      preferred_element_type=jnp.float32)
            + bc_ref[...])                                                  # (1, H)

        # Output projection.  The softmax is never materialized:
        #   argmax(softmax(logits)) == argmax(logits)
        #   max(softmax(logits))    == 1 / sum(exp(logits - max))
        logits = jnp.dot(concat_out.astype(wo_ref.dtype), wo_ref[...],
                         preferred_element_type=jnp.float32) + bo_ref[...]  # (1, V)
        m = jnp.max(logits, axis=1, keepdims=True)                           # (1, 1)
        sumexp = jnp.sum(jnp.exp(logits - m), axis=1, keepdims=True)         # (1, 1)
        score = pl.reciprocal(sumexp, approx=True)[0, 0]                     # scalar
        # torch.max first-index tie-break: smallest lane achieving the max.
        tok = jnp.min(jnp.where(logits >= m, lane_iota_v, V),
                      axis=1, keepdims=True)[0, 0]                           # scalar

        # Scalar stores to SMEM-space outputs (no masked 1-lane vector stores).
        tokens_ref[step] = tok
        scores_ref[step] = score
        return h_dec, tok

    init = (h_f, jnp.int32(sos_token))
    lax.fori_loop(0, max_length, dec_body, init, unroll=unroll_dec)


def _padded_nbytes(shape, dtype):
    """Approximate Mosaic-layout-padded bytes (lanes->x128, sublanes->x8/x16)."""
    itemsize = jnp.dtype(dtype).itemsize
    sub = max(8, 32 // itemsize)          # 8 for f32, 16 for bf16
    if len(shape) == 0:
        return sub * 128 * itemsize
    lanes = -(-int(shape[-1]) // 128) * 128
    if len(shape) == 1:
        return lanes * itemsize
    subl = -(-int(shape[-2]) // sub) * sub
    lead = 1
    for d in shape[:-2]:
        lead *= int(d)
    return lead * subl * lanes * itemsize


def greedy_search_decoder(input_seq, input_length, max_length, params):
    """input_seq: (T, 1) int32, seq-major, batch=1 (PyTorch convention).
    Returns (all_tokens (max_length,) int32, all_scores (max_length,) f32)."""
    # TODO(synk): pack_padded_sequence masking of input_length is not
    # implemented; results match PyTorch when input_length == T (no padding).
    del input_length

    bf16 = jnp.bfloat16
    # Embedding table stays f32 (robust dynamic sublane row gather); encoder
    # embedding rows are gathered with static ids outside the kernel.
    # TODO(synk): at tutorial scale (V~7k, H=500) keep the table and wo in HBM
    # and DMA-gather / stream them instead of holding them VMEM-resident.
    emb_tab = params["embedding"].astype(jnp.float32)
    emb_enc = jnp.take(emb_tab, input_seq[:, 0], axis=0).astype(bf16)

    def w(name):  # large matrices stored bf16: MXU-native, halves VMEM & operand BW
        return params[name].astype(bf16)

    args = (
        emb_enc, emb_tab,
        w("wf_ih"), w("wf_hh"), params["bf_ih"], params["bf_hh"],
        w("wb_ih"), w("wb_hh"), params["bb_ih"], params["bb_hh"],
        w("wd_ih"), w("wd_hh"), params["bd_ih"], params["bd_hh"],
        w("wc_r"), w("wc_c"), params["bc"], w("wo"), params["bo"],
    )

    T, H = emb_enc.shape
    V = emb_tab.shape[0]
    max_length = int(max_length)

    scratch_specs = [((T, 3 * H), jnp.float32),   # encoder fwd W_ih projection
                     ((T, 3 * H), jnp.float32),   # encoder bwd W_ih projection
                     ((T, H), jnp.float32),       # fwd outputs -> summed enc outputs
                     ((T, H), jnp.float32)]       # bwd outputs
    scratch_shapes = [pltpu.VMEM(s, d) for s, d in scratch_specs]

    # Padded-layout VMEM accounting (no grid => no double buffering); cap at
    # the generation's physical VMEM capacity.
    demand = sum(_padded_nbytes(a.shape, a.dtype) for a in args)
    demand += sum(_padded_nbytes(s, d) for s, d in scratch_specs)
    try:
        vmem_cap = int(getattr(pltpu.get_tpu_info(), "vmem_capacity_bytes",
                               64 * 2**20))
    except Exception:
        vmem_cap = 64 * 2**20
    vmem_limit = int(min(vmem_cap, max(16 * 2**20, demand + (8 << 20))))

    vmem = pl.BlockSpec(memory_space=pltpu.MemorySpace.VMEM)
    smem = pl.BlockSpec(memory_space=pltpu.MemorySpace.SMEM)

    # Unroll the short fixed-trip serial loops (latency-bound at small sizes);
    # keep the decode loop rolled when V is large to limit code size.
    unroll_enc = bool(T <= 32)
    unroll_dec = bool(max_length <= 16 and V <= 4096)
    kernel = functools.partial(_greedy_kernel, SOS_token, unroll_enc, unroll_dec)

    tokens, scores = pl.pallas_call(
        kernel,
        out_shape=(jax.ShapeDtypeStruct((max_length,), jnp.int32),
                   jax.ShapeDtypeStruct((max_length,), jnp.float32)),
        in_specs=[vmem] * len(args),
        out_specs=(smem, smem),
        scratch_shapes=scratch_shapes,
        compiler_params=pltpu.CompilerParams(vmem_limit_bytes=vmem_limit),
    )(*args)
    return tokens, scores


def make_params(key, vocab, hidden):
    ks = jax.random.split(key, 20)
    s = 0.1

    def n(k, shape):
        return (s * jax.random.normal(k, shape)).astype(jnp.float32)

    return {
        "embedding": n(ks[0], (vocab, hidden)),
        # encoder forward GRU
        "wf_ih": n(ks[1], (hidden, 3 * hidden)), "wf_hh": n(ks[2], (hidden, 3 * hidden)),
        "bf_ih": n(ks[3], (1, 3 * hidden)), "bf_hh": n(ks[4], (1, 3 * hidden)),
        # encoder backward GRU
        "wb_ih": n(ks[5], (hidden, 3 * hidden)), "wb_hh": n(ks[6], (hidden, 3 * hidden)),
        "bb_ih": n(ks[7], (1, 3 * hidden)), "bb_hh": n(ks[8], (1, 3 * hidden)),
        # decoder GRU
        "wd_ih": n(ks[9], (hidden, 3 * hidden)), "wd_hh": n(ks[10], (hidden, 3 * hidden)),
        "bd_ih": n(ks[11], (1, 3 * hidden)), "bd_hh": n(ks[12], (1, 3 * hidden)),
        # concat Linear(2H -> H), split into the rnn-output half and context half
        "wc_r": n(ks[13], (hidden, hidden)), "wc_c": n(ks[14], (hidden, hidden)),
        "bc": n(ks[15], (1, hidden)),
        # output Linear(H -> V)
        "wo": n(ks[16], (hidden, vocab)), "bo": n(ks[17], (1, vocab)),
    }


if __name__ == "__main__":
    VOCAB, HIDDEN, SEQ, MAX_LENGTH = 64, 32, 8, 5

    key = jax.random.PRNGKey(0)
    k_par, k_seq = jax.random.split(key)
    params = make_params(k_par, VOCAB, HIDDEN)

    # input_seq: (T, 1) int32 token ids (seq-major, batch=1), input_length = T
    input_seq = jax.random.randint(k_seq, (SEQ, 1), 2, VOCAB, dtype=jnp.int32)
    input_length = jnp.array([SEQ], dtype=jnp.int32)

    all_tokens, all_scores = greedy_search_decoder(input_seq, input_length, MAX_LENGTH, params)
    jax.block_until_ready((all_tokens, all_scores))

    assert all_tokens.shape == (MAX_LENGTH,) and all_scores.shape == (MAX_LENGTH,)
    assert all_tokens.dtype == jnp.int32 and all_scores.dtype == jnp.float32
    print("KERNEL_OK")
</pallas_src>

<mosaic_0001>
module attributes {stable_mosaic.version = 11 : i64} {
  func.func @_greedy_kernel(%arg0: memref<8x32xbf16, #tpu.memory_space<vmem>>, %arg1: memref<64x32xf32, #tpu.memory_space<vmem>>, %arg2: memref<32x96xbf16, #tpu.memory_space<vmem>>, %arg3: memref<32x96xbf16, #tpu.memory_space<vmem>>, %arg4: memref<1x96xf32, #tpu.memory_space<vmem>>, %arg5: memref<1x96xf32, #tpu.memory_space<vmem>>, %arg6: memref<32x96xbf16, #tpu.memory_space<vmem>>, %arg7: memref<32x96xbf16, #tpu.memory_space<vmem>>, %arg8: memref<1x96xf32, #tpu.memory_space<vmem>>, %arg9: memref<1x96xf32, #tpu.memory_space<vmem>>, %arg10: memref<32x96xbf16, #tpu.memory_space<vmem>>, %arg11: memref<32x96xbf16, #tpu.memory_space<vmem>>, %arg12: memref<1x96xf32, #tpu.memory_space<vmem>>, %arg13: memref<1x96xf32, #tpu.memory_space<vmem>>, %arg14: memref<32x32xbf16, #tpu.memory_space<vmem>>, %arg15: memref<32x32xbf16, #tpu.memory_space<vmem>>, %arg16: memref<1x32xf32, #tpu.memory_space<vmem>>, %arg17: memref<32x64xbf16, #tpu.memory_space<vmem>>, %arg18: memref<1x64xf32, #tpu.memory_space<vmem>>, %arg19: memref<5xi32, #tpu.memory_space<smem>>, %arg20: memref<5xf32, #tpu.memory_space<smem>>, %arg21: memref<8x96xf32, #tpu.memory_space<vmem>>, %arg22: memref<8x96xf32, #tpu.memory_space<vmem>>, %arg23: memref<8x32xf32, #tpu.memory_space<vmem>>, %arg24: memref<8x32xf32, #tpu.memory_space<vmem>>) attributes {dimension_semantics = [], scalar_prefetch = 0 : i64, scratch_operands = 4 : i64, tpu.core_type = #tpu.core_type<tc>} {
    %c0 = arith.constant 0 : index
    %c0_0 = arith.constant 0 : index
    %0 = vector.load %arg0[%c0, %c0_0] : memref<8x32xbf16, #tpu.memory_space<vmem>>, vector<8x32xbf16>
    %c0_1 = arith.constant 0 : index
    %c0_2 = arith.constant 0 : index
    %1 = vector.load %arg2[%c0_1, %c0_2] : memref<32x96xbf16, #tpu.memory_space<vmem>>, vector<32x96xbf16>
    %cst = arith.constant dense<0.000000e+00> : vector<8x96xf32>
    %2 = tpu.matmul %0, %1, %cst {dimension_numbers = #tpu.dot_dimension_numbers<[1], [0], [0], [1], [0, 0, 1, 1], [], []>} : vector<8x32xbf16>, vector<32x96xbf16>, vector<8x96xf32> -> vector<8x96xf32>
    %c0_3 = arith.constant 0 : index
    %c0_4 = arith.constant 0 : index
    %3 = vector.load %arg4[%c0_3, %c0_4] : memref<1x96xf32, #tpu.memory_space<vmem>>, vector<1x96xf32>
    %4 = vector.broadcast %3 : vector<1x96xf32> to vector<8x96xf32>
    %5 = arith.addf %2, %4 : vector<8x96xf32>
    %c0_5 = arith.constant 0 : index
    %c0_6 = arith.constant 0 : index
    %6 = vector.load %arg21[%c0_5, %c0_6] : memref<8x96xf32, #tpu.memory_space<vmem>>, vector<8x96xf32>
    tpu.vector_store %arg21[%c0_5, %c0_6], %5 {strides = array<i32>} : memref<8x96xf32, #tpu.memory_space<vmem>>, vector<8x96xf32>,
    %c0_7 = arith.constant 0 : index
    %c0_8 = arith.constant 0 : index
    %7 = vector.load %arg6[%c0_7, %c0_8] : memref<32x96xbf16, #tpu.memory_space<vmem>>, vector<32x96xbf16>
    %cst_9 = arith.constant dense<0.000000e+00> : vector<8x96xf32>
    %8 = tpu.matmul %0, %7, %cst_9 {dimension_numbers = #tpu.dot_dimension_numbers<[1], [0], [0], [1], [0, 0, 1, 1], [], []>} : vector<8x32xbf16>, vector<32x96xbf16>, vector<8x96xf32> -> vector<8x96xf32>
    %c0_10 = arith.constant 0 : index
    %c0_11 = arith.constant 0 : index
    %9 = vector.load %arg8[%c0_10, %c0_11] : memref<1x96xf32, #tpu.memory_space<vmem>>, vector<1x96xf32>
    %10 = vector.broadcast %9 : vector<1x96xf32> to vector<8x96xf32>
    %11 = arith.addf %8, %10 : vector<8x96xf32>
    %c0_12 = arith.constant 0 : index
    %c0_13 = arith.constant 0 : index
    %12 = vector.load %arg22[%c0_12, %c0_13] : memref<8x96xf32, #tpu.memory_space<vmem>>, vector<8x96xf32>
    tpu.vector_store %arg22[%c0_12, %c0_13], %11 {strides = array<i32>} : memref<8x96xf32, #tpu.memory_space<vmem>>, vector<8x96xf32>,
    %cst_14 = arith.constant 0.000000e+00 : f32
    %13 = vector.broadcast %cst_14 : f32 to vector<1x32xf32>
    %c0_i32 = arith.constant 0 : i32
    %c7_i32 = arith.constant 7 : i32
    %14 = arith.subi %c7_i32, %c0_i32 : i32
    %15 = arith.index_cast %c0_i32 : i32 to index
    %c0_15 = arith.constant 0 : index
    %16 = vector.load %arg21[%15, %c0_15] : memref<8x96xf32, #tpu.memory_space<vmem>>, vector<1x96xf32>
    %17 = arith.truncf %13 : vector<1x32xf32> to vector<1x32xbf16>
    %c0_16 = arith.constant 0 : index
    %c0_17 = arith.constant 0 : index
    %18 = vector.load %arg3[%c0_16, %c0_17] : memref<32x96xbf16, #tpu.memory_space<vmem>>, vector<32x96xbf16>
    %cst_18 = arith.constant dense<0.000000e+00> : vector<1x96xf32>
    %19 = tpu.matmul %17, %18, %cst_18 {dimension_numbers = #tpu.dot_dimension_numbers<[1], [0], [0], [1], [0, 0, 1, 1], [], []>} : vector<1x32xbf16>, vector<32x96xbf16>, vector<1x96xf32> -> vector<1x96xf32>
    %c0_19 = arith.constant 0 : index
    %c0_20 = arith.constant 0 : index
    %20 = vector.load %arg5[%c0_19, %c0_20] : memref<1x96xf32, #tpu.memory_space<vmem>>, vector<1x96xf32>
    %21 = arith.addf %19, %20 : vector<1x96xf32>
    %22 = vector.extract_strided_slice %16 {offsets = [0, 0], sizes = [1, 32], strides = [1, 1]} : vector<1x96xf32> to vector<1x32xf32>
    %23 = vector.extract_strided_slice %21 {offsets = [0, 0], sizes = [1, 32], strides = [1, 1]} : vector<1x96xf32> to vector<1x32xf32>
    %24 = arith.addf %22, %23 : vector<1x32xf32>
    %25 = arith.negf %24 : vector<1x32xf32>
    %26 = math.exp %25 : vector<1x32xf32>
    %cst_21 = arith.constant 1.000000e+00 : f32
    %27 = vector.broadcast %cst_21 : f32 to vector<1x32xf32>
    %28 = arith.addf %27, %26 : vector<1x32xf32>
    %29 = arith.divf %27, %28 : vector<1x32xf32>
    %30 = vector.extract_strided_slice %16 {offsets = [0, 32], sizes = [1, 32], strides = [1, 1]} : vector<1x96xf32> to vector<1x32xf32>
    %31 = vector.extract_strided_slice %21 {offsets = [0, 32], sizes = [1, 32], strides = [1, 1]} : vector<1x96xf32> to vector<1x32xf32>
    %32 = arith.addf %30, %31 : vector<1x32xf32>
    %33 = arith.negf %32 : vector<1x32xf32>
    %34 = math.exp %33 : vector<1x32xf32>
    %cst_22 = arith.constant 1.000000e+00 : f32
    %35 = vector.broadcast %cst_22 : f32 to vector<1x32xf32>
    %36 = arith.addf %35, %34 : vector<1x32xf32>
    %37 = arith.divf %35, %36 : vector<1x32xf32>
    %38 = vector.extract_strided_slice %16 {offsets = [0, 64], sizes = [1, 32], strides = [1, 1]} : vector<1x96xf32> to vector<1x32xf32>
    %39 = vector.extract_strided_slice %21 {offsets = [0, 64], sizes = [1, 32], strides = [1, 1]} : vector<1x96xf32> to vector<1x32xf32>
    %40 = arith.mulf %29, %39 : vector<1x32xf32>
    %41 = arith.addf %38, %40 : vector<1x32xf32>
    %42 = math.tanh %41 : vector<1x32xf32>
    %cst_23 = arith.constant 1.000000e+00 : f32
    %43 = vector.broadcast %cst_23 : f32 to vector<1x32xf32>
    %44 = arith.subf %43, %37 : vector<1x32xf32>
    %45 = arith.mulf %44, %42 : vector<1x32xf32>
    %46 = arith.mulf %37, %13 : vector<1x32xf32>
    %47 = arith.addf %45, %46 : vector<1x32xf32>
    %48 = arith.index_cast %14 : i32 to index
    %c0_24 = arith.constant 0 : index
    %49 = vector.load %arg22[%48, %c0_24] : memref<8x96xf32, #tpu.memory_space<vmem>>, vector<1x96xf32>
    %50 = arith.truncf %13 : vector<1x32xf32> to vector<1x32xbf16>
    %c0_25 = arith.constant 0 : index
    %c0_26 = arith.constant 0 : index
    %51 = vector.load %arg7[%c0_25, %c0_26] : memref<32x96xbf16, #tpu.memory_space<vmem>>, vector<32x96xbf16>
    %cst_27 = arith.constant dense<0.000000e+00> : vector<1x96xf32>
    %52 = tpu.matmul %50, %51, %cst_27 {dimension_numbers = #tpu.dot_dimension_numbers<[1], [0], [0], [1], [0, 0, 1, 1], [], []>} : vector<1x32xbf16>, vector<32x96xbf16>, vector<1x96xf32> -> vector<1x96xf32>
    %c0_28 = arith.constant 0 : index
    %c0_29 = arith.constant 0 : index
    %53 = vector.load %arg9[%c0_28, %c0_29] : memref<1x96xf32, #tpu.memory_space<vmem>>, vector<1x96xf32>
    %54 = arith.addf %52, %53 : vector<1x96xf32>
    %55 = vector.extract_strided_slice %49 {offsets = [0, 0], sizes = [1, 32], strides = [1, 1]} : vector<1x96xf32> to vector<1x32xf32>
    %56 = vector.extract_strided_slice %54 {offsets = [0, 0], sizes = [1, 32], strides = [1, 1]} : vector<1x96xf32> to vector<1x32xf32>
    %57 = arith.addf %55, %56 : vector<1x32xf32>
    %58 = arith.negf %57 : vector<1x32xf32>
    %59 = math.exp %58 : vector<1x32xf32>
    %cst_30 = arith.constant 1.000000e+00 : f32
    %60 = vector.broadcast %cst_30 : f32 to vector<1x32xf32>
    %61 = arith.addf %60, %59 : vector<1x32xf32>
    %62 = arith.divf %60, %61 : vector<1x32xf32>
    %63 = vector.extract_strided_slice %49 {offsets = [0, 32], sizes = [1, 32], strides = [1, 1]} : vector<1x96xf32> to vector<1x32xf32>
    %64 = vector.extract_strided_slice %54 {offsets = [0, 32], sizes = [1, 32], strides = [1, 1]} : vector<1x96xf32> to vector<1x32xf32>
    %65 = arith.addf %63, %64 : vector<1x32xf32>
    %66 = arith.negf %65 : vector<1x32xf32>
    %67 = math.exp %66 : vector<1x32xf32>
    %cst_31 = arith.constant 1.000000e+00 : f32
    %68 = vector.broadcast %cst_31 : f32 to vector<1x32xf32>
    %69 = arith.addf %68, %67 : vector<1x32xf32>
    %70 = arith.divf %68, %69 : vector<1x32xf32>
    %71 = vector.extract_strided_slice %49 {offsets = [0, 64], sizes = [1, 32], strides = [1, 1]} : vector<1x96xf32> to vector<1x32xf32>
    %72 = vector.extract_strided_slice %54 {offsets = [0, 64], sizes = [1, 32], strides = [1, 1]} : vector<1x96xf32> to vector<1x32xf32>
    %73 = arith.mulf %62, %72 : vector<1x32xf32>
    %74 = arith.addf %71, %73 : vector<1x32xf32>
    %75 = math.tanh %74 : vector<1x32xf32>
    %cst_32 = arith.constant 1.000000e+00 : f32
    %76 = vector.broadcast %cst_32 : f32 to vector<1x32xf32>
    %77 = arith.subf %76, %70 : vector<1x32xf32>
    %78 = arith.mulf %77, %75 : vector<1x32xf32>
    %79 = arith.mulf %70, %13 : vector<1x32xf32>
    %80 = arith.addf %78, %79 : vector<1x32xf32>
    %81 = arith.index_cast %c0_i32 : i32 to index
    %c0_33 = arith.constant 0 : index
    %82 = vector.load %arg23[%81, %c0_33] : memref<8x32xf32, #tpu.memory_space<vmem>>, vector<1x32xf32>
    tpu.vector_store %arg23[%81, %c0_33], %47 {strides = array<i32>} : memref<8x32xf32, #tpu.memory_space<vmem>>, vector<1x32xf32>,
    %83 = arith.index_cast %14 : i32 to index
    %c0_34 = arith.constant 0 : index
    %84 = vector.load %arg24[%83, %c0_34] : memref<8x32xf32, #tpu.memory_space<vmem>>, vector<1x32xf32>
    tpu.vector_store %arg24[%83, %c0_34], %80 {strides = array<i32>} : memref<8x32xf32, #tpu.memory_space<vmem>>, vector<1x32xf32>,
    %c1_i32 = arith.constant 1 : i32
    %c7_i32_35 = arith.constant 7 : i32
    %85 = arith.subi %c7_i32_35, %c1_i32 : i32
    %86 = arith.index_cast %c1_i32 : i32 to index
    %c0_36 = arith.constant 0 : index
    %87 = vector.load %arg21[%86, %c0_36] : memref<8x96xf32, #tpu.memory_space<vmem>>, vector<1x96xf32>
    %88 = arith.truncf %47 : vector<1x32xf32> to vector<1x32xbf16>
    %c0_37 = arith.constant 0 : index
    %c0_38 = arith.constant 0 : index
    %89 = vector.load %arg3[%c0_37, %c0_38] : memref<32x96xbf16, #tpu.memory_space<vmem>>, vector<32x96xbf16>
    %cst_39 = arith.constant dense<0.000000e+00> : vector<1x96xf32>
    %90 = tpu.matmul %88, %89, %cst_39 {dimension_numbers = #tpu.dot_dimension_numbers<[1], [0], [0], [1], [0, 0, 1, 1], [], []>} : vector<1x32xbf16>, vector<32x96xbf16>, vector<1x96xf32> -> vector<1x96xf32>
    %c0_40 = arith.constant 0 : index
    %c0_41 = arith.constant 0 : index
    %91 = vector.load %arg5[%c0_40, %c0_41] : memref<1x96xf32, #tpu.memory_space<vmem>>, vector<1x96xf32>
    %92 = arith.addf %90, %91 : vector<1x96xf32>
    %93 = vector.extract_strided_slice %87 {offsets = [0, 0], sizes = [1, 32], strides = [1, 1]} : vector<1x96xf32> to vector<1x32xf32>
    %94 = vector.extract_strided_slice %92 {offsets = [0, 0], sizes = [1, 32], strides = [1, 1]} : vector<1x96xf32> to vector<1x32xf32>
    %95 = arith.addf %93, %94 : vector<1x32xf32>
    %96 = arith.negf %95 : vector<1x32xf32>
    %97 = math.exp %96 : vector<1x32xf32>
    %cst_42 = arith.constant 1.000000e+00 : f32
    %98 = vector.broadcast %cst_42 : f32 to vector<1x32xf32>
    %99 = arith.addf %98, %97 : vector<1x32xf32>
    %100 = arith.divf %98, %99 : vector<1x32xf32>
    %101 = vector.extract_strided_slice %87 {offsets = [0, 32], sizes = [1, 32], strides = [1, 1]} : vector<1x96xf32> to vector<1x32xf32>
    %102 = vector.extract_strided_slice %92 {offsets = [0, 32], sizes = [1, 32], strides = [1, 1]} : vector<1x96xf32> to vector<1x32xf32>
    %103 = arith.addf %101, %102 : vector<1x32xf32>
    %104 = arith.negf %103 : vector<1x32xf32>
    %105 = math.exp %104 : vector<1x32xf32>
    %cst_43 = arith.constant 1.000000e+00 : f32
    %106 = vector.broadcast %cst_43 : f32 to vector<1x32xf32>
    %107 = arith.addf %106, %105 : vector<1x32xf32>
    %108 = arith.divf %106, %107 : vector<1x32xf32>
    %109 = vector.extract_strided_slice %87 {offsets = [0, 64], sizes = [1, 32], strides = [1, 1]} : vector<1x96xf32> to vector<1x32xf32>
    %110 = vector.extract_strided_slice %92 {offsets = [0, 64], sizes = [1, 32], strides = [1, 1]} : vector<1x96xf32> to vector<1x32xf32>
    %111 = arith.mulf %100, %110 : vector<1x32xf32>
    %112 = arith.addf %109, %111 : vector<1x32xf32>
    %113 = math.tanh %112 : vector<1x32xf32>
    %cst_44 = arith.constant 1.000000e+00 : f32
    %114 = vector.broadcast %cst_44 : f32 to vector<1x32xf32>
    %115 = arith.subf %114, %108 : vector<1x32xf32>
    %116 = arith.mulf %115, %113 : vector<1x32xf32>
    %117 = arith.mulf %108, %47 : vector<1x32xf32>
    %118 = arith.addf %116, %117 : vector<1x32xf32>
    %119 = arith.index_cast %85 : i32 to index
    %c0_45 = arith.constant 0 : index
    %120 = vector.load %arg22[%119, %c0_45] : memref<8x96xf32, #tpu.memory_space<vmem>>, vector<1x96xf32>
    %121 = arith.truncf %80 : vector<1x32xf32> to vector<1x32xbf16>
    %c0_46 = arith.constant 0 : index
    %c0_47 = arith.constant 0 : index
    %122 = vector.load %arg7[%c0_46, %c0_47] : memref<32x96xbf16, #tpu.memory_space<vmem>>, vector<32x96xbf16>
    %cst_48 = arith.constant dense<0.000000e+00> : vector<1x96xf32>
    %123 = tpu.matmul %121, %122, %cst_48 {dimension_numbers = #tpu.dot_dimension_numbers<[1], [0], [0], [1], [0, 0, 1, 1], [], []>} : vector<1x32xbf16>, vector<32x96xbf16>, vector<1x96xf32> -> vector<1x96xf32>
    %c0_49 = arith.constant 0 : index
    %c0_50 = arith.constant 0 : index
    %124 = vector.load %arg9[%c0_49, %c0_50] : memref<1x96xf32, #tpu.memory_space<vmem>>, vector<1x96xf32>
    %125 = arith.addf %123, %124 : vector<1x96xf32>
    %126 = vector.extract_strided_slice %120 {offsets = [0, 0], sizes = [1, 32], strides = [1, 1]} : vector<1x96xf32> to vector<1x32xf32>
    %127 = vector.extract_strided_slice %125 {offsets = [0, 0], sizes = [1, 32], strides = [1, 1]} : vector<1x96xf32> to vector<1x32xf32>
    %128 = arith.addf %126, %127 : vector<1x32xf32>
    %129 = arith.negf %128 : vector<1x32xf32>
    %130 = math.exp %129 : vector<1x32xf32>
    %cst_51 = arith.constant 1.000000e+00 : f32
    %131 = vector.broadcast %cst_51 : f32 to vector<1x32xf32>
    %132 = arith.addf %131, %130 : vector<1x32xf32>
    %133 = arith.divf %131, %132 : vector<1x32xf32>
    %134 = vector.extract_strided_slice %120 {offsets = [0, 32], sizes = [1, 32], strides = [1, 1]} : vector<1x96xf32> to vector<1x32xf32>
    %135 = vector.extract_strided_slice %125 {offsets = [0, 32], sizes = [1, 32], strides = [1, 1]} : vector<1x96xf32> to vector<1x32xf32>
    %136 = arith.addf %134, %135 : vector<1x32xf32>
    %137 = arith.negf %136 : vector<1x32xf32>
    %138 = math.exp %137 : vector<1x32xf32>
    %cst_52 = arith.constant 1.000000e+00 : f32
    %139 = vector.broadcast %cst_52 : f32 to vector<1x32xf32>
    %140 = arith.addf %139, %138 : vector<1x32xf32>
    %141 = arith.divf %139, %140 : vector<1x32xf32>
    %142 = vector.extract_strided_slice %120 {offsets = [0, 64], sizes = [1, 32], strides = [1, 1]} : vector<1x96xf32> to vector<1x32xf32>
    %143 = vector.extract_strided_slice %125 {offsets = [0, 64], sizes = [1, 32], strides = [1, 1]} : vector<1x96xf32> to vector<1x32xf32>
    %144 = arith.mulf %133, %143 : vector<1x32xf32>
    %145 = arith.addf %142, %144 : vector<1x32xf32>
    %146 = math.tanh %145 : vector<1x32xf32>
    %cst_53 = arith.constant 1.000000e+00 : f32
    %147 = vector.broadcast %cst_53 : f32 to vector<1x32xf32>
    %148 = arith.subf %147, %141 : vector<1x32xf32>
    %149 = arith.mulf %148, %146 : vector<1x32xf32>
    %150 = arith.mulf %141, %80 : vector<1x32xf32>
    %151 = arith.addf %149, %150 : vector<1x32xf32>
    %152 = arith.index_cast %c1_i32 : i32 to index
    %c0_54 = arith.constant 0 : index
    %153 = vector.load %arg23[%152, %c0_54] : memref<8x32xf32, #tpu.memory_space<vmem>>, vector<1x32xf32>
    tpu.vector_store %arg23[%152, %c0_54], %118 {strides = array<i32>} : memref<8x32xf32, #tpu.memory_space<vmem>>, vector<1x32xf32>,
    %154 = arith.index_cast %85 : i32 to index
    %c0_55 = arith.constant 0 : index
    %155 = vector.load %arg24[%154, %c0_55] : memref<8x32xf32, #tpu.memory_space<vmem>>, vector<1x32xf32>
    tpu.vector_store %arg24[%154, %c0_55], %151 {strides = array<i32>} : memref<8x32xf32, #tpu.memory_space<vmem>>, vector<1x32xf32>,
    %c2_i32 = arith.constant 2 : i32
    %c7_i32_56 = arith.constant 7 : i32
    %156 = arith.subi %c7_i32_56, %c2_i32 : i32
    %157 = arith.index_cast %c2_i32 : i32 to index
    %c0_57 = arith.constant 0 : index
    %158 = vector.load %arg21[%157, %c0_57] : memref<8x96xf32, #tpu.memory_space<vmem>>, vector<1x96xf32>
    %159 = arith.truncf %118 : vector<1x32xf32> to vector<1x32xbf16>
    %c0_58 = arith.constant 0 : index
    %c0_59 = arith.constant 0 : index
    %160 = vector.load %arg3[%c0_58, %c0_59] : memref<32x96xbf16, #tpu.memory_space<vmem>>, vector<32x96xbf16>
    %cst_60 = arith.constant dense<0.000000e+00> : vector<1x96xf32>
    %161 = tpu.matmul %159, %160, %cst_60 {dimension_numbers = #tpu.dot_dimension_numbers<[1], [0], [0], [1], [0, 0, 1, 1], [], []>} : vector<1x32xbf16>, vector<32x96xbf16>, vector<1x96xf32> -> vector<1x96xf32>
    %c0_61 = arith.constant 0 : index
    %c0_62 = arith.constant 0 : index
    %162 = vector.load %arg5[%c0_61, %c0_62] : memref<1x96xf32, #tpu.memory_space<vmem>>, vector<1x96xf32>
    %163 = arith.addf %161, %162 : vector<1x96xf32>
    %164 = vector.extract_strided_slice %158 {offsets = [0, 0], sizes = [1, 32], strides = [1, 1]} : vector<1x96xf32> to vector<1x32xf32>
    %165 = vector.extract_strided_slice %163 {offsets = [0, 0], sizes = [1, 32], strides = [1, 1]} : vector<1x96xf32> to vector<1x32xf32>
    %166 = arith.addf %164, %165 : vector<1x32xf32>
    %167 = arith.negf %166 : vector<1x32xf32>
    %168 = math.exp %167 : vector<1x32xf32>
    %cst_63 = arith.constant 1.000000e+00 : f32
    %169 = vector.broadcast %cst_63 : f32 to vector<1x32xf32>
    %170 = arith.addf %169, %168 : vector<1x32xf32>
    %171 = arith.divf %169, %170 : vector<1x32xf32>
    %172 = vector.extract_strided_slice %158 {offsets = [0, 32], sizes = [1, 32], strides = [1, 1]} : vector<1x96xf32> to vector<1x32xf32>
    %173 = vector.extract_strided_slice %163 {offsets = [0, 32], sizes = [1, 32], strides = [1, 1]} : vector<1x96xf32> to vector<1x32xf32>
    %174 = arith.addf %172, %173 : vector<1x32xf32>
    %175 = arith.negf %174 : vector<1x32xf32>
    %176 = math.exp %175 : vector<1x32xf32>
    %cst_64 = arith.constant 1.000000e+00 : f32
    %177 = vector.broadcast %cst_64 : f32 to vector<1x32xf32>
    %178 = arith.addf %177, %176 : vector<1x32xf32>
    %179 = arith.divf %177, %178 : vector<1x32xf32>
    %180 = vector.extract_strided_slice %158 {offsets = [0, 64], sizes = [1, 32], strides = [1, 1]} : vector<1x96xf32> to vector<1x32xf32>
    %181 = vector.extract_strided_slice %163 {offsets = [0, 64], sizes = [1, 32], strides = [1, 1]} : vector<1x96xf32> to vector<1x32xf32>
    %182 = arith.mulf %171, %181 : vector<1x32xf32>
    %183 = arith.addf %180, %182 : vector<1x32xf32>
    %184 = math.tanh %183 : vector<1x32xf32>
    %cst_65 = arith.constant 1.000000e+00 : f32
    %185 = vector.broadcast %cst_65 : f32 to vector<1x32xf32>
    %186 = arith.subf %185, %179 : vector<1x32xf32>
    %187 = arith.mulf %186, %184 : vector<1x32xf32>
    %188 = arith.mulf %179, %118 : vector<1x32xf32>
    %189 = arith.addf %187, %188 : vector<1x32xf32>
    %190 = arith.index_cast %156 : i32 to index
    %c0_66 = arith.constant 0 : index
    %191 = vector.load %arg22[%190, %c0_66] : memref<8x96xf32, #tpu.memory_space<vmem>>, vector<1x96xf32>
    %192 = arith.truncf %151 : vector<1x32xf32> to vector<1x32xbf16>
    %c0_67 = arith.constant 0 : index
    %c0_68 = arith.constant 0 : index
    %193 = vector.load %arg7[%c0_67, %c0_68] : memref<32x96xbf16, #tpu.memory_space<vmem>>, vector<32x96xbf16>
    %cst_69 = arith.constant dense<0.000000e+00> : vector<1x96xf32>
    %194 = tpu.matmul %192, %193, %cst_69 {dimension_numbers = #tpu.dot_dimension_numbers<[1], [0], [0], [1], [0, 0, 1, 1], [], []>} : vector<1x32xbf16>, vector<32x96xbf16>, vector<1x96xf32> -> vector<1x96xf32>
    %c0_70 = arith.constant 0 : index
    %c0_71 = arith.constant 0 : index
    %195 = vector.load %arg9[%c0_70, %c0_71] : memref<1x96xf32, #tpu.memory_space<vmem>>, vector<1x96xf32>
    %196 = arith.addf %194, %195 : vector<1x96xf32>
    %197 = vector.extract_strided_slice %191 {offsets = [0, 0], sizes = [1, 32], strides = [1, 1]} : vector<1x96xf32> to vector<1x32xf32>
    %198 = vector.extract_strided_slice %196 {offsets = [0, 0], sizes = [1, 32], strides = [1, 1]} : vector<1x96xf32> to vector<1x32xf32>
    %199 = arith.addf %197, %198 : vector<1x32xf32>
    %200 = arith.negf %199 : vector<1x32xf32>
    %201 = math.exp %200 : vector<1x32xf32>
    %cst_72 = arith.constant 1.000000e+00 : f32
    %202 = vector.broadcast %cst_72 : f32 to vector<1x32xf32>
    %203 = arith.addf %202, %201 : vector<1x32xf32>
    %204 = arith.divf %202, %203 : vector<1x32xf32>
    %205 = vector.extract_strided_slice %191 {offsets = [0, 32], sizes = [1, 32], strides = [1, 1]} : vector<1x96xf32> to vector<1x32xf32>
    %206 = vector.extract_strided_slice %196 {offsets = [0, 32], sizes = [1, 32], strides = [1, 1]} : vector<1x96xf32> to vector<1x32xf32>
    %207 = arith.addf %205, %206 : vector<1x32xf32>
    %208 = arith.negf %207 : vector<1x32xf32>
    %209 = math.exp %208 : vector<1x32xf32>
    %cst_73 = arith.constant 1.000000e+00 : f32
    %210 = vector.broadcast %cst_73 : f32 to vector<1x32xf32>
    %211 = arith.addf %210, %209 : vector<1x32xf32>
    %212 = arith.divf %210, %211 : vector<1x32xf32>
    %213 = vector.extract_strided_slice %191 {offsets = [0, 64], sizes = [1, 32], strides = [1, 1]} : vector<1x96xf32> to vector<1x32xf32>
    %214 = vector.extract_strided_slice %196 {offsets = [0, 64], sizes = [1, 32], strides = [1, 1]} : vector<1x96xf32> to vector<1x32xf32>
    %215 = arith.mulf %204, %214 : vector<1x32xf32>
    %216 = arith.addf %213, %215 : vector<1x32xf32>
    %217 = math.tanh %216 : vector<1x32xf32>
    %cst_74 = arith.constant 1.000000e+00 : f32
    %218 = vector.broadcast %cst_74 : f32 to vector<1x32xf32>
    %219 = arith.subf %218, %212 : vector<1x32xf32>
    %220 = arith.mulf %219, %217 : vector<1x32xf32>
    %221 = arith.mulf %212, %151 : vector<1x32xf32>
    %222 = arith.addf %220, %221 : vector<1x32xf32>
    %223 = arith.index_cast %c2_i32 : i32 to index
    %c0_75 = arith.constant 0 : index
    %224 = vector.load %arg23[%223, %c0_75] : memref<8x32xf32, #tpu.memory_space<vmem>>, vector<1x32xf32>
    tpu.vector_store %arg23[%223, %c0_75], %189 {strides = array<i32>} : memref<8x32xf32, #tpu.memory_space<vmem>>, vector<1x32xf32>,
    %225 = arith.index_cast %156 : i32 to index
    %c0_76 = arith.constant 0 : index
    %226 = vector.load %arg24[%225, %c0_76] : memref<8x32xf32, #tpu.memory_space<vmem>>, vector<1x32xf32>
    tpu.vector_store %arg24[%225, %c0_76], %222 {strides = array<i32>} : memref<8x32xf32, #tpu.memory_space<vmem>>, vector<1x32xf32>,
    %c3_i32 = arith.constant 3 : i32
    %c7_i32_77 = arith.constant 7 : i32
    %227 = arith.subi %c7_i32_77, %c3_i32 : i32
    %228 = arith.index_cast %c3_i32 : i32 to index
    %c0_78 = arith.constant 0 : index
    %229 = vector.load %arg21[%228, %c0_78] : memref<8x96xf32, #tpu.memory_space<vmem>>, vector<1x96xf32>
    %230 = arith.truncf %189 : vector<1x32xf32> to vector<1x32xbf16>
    %c0_79 = arith.constant 0 : index
    %c0_80 = arith.constant 0 : index
    %231 = vector.load %arg3[%c0_79, %c0_80] : memref<32x96xbf16, #tpu.memory_space<vmem>>, vector<32x96xbf16>
    %cst_81 = arith.constant dense<0.000000e+00> : vector<1x96xf32>
    %232 = tpu.matmul %230, %231, %cst_81 {dimension_numbers = #tpu.dot_dimension_numbers<[1], [0], [0], [1], [0, 0, 1, 1], [], []>} : vector<1x32xbf16>, vector<32x96xbf16>, vector<1x96xf32> -> vector<1x96xf32>
    %c0_82 = arith.constant 0 : index
    %c0_83 = arith.constant 0 : index
    %233 = vector.load %arg5[%c0_82, %c0_83] : memref<1x96xf32, #tpu.memory_space<vmem>>, vector<1x96xf32>
    %234 = arith.addf %232, %233 : vector<1x96xf32>
    %235 = vector.extract_strided_slice %229 {offsets = [0, 0], sizes = [1, 32], strides = [1, 1]} : vector<1x96xf32> to vector<1x32xf32>
    %236 = vector.extract_strided_slice %234 {offsets = [0, 0], sizes = [1, 32], strides = [1, 1]} : vector<1x96xf32> to vector<1x32xf32>
    %237 = arith.addf %235, %236 : vector<1x32xf32>
    %238 = arith.negf %237 : vector<1x32xf32>
    %239 = math.exp %238 : vector<1x32xf32>
    %cst_84 = arith.constant 1.000000e+00 : f32
    %240 = vector.broadcast %cst_84 : f32 to vector<1x32xf32>
    %241 = arith.addf %240, %239 : vector<1x32xf32>
    %242 = arith.divf %240, %241 : vector<1x32xf32>
    %243 = vector.extract_strided_slice %229 {offsets = [0, 32], sizes = [1, 32], strides = [1, 1]} : vector<1x96xf32> to vector<1x32xf32>
    %244 = vector.extract_strided_slice %234 {offsets = [0, 32], sizes = [1, 32], strides = [1, 1]} : vector<1x96xf32> to vector<1x32xf32>
    %245 = arith.addf %243, %244 : vector<1x32xf32>
    %246 = arith.negf %245 : vector<1x32xf32>
    %247 = math.exp %246 : vector<1x32xf32>
    %cst_85 = arith.constant 1.000000e+00 : f32
    %248 = vector.broadcast %cst_85 : f32 to vector<1x32xf32>
    %249 = arith.addf %248, %247 : vector<1x32xf32>
    %250 = arith.divf %248, %249 : vector<1x32xf32>
    %251 = vector.extract_strided_slice %229 {offsets = [0, 64], sizes = [1, 32], strides = [1, 1]} : vector<1x96xf32> to vector<1x32xf32>
    %252 = vector.extract_strided_slice %234 {offsets = [0, 64], sizes = [1, 32], strides = [1, 1]} : vector<1x96xf32> to vector<1x32xf32>
    %253 = arith.mulf %242, %252 : vector<1x32xf32>
    %254 = arith.addf %251, %253 : vector<1x32xf32>
    %255 = math.tanh %254 : vector<1x32xf32>
    %cst_86 = arith.constant 1.000000e+00 : f32
    %256 = vector.broadcast %cst_86 : f32 to vector<1x32xf32>
    %257 = arith.subf %256, %250 : vector<1x32xf32>
    %258 = arith.mulf %257, %255 : vector<1x32xf32>
    %259 = arith.mulf %250, %189 : vector<1x32xf32>
    %260 = arith.addf %258, %259 : vector<1x32xf32>
    %261 = arith.index_cast %227 : i32 to index
    %c0_87 = arith.constant 0 : index
    %262 = vector.load %arg22[%261, %c0_87] : memref<8x96xf32, #tpu.memory_space<vmem>>, vector<1x96xf32>
    %263 = arith.truncf %222 : vector<1x32xf32> to vector<1x32xbf16>
    %c0_88 = arith.constant 0 : index
    %c0_89 = arith.constant 0 : index
    %264 = vector.load %arg7[%c0_88, %c0_89] : memref<32x96xbf16, #tpu.memory_space<vmem>>, vector<32x96xbf16>
    %cst_90 = arith.constant dense<0.000000e+00> : vector<1x96xf32>
    %265 = tpu.matmul %263, %264, %cst_90 {dimension_numbers = #tpu.dot_dimension_numbers<[1], [0], [0], [1], [0, 0, 1, 1], [], []>} : vector<1x32xbf16>, vector<32x96xbf16>, vector<1x96xf32> -> vector<1x96xf32>
    %c0_91 = arith.constant 0 : index
    %c0_92 = arith.constant 0 : index
    %266 = vector.load %arg9[%c0_91, %c0_92] : memref<1x96xf32, #tpu.memory_space<vmem>>, vector<1x96xf32>
    %267 = arith.addf %265, %266 : vector<1x96xf32>
    %268 = vector.extract_strided_slice %262 {offsets = [0, 0], sizes = [1, 32], strides = [1, 1]} : vector<1x96xf32> to vector<1x32xf32>
    %269 = vector.extract_strided_slice %267 {offsets = [0, 0], sizes = [1, 32], strides = [1, 1]} : vector<1x96xf32> to vector<1x32xf32>
    %270 = arith.addf %268, %269 : vector<1x32xf32>
    %271 = arith.negf %270 : vector<1x32xf32>
    %272 = math.exp %271 : vector<1x32xf32>
    %cst_93 = arith.constant 1.000000e+00 : f32
    %273 = vector.broadcast %cst_93 : f32 to vector<1x32xf32>
    %274 = arith.addf %273, %272 : vector<1x32xf32>
    %275 = arith.divf %273, %274 : vector<1x32xf32>
    %276 = vector.extract_strided_slice %262 {offsets = [0, 32], sizes = [1, 32], strides = [1, 1]} : vector<1x96xf32> to vector<1x32xf32>
    %277 = vector.extract_strided_slice %267 {offsets = [0, 32], sizes = [1, 32], strides = [1, 1]} : vector<1x96xf32> to vector<1x32xf32>
    %278 = arith.addf %276, %277 : vector<1x32xf32>
    %279 = arith.negf %278 : vector<1x32xf32>
    %280 = math.exp %279 : vector<1x32xf32>
    %cst_94 = arith.constant 1.000000e+00 : f32
    %281 = vector.broadcast %cst_94 : f32 to vector<1x32xf32>
    %282 = arith.addf %281, %280 : vector<1x32xf32>
    %283 = arith.divf %281, %282 : vector<1x32xf32>
    %284 = vector.extract_strided_slice %262 {offsets = [0, 64], sizes = [1, 32], strides = [1, 1]} : vector<1x96xf32> to vector<1x32xf32>
    %285 = vector.extract_strided_slice %267 {offsets = [0, 64], sizes = [1, 32], strides = [1, 1]} : vector<1x96xf32> to vector<1x32xf32>
    %286 = arith.mulf %275, %285 : vector<1x32xf32>
    %287 = arith.addf %284, %286 : vector<1x32xf32>
    %288 = math.tanh %287 : vector<1x32xf32>
    %cst_95 = arith.constant 1.000000e+00 : f32
    %289 = vector.broadcast %cst_95 : f32 to vector<1x32xf32>
    %290 = arith.subf %289, %283 : vector<1x32xf32>
    %291 = arith.mulf %290, %288 : vector<1x32xf32>
    %292 = arith.mulf %283, %222 : vector<1x32xf32>
    %293 = arith.addf %291, %292 : vector<1x32xf32>
    %294 = arith.index_cast %c3_i32 : i32 to index
    %c0_96 = arith.constant 0 : index
    %295 = vector.load %arg23[%294, %c0_96] : memref<8x32xf32, #tpu.memory_space<vmem>>, vector<1x32xf32>
    tpu.vector_store %arg23[%294, %c0_96], %260 {strides = array<i32>} : memref<8x32xf32, #tpu.memory_space<vmem>>, vector<1x32xf32>,
    %296 = arith.index_cast %227 : i32 to index
    %c0_97 = arith.constant 0 : index
    %297 = vector.load %arg24[%296, %c0_97] : memref<8x32xf32, #tpu.memory_space<vmem>>, vector<1x32xf32>
    tpu.vector_store %arg24[%296, %c0_97], %293 {strides = array<i32>} : memref<8x32xf32, #tpu.memory_space<vmem>>, vector<1x32xf32>,
    %c4_i32 = arith.constant 4 : i32
    %c7_i32_98 = arith.constant 7 : i32
    %298 = arith.subi %c7_i32_98, %c4_i32 : i32
    %299 = arith.index_cast %c4_i32 : i32 to index
    %c0_99 = arith.constant 0 : index
    %300 = vector.load %arg21[%299, %c0_99] : memref<8x96xf32, #tpu.memory_space<vmem>>, vector<1x96xf32>
    %301 = arith.truncf %260 : vector<1x32xf32> to vector<1x32xbf16>
    %c0_100 = arith.constant 0 : index
    %c0_101 = arith.constant 0 : index
    %302 = vector.load %arg3[%c0_100, %c0_101] : memref<32x96xbf16, #tpu.memory_space<vmem>>, vector<32x96xbf16>
    %cst_102 = arith.constant dense<0.000000e+00> : vector<1x96xf32>
    %303 = tpu.matmul %301, %302, %cst_102 {dimension_numbers = #tpu.dot_dimension_numbers<[1], [0], [0], [1], [0, 0, 1, 1], [], []>} : vector<1x32xbf16>, vector<32x96xbf16>, vector<1x96xf32> -> vector<1x96xf32>
    %c0_103 = arith.constant 0 : index
    %c0_104 = arith.constant 0 : index
    %304 = vector.load %arg5[%c0_103, %c0_104] : memref<1x96xf32, #tpu.memory_space<vmem>>, vector<1x96xf32>
    %305 = arith.addf %303, %304 : vector<1x96xf32>
    %306 = vector.extract_strided_slice %300 {offsets = [0, 0], sizes = [1, 32], strides = [1, 1]} : vector<1x96xf32> to vector<1x32xf32>
    %307 = vector.extract_strided_slice %305 {offsets = [0, 0], sizes = [1, 32], strides = [1, 1]} : vector<1x96xf32> to vector<1x32xf32>
    %308 = arith.addf %306, %307 : vector<1x32xf32>
    %309 = arith.negf %308 : vector<1x32xf32>
    %310 = math.exp %309 : vector<1x32xf32>
    %cst_105 = arith.constant 1.000000e+00 : f32
    %311 = vector.broadcast %cst_105 : f32 to vector<1x32xf32>
    %312 = arith.addf %311, %310 : vector<1x32xf32>
    %313 = arith.divf %311, %312 : vector<1x32xf32>
    %314 = vector.extract_strided_slice %300 {offsets = [0, 32], sizes = [1, 32], strides = [1, 1]} : vector<1x96xf32> to vector<1x32xf32>
    %315 = vector.extract_strided_slice %305 {offsets = [0, 32], sizes = [1, 32], strides = [1, 1]} : vector<1x96xf32> to vector<1x32xf32>
    %316 = arith.addf %314, %315 : vector<1x32xf32>
    %317 = arith.negf %316 : vector<1x32xf32>
    %318 = math.exp %317 : vector<1x32xf32>
    %cst_106 = arith.constant 1.000000e+00 : f32
    %319 = vector.broadcast %cst_106 : f32 to vector<1x32xf32>
    %320 = arith.addf %319, %318 : vector<1x32xf32>
    %321 = arith.divf %319, %320 : vector<1x32xf32>
    %322 = vector.extract_strided_slice %300 {offsets = [0, 64], sizes = [1, 32], strides = [1, 1]} : vector<1x96xf32> to vector<1x32xf32>
    %323 = vector.extract_strided_slice %305 {offsets = [0, 64], sizes = [1, 32], strides = [1, 1]} : vector<1x96xf32> to vector<1x32xf32>
    %324 = arith.mulf %313, %323 : vector<1x32xf32>
    %325 = arith.addf %322, %324 : vector<1x32xf32>
    %326 = math.tanh %325 : vector<1x32xf32>
    %cst_107 = arith.constant 1.000000e+00 : f32
    %327 = vector.broadcast %cst_107 : f32 to vector<1x32xf32>
    %328 = arith.subf %327, %321 : vector<1x32xf32>
    %329 = arith.mulf %328, %326 : vector<1x32xf32>
    %330 = arith.mulf %321, %260 : vector<1x32xf32>
    %331 = arith.addf %329, %330 : vector<1x32xf32>
    %332 = arith.index_cast %298 : i32 to index
    %c0_108 = arith.constant 0 : index
    %333 = vector.load %arg22[%332, %c0_108] : memref<8x96xf32, #tpu.memory_space<vmem>>, vector<1x96xf32>
    %334 = arith.truncf %293 : vector<1x32xf32> to vector<1x32xbf16>
    %c0_109 = arith.constant 0 : index
    %c0_110 = arith.constant 0 : index
    %335 = vector.load %arg7[%c0_109, %c0_110] : memref<32x96xbf16, #tpu.memory_space<vmem>>, vector<32x96xbf16>
    %cst_111 = arith.constant dense<0.000000e+00> : vector<1x96xf32>
    %336 = tpu.matmul %334, %335, %cst_111 {dimension_numbers = #tpu.dot_dimension_numbers<[1], [0], [0], [1], [0, 0, 1, 1], [], []>} : vector<1x32xbf16>, vector<32x96xbf16>, vector<1x96xf32> -> vector<1x96xf32>
    %c0_112 = arith.constant 0 : index
    %c0_113 = arith.constant 0 : index
    %337 = vector.load %arg9[%c0_112, %c0_113] : memref<1x96xf32, #tpu.memory_space<vmem>>, vector<1x96xf32>
    %338 = arith.addf %336, %337 : vector<1x96xf32>
    %339 = vector.extract_strided_slice %333 {offsets = [0, 0], sizes = [1, 32], strides = [1, 1]} : vector<1x96xf32> to vector<1x32xf32>
    %340 = vector.extract_strided_slice %338 {offsets = [0, 0], sizes = [1, 32], strides = [1, 1]} : vector<1x96xf32> to vector<1x32xf32>
    %341 = arith.addf %339, %340 : vector<1x32xf32>
    %342 = arith.negf %341 : vector<1x32xf32>
    %343 = math.exp %342 : vector<1x32xf32>
    %cst_114 = arith.constant 1.000000e+00 : f32
    %344 = vector.broadcast %cst_114 : f32 to vector<1x32xf32>
    %345 = arith.addf %344, %343 : vector<1x32xf32>
    %346 = arith.divf %344, %345 : vector<1x32xf32>
    %347 = vector.extract_strided_slice %333 {offsets = [0, 32], sizes = [1, 32], strides = [1, 1]} : vector<1x96xf32> to vector<1x32xf32>
    %348 = vector.extract_strided_slice %338 {offsets = [0, 32], sizes = [1, 32], strides = [1, 1]} : vector<1x96xf32> to vector<1x32xf32>
    %349 = arith.addf %347, %348 : vector<1x32xf32>
    %350 = arith.negf %349 : vector<1x32xf32>
    %351 = math.exp %350 : vector<1x32xf32>
    %cst_115 = arith.constant 1.000000e+00 : f32
    %352 = vector.broadcast %cst_115 : f32 to vector<1x32xf32>
    %353 = arith.addf %352, %351 : vector<1x32xf32>
    %354 = arith.divf %352, %353 : vector<1x32xf32>
    %355 = vector.extract_strided_slice %333 {offsets = [0, 64], sizes = [1, 32], strides = [1, 1]} : vector<1x96xf32> to vector<1x32xf32>
    %356 = vector.extract_strided_slice %338 {offsets = [0, 64], sizes = [1, 32], strides = [1, 1]} : vector<1x96xf32> to vector<1x32xf32>
    %357 = arith.mulf %346, %356 : vector<1x32xf32>
    %358 = arith.addf %355, %357 : vector<1x32xf32>
    %359 = math.tanh %358 : vector<1x32xf32>
    %cst_116 = arith.constant 1.000000e+00 : f32
    %360 = vector.broadcast %cst_116 : f32 to vector<1x32xf32>
    %361 = arith.subf %360, %354 : vector<1x32xf32>
    %362 = arith.mulf %361, %359 : vector<1x32xf32>
    %363 = arith.mulf %354, %293 : vector<1x32xf32>
    %364 = arith.addf %362, %363 : vector<1x32xf32>
    %365 = arith.index_cast %c4_i32 : i32 to index
    %c0_117 = arith.constant 0 : index
    %366 = vector.load %arg23[%365, %c0_117] : memref<8x32xf32, #tpu.memory_space<vmem>>, vector<1x32xf32>
    tpu.vector_store %arg23[%365, %c0_117], %331 {strides = array<i32>} : memref<8x32xf32, #tpu.memory_space<vmem>>, vector<1x32xf32>,
    %367 = arith.index_cast %298 : i32 to index
    %c0_118 = arith.constant 0 : index
    %368 = vector.load %arg24[%367, %c0_118] : memref<8x32xf32, #tpu.memory_space<vmem>>, vector<1x32xf32>
    tpu.vector_store %arg24[%367, %c0_118], %364 {strides = array<i32>} : memref<8x32xf32, #tpu.memory_space<vmem>>, vector<1x32xf32>,
    %c5_i32 = arith.constant 5 : i32
    %c7_i32_119 = arith.constant 7 : i32
    %369 = arith.subi %c7_i32_119, %c5_i32 : i32
    %370 = arith.index_cast %c5_i32 : i32 to index
    %c0_120 = arith.constant 0 : index
    %371 = vector.load %arg21[%370, %c0_120] : memref<8x96xf32, #tpu.memory_space<vmem>>, vector<1x96xf32>
    %372 = arith.truncf %331 : vector<1x32xf32> to vector<1x32xbf16>
    %c0_121 = arith.constant 0 : index
    %c0_122 = arith.constant 0 : index
    %373 = vector.load %arg3[%c0_121, %c0_122] : memref<32x96xbf16, #tpu.memory_space<vmem>>, vector<32x96xbf16>
    %cst_123 = arith.constant dense<0.000000e+00> : vector<1x96xf32>
    %374 = tpu.matmul %372, %373, %cst_123 {dimension_numbers = #tpu.dot_dimension_numbers<[1], [0], [0], [1], [0, 0, 1, 1], [], []>} : vector<1x32xbf16>, vector<32x96xbf16>, vector<1x96xf32> -> vector<1x96xf32>
    %c0_124 = arith.constant 0 : index
    %c0_125 = arith.constant 0 : index
    %375 = vector.load %arg5[%c0_124, %c0_125] : memref<1x96xf32, #tpu.memory_space<vmem>>, vector<1x96xf32>
    %376 = arith.addf %374, %375 : vector<1x96xf32>
    %377 = vector.extract_strided_slice %371 {offsets = [0, 0], sizes = [1, 32], strides = [1, 1]} : vector<1x96xf32> to vector<1x32xf32>
    %378 = vector.extract_strided_slice %376 {offsets = [0, 0], sizes = [1, 32], strides = [1, 1]} : vector<1x96xf32> to vector<1x32xf32>
    %379 = arith.addf %377, %378 : vector<1x32xf32>
    %380 = arith.negf %379 : vector<1x32xf32>
    %381 = math.exp %380 : vector<1x32xf32>
    %cst_126 = arith.constant 1.000000e+00 : f32
    %382 = vector.broadcast %cst_126 : f32 to vector<1x32xf32>
    %383 = arith.addf %382, %381 : vector<1x32xf32>
    %384 = arith.divf %382, %383 : vector<1x32xf32>
    %385 = vector.extract_strided_slice %371 {offsets = [0, 32], sizes = [1, 32], strides = [1, 1]} : vector<1x96xf32> to vector<1x32xf32>
    %386 = vector.extract_strided_slice %376 {offsets = [0, 32], sizes = [1, 32], strides = [1, 1]} : vector<1x96xf32> to vector<1x32xf32>
    %387 = arith.addf %385, %386 : vector<1x32xf32>
    %388 = arith.negf %387 : vector<1x32xf32>
    %389 = math.exp %388 : vector<1x32xf32>
    %cst_127 = arith.constant 1.000000e+00 : f32
    %390 = vector.broadcast %cst_127 : f32 to vector<1x32xf32>
    %391 = arith.addf %390, %389 : vector<1x32xf32>
    %392 = arith.divf %390, %391 : vector<1x32xf32>
    %393 = vector.extract_strided_slice %371 {offsets = [0, 64], sizes = [1, 32], strides = [1, 1]} : vector<1x96xf32> to vector<1x32xf32>
    %394 = vector.extract_strided_slice %376 {offsets = [0, 64], sizes = [1, 32], strides = [1, 1]} : vector<1x96xf32> to vector<1x32xf32>
    %395 = arith.mulf %384, %394 : vector<1x32xf32>
    %396 = arith.addf %393, %395 : vector<1x32xf32>
    %397 = math.tanh %396 : vector<1x32xf32>
    %cst_128 = arith.constant 1.000000e+00 : f32
    %398 = vector.broadcast %cst_128 : f32 to vector<1x32xf32>
    %399 = arith.subf %398, %392 : vector<1x32xf32>
    %400 = arith.mulf %399, %397 : vector<1x32xf32>
    %401 = arith.mulf %392, %331 : vector<1x32xf32>
    %402 = arith.addf %400, %401 : vector<1x32xf32>
    %403 = arith.index_cast %369 : i32 to index
    %c0_129 = arith.constant 0 : index
    %404 = vector.load %arg22[%403, %c0_129] : memref<8x96xf32, #tpu.memory_space<vmem>>, vector<1x96xf32>
    %405 = arith.truncf %364 : vector<1x32xf32> to vector<1x32xbf16>
    %c0_130 = arith.constant 0 : index
    %c0_131 = arith.constant 0 : index
    %406 = vector.load %arg7[%c0_130, %c0_131] : memref<32x96xbf16, #tpu.memory_space<vmem>>, vector<32x96xbf16>
    %cst_132 = arith.constant dense<0.000000e+00> : vector<1x96xf32>
    %407 = tpu.matmul %405, %406, %cst_132 {dimension_numbers = #tpu.dot_dimension_numbers<[1], [0], [0], [1], [0, 0, 1, 1], [], []>} : vector<1x32xbf16>, vector<32x96xbf16>, vector<1x96xf32> -> vector<1x96xf32>
    %c0_133 = arith.constant 0 : index
    %c0_134 = arith.constant 0 : index
    %408 = vector.load %arg9[%c0_133, %c0_134] : memref<1x96xf32, #tpu.memory_space<vmem>>, vector<1x96xf32>
    %409 = arith.addf %407, %408 : vector<1x96xf32>
    %410 = vector.extract_strided_slice %404 {offsets = [0, 0], sizes = [1, 32], strides = [1, 1]} : vector<1x96xf32> to vector<1x32xf32>
    %411 = vector.extract_strided_slice %409 {offsets = [0, 0], sizes = [1, 32], strides = [1, 1]} : vector<1x96xf32> to vector<1x32xf32>
    %412 = arith.addf %410, %411 : vector<1x32xf32>
    %413 = arith.negf %412 : vector<1x32xf32>
    %414 = math.exp %413 : vector<1x32xf32>
    %cst_135 = arith.constant 1.000000e+00 : f32
    %415 = vector.broadcast %cst_135 : f32 to vector<1x32xf32>
    %416 = arith.addf %415, %414 : vector<1x32xf32>
    %417 = arith.divf %415, %416 : vector<1x32xf32>
    %418 = vector.extract_strided_slice %404 {offsets = [0, 32], sizes = [1, 32], strides = [1, 1]} : vector<1x96xf32> to vector<1x32xf32>
    %419 = vector.extract_strided_slice %409 {offsets = [0, 32], sizes = [1, 32], strides = [1, 1]} : vector<1x96xf32> to vector<1x32xf32>
    %420 = arith.addf %418, %419 : vector<1x32xf32>
    %421 = arith.negf %420 : vector<1x32xf32>
    %422 = math.exp %421 : vector<1x32xf32>
    %cst_136 = arith.constant 1.000000e+00 : f32
    %423 = vector.broadcast %cst_136 : f32 to vector<1x32xf32>
    %424 = arith.addf %423, %422 : vector<1x32xf32>
    %425 = arith.divf %423, %424 : vector<1x32xf32>
    %426 = vector.extract_strided_slice %404 {offsets = [0, 64], sizes = [1, 32], strides = [1, 1]} : vector<1x96xf32> to vector<1x32xf32>
    %427 = vector.extract_strided_slice %409 {offsets = [0, 64], sizes = [1, 32], strides = [1, 1]} : vector<1x96xf32> to vector<1x32xf32>
    %428 = arith.mulf %417, %427 : vector<1x32xf32>
    %429 = arith.addf %426, %428 : vector<1x32xf32>
    %430 = math.tanh %429 : vector<1x32xf32>
    %cst_137 = arith.constant 1.000000e+00 : f32
    %431 = vector.broadcast %cst_137 : f32 to vector<1x32xf32>
    %432 = arith.subf %431, %425 : vector<1x32xf32>
    %433 = arith.mulf %432, %430 : vector<1x32xf32>
    %434 = arith.mulf %425, %364 : vector<1x32xf32>
    %435 = arith.addf %433, %434 : vector<1x32xf32>
    %436 = arith.index_cast %c5_i32 : i32 to index
    %c0_138 = arith.constant 0 : index
    %437 = vector.load %arg23[%436, %c0_138] : memref<8x32xf32, #tpu.memory_space<vmem>>, vector<1x32xf32>
    tpu.vector_store %arg23[%436, %c0_138], %402 {strides = array<i32>} : memref<8x32xf32, #tpu.memory_space<vmem>>, vector<1x32xf32>,
    %438 = arith.index_cast %369 : i32 to index
    %c0_139 = arith.constant 0 : index
    %439 = vector.load %arg24[%438, %c0_139] : memref<8x32xf32, #tpu.memory_space<vmem>>, vector<1x32xf32>
    tpu.vector_store %arg24[%438, %c0_139], %435 {strides = array<i32>} : memref<8x32xf32, #tpu.memory_space<vmem>>, vector<1x32xf32>,
    %c6_i32 = arith.constant 6 : i32
    %c7_i32_140 = arith.constant 7 : i32
    %440 = arith.subi %c7_i32_140, %c6_i32 : i32
    %441 = arith.index_cast %c6_i32 : i32 to index
    %c0_141 = arith.constant 0 : index
    %442 = vector.load %arg21[%441, %c0_141] : memref<8x96xf32, #tpu.memory_space<vmem>>, vector<1x96xf32>
    %443 = arith.truncf %402 : vector<1x32xf32> to vector<1x32xbf16>
    %c0_142 = arith.constant 0 : index
    %c0_143 = arith.constant 0 : index
    %444 = vector.load %arg3[%c0_142, %c0_143] : memref<32x96xbf16, #tpu.memory_space<vmem>>, vector<32x96xbf16>
    %cst_144 = arith.constant dense<0.000000e+00> : vector<1x96xf32>
    %445 = tpu.matmul %443, %444, %cst_144 {dimension_numbers = #tpu.dot_dimension_numbers<[1], [0], [0], [1], [0, 0, 1, 1], [], []>} : vector<1x32xbf16>, vector<32x96xbf16>, vector<1x96xf32> -> vector<1x96xf32>
    %c0_145 = arith.constant 0 : index
    %c0_146 = arith.constant 0 : index
    %446 = vector.load %arg5[%c0_145, %c0_146] : memref<1x96xf32, #tpu.memory_space<vmem>>, vector<1x96xf32>
    %447 = arith.addf %445, %446 : vector<1x96xf32>
    %448 = vector.extract_strided_slice %442 {offsets = [0, 0], sizes = [1, 32], strides = [1, 1]} : vector<1x96xf32> to vector<1x32xf32>
    %449 = vector.extract_strided_slice %447 {offsets = [0, 0], sizes = [1, 32], strides = [1, 1]} : vector<1x96xf32> to vector<1x32xf32>
    %450 = arith.addf %448, %449 : vector<1x32xf32>
    %451 = arith.negf %450 : vector<1x32xf32>
    %452 = math.exp %451 : vector<1x32xf32>
    %cst_147 = arith.constant 1.000000e+00 : f32
    %453 = vector.broadcast %cst_147 : f32 to vector<1x32xf32>
    %454 = arith.addf %453, %452 : vector<1x32xf32>
    %455 = arith.divf %453, %454 : vector<1x32xf32>
    %456 = vector.extract_strided_slice %442 {offsets = [0, 32], sizes = [1, 32], strides = [1, 1]} : vector<1x96xf32> to vector<1x32xf32>
    %457 = vector.extract_strided_slice %447 {offsets = [0, 32], sizes = [1, 32], strides = [1, 1]} : vector<1x96xf32> to vector<1x32xf32>
    %458 = arith.addf %456, %457 : vector<1x32xf32>
    %459 = arith.negf %458 : vector<1x32xf32>
    %460 = math.exp %459 : vector<1x32xf32>
    %cst_148 = arith.constant 1.000000e+00 : f32
    %461 = vector.broadcast %cst_148 : f32 to vector<1x32xf32>
    %462 = arith.addf %461, %460 : vector<1x32xf32>
    %463 = arith.divf %461, %462 : vector<1x32xf32>
    %464 = vector.extract_strided_slice %442 {offsets = [0, 64], sizes = [1, 32], strides = [1, 1]} : vector<1x96xf32> to vector<1x32xf32>
    %465 = vector.extract_strided_slice %447 {offsets = [0, 64], sizes = [1, 32], strides = [1, 1]} : vector<1x96xf32> to vector<1x32xf32>
    %466 = arith.mulf %455, %465 : vector<1x32xf32>
    %467 = arith.addf %464, %466 : vector<1x32xf32>
    %468 = math.tanh %467 : vector<1x32xf32>
    %cst_149 = arith.constant 1.000000e+00 : f32
    %469 = vector.broadcast %cst_149 : f32 to vector<1x32xf32>
    %470 = arith.subf %469, %463 : vector<1x32xf32>
    %471 = arith.mulf %470, %468 : vector<1x32xf32>
    %472 = arith.mulf %463, %402 : vector<1x32xf32>
    %473 = arith.addf %471, %472 : vector<1x32xf32>
    %474 = arith.index_cast %440 : i32 to index
    %c0_150 = arith.constant 0 : index
    %475 = vector.load %arg22[%474, %c0_150] : memref<8x96xf32, #tpu.memory_space<vmem>>, vector<1x96xf32>
    %476 = arith.truncf %435 : vector<1x32xf32> to vector<1x32xbf16>
    %c0_151 = arith.constant 0 : index
    %c0_152 = arith.constant 0 : index
    %477 = vector.load %arg7[%c0_151, %c0_152] : memref<32x96xbf16, #tpu.memory_space<vmem>>, vector<32x96xbf16>
    %cst_153 = arith.constant dense<0.000000e+00> : vector<1x96xf32>
    %478 = tpu.matmul %476, %477, %cst_153 {dimension_numbers = #tpu.dot_dimension_numbers<[1], [0], [0], [1], [0, 0, 1, 1], [], []>} : vector<1x32xbf16>, vector<32x96xbf16>, vector<1x96xf32> -> vector<1x96xf32>
    %c0_154 = arith.constant 0 : index
    %c0_155 = arith.constant 0 : index
    %479 = vector.load %arg9[%c0_154, %c0_155] : memref<1x96xf32, #tpu.memory_space<vmem>>, vector<1x96xf32>
    %480 = arith.addf %478, %479 : vector<1x96xf32>
    %481 = vector.extract_strided_slice %475 {offsets = [0, 0], sizes = [1, 32], strides = [1, 1]} : vector<1x96xf32> to vector<1x32xf32>
    %482 = vector.extract_strided_slice %480 {offsets = [0, 0], sizes = [1, 32], strides = [1, 1]} : vector<1x96xf32> to vector<1x32xf32>
    %483 = arith.addf %481, %482 : vector<1x32xf32>
    %484 = arith.negf %483 : vector<1x32xf32>
    %485 = math.exp %484 : vector<1x32xf32>
    %cst_156 = arith.constant 1.000000e+00 : f32
    %486 = vector.broadcast %cst_156 : f32 to vector<1x32xf32>
    %487 = arith.addf %486, %485 : vector<1x32xf32>
    %488 = arith.divf %486, %487 : vector<1x32xf32>
    %489 = vector.extract_strided_slice %475 {offsets = [0, 32], sizes = [1, 32], strides = [1, 1]} : vector<1x96xf32> to vector<1x32xf32>
    %490 = vector.extract_strided_slice %480 {offsets = [0, 32], sizes = [1, 32], strides = [1, 1]} : vector<1x96xf32> to vector<1x32xf32>
    %491 = arith.addf %489, %490 : vector<1x32xf32>
    %492 = arith.negf %491 : vector<1x32xf32>
    %493 = math.exp %492 : vector<1x32xf32>
    %cst_157 = arith.constant 1.000000e+00 : f32
    %494 = vector.broadcast %cst_157 : f32 to vector<1x32xf32>
    %495 = arith.addf %494, %493 : vector<1x32xf32>
    %496 = arith.divf %494, %495 : vector<1x32xf32>
    %497 = vector.extract_strided_slice %475 {offsets = [0, 64], sizes = [1, 32], strides = [1, 1]} : vector<1x96xf32> to vector<1x32xf32>
    %498 = vector.extract_strided_slice %480 {offsets = [0, 64], sizes = [1, 32], strides = [1, 1]} : vector<1x96xf32> to vector<1x32xf32>
    %499 = arith.mulf %488, %498 : vector<1x32xf32>
    %500 = arith.addf %497, %499 : vector<1x32xf32>
    %501 = math.tanh %500 : vector<1x32xf32>
    %cst_158 = arith.constant 1.000000e+00 : f32
    %502 = vector.broadcast %cst_158 : f32 to vector<1x32xf32>
    %503 = arith.subf %502, %496 : vector<1x32xf32>
    %504 = arith.mulf %503, %501 : vector<1x32xf32>
    %505 = arith.mulf %496, %435 : vector<1x32xf32>
    %506 = arith.addf %504, %505 : vector<1x32xf32>
    %507 = arith.index_cast %c6_i32 : i32 to index
    %c0_159 = arith.constant 0 : index
    %508 = vector.load %arg23[%507, %c0_159] : memref<8x32xf32, #tpu.memory_space<vmem>>, vector<1x32xf32>
    tpu.vector_store %arg23[%507, %c0_159], %473 {strides = array<i32>} : memref<8x32xf32, #tpu.memory_space<vmem>>, vector<1x32xf32>,
    %509 = arith.index_cast %440 : i32 to index
    %c0_160 = arith.constant 0 : index
    %510 = vector.load %arg24[%509, %c0_160] : memref<8x32xf32, #tpu.memory_space<vmem>>, vector<1x32xf32>
    tpu.vector_store %arg24[%509, %c0_160], %506 {strides = array<i32>} : memref<8x32xf32, #tpu.memory_space<vmem>>, vector<1x32xf32>,
    %c7_i32_161 = arith.constant 7 : i32
    %c7_i32_162 = arith.constant 7 : i32
    %511 = arith.subi %c7_i32_162, %c7_i32_161 : i32
    %512 = arith.index_cast %c7_i32_161 : i32 to index
    %c0_163 = arith.constant 0 : index
    %513 = vector.load %arg21[%512, %c0_163] : memref<8x96xf32, #tpu.memory_space<vmem>>, vector<1x96xf32>
    %514 = arith.truncf %473 : vector<1x32xf32> to vector<1x32xbf16>
    %c0_164 = arith.constant 0 : index
    %c0_165 = arith.constant 0 : index
    %515 = vector.load %arg3[%c0_164, %c0_165] : memref<32x96xbf16, #tpu.memory_space<vmem>>, vector<32x96xbf16>
    %cst_166 = arith.constant dense<0.000000e+00> : vector<1x96xf32>
    %516 = tpu.matmul %514, %515, %cst_166 {dimension_numbers = #tpu.dot_dimension_numbers<[1], [0], [0], [1], [0, 0, 1, 1], [], []>} : vector<1x32xbf16>, vector<32x96xbf16>, vector<1x96xf32> -> vector<1x96xf32>
    %c0_167 = arith.constant 0 : index
    %c0_168 = arith.constant 0 : index
    %517 = vector.load %arg5[%c0_167, %c0_168] : memref<1x96xf32, #tpu.memory_space<vmem>>, vector<1x96xf32>
    %518 = arith.addf %516, %517 : vector<1x96xf32>
    %519 = vector.extract_strided_slice %513 {offsets = [0, 0], sizes = [1, 32], strides = [1, 1]} : vector<1x96xf32> to vector<1x32xf32>
    %520 = vector.extract_strided_slice %518 {offsets = [0, 0], sizes = [1, 32], strides = [1, 1]} : vector<1x96xf32> to vector<1x32xf32>
    %521 = arith.addf %519, %520 : vector<1x32xf32>
    %522 = arith.negf %521 : vector<1x32xf32>
    %523 = math.exp %522 : vector<1x32xf32>
    %cst_169 = arith.constant 1.000000e+00 : f32
    %524 = vector.broadcast %cst_169 : f32 to vector<1x32xf32>
    %525 = arith.addf %524, %523 : vector<1x32xf32>
    %526 = arith.divf %524, %525 : vector<1x32xf32>
    %527 = vector.extract_strided_slice %513 {offsets = [0, 32], sizes = [1, 32], strides = [1, 1]} : vector<1x96xf32> to vector<1x32xf32>
    %528 = vector.extract_strided_slice %518 {offsets = [0, 32], sizes = [1, 32], strides = [1, 1]} : vector<1x96xf32> to vector<1x32xf32>
    %529 = arith.addf %527, %528 : vector<1x32xf32>
    %530 = arith.negf %529 : vector<1x32xf32>
    %531 = math.exp %530 : vector<1x32xf32>
    %cst_170 = arith.constant 1.000000e+00 : f32
    %532 = vector.broadcast %cst_170 : f32 to vector<1x32xf32>
    %533 = arith.addf %532, %531 : vector<1x32xf32>
    %534 = arith.divf %532, %533 : vector<1x32xf32>
    %535 = vector.extract_strided_slice %513 {offsets = [0, 64], sizes = [1, 32], strides = [1, 1]} : vector<1x96xf32> to vector<1x32xf32>
    %536 = vector.extract_strided_slice %518 {offsets = [0, 64], sizes = [1, 32], strides = [1, 1]} : vector<1x96xf32> to vector<1x32xf32>
    %537 = arith.mulf %526, %536 : vector<1x32xf32>
    %538 = arith.addf %535, %537 : vector<1x32xf32>
    %539 = math.tanh %538 : vector<1x32xf32>
    %cst_171 = arith.constant 1.000000e+00 : f32
    %540 = vector.broadcast %cst_171 : f32 to vector<1x32xf32>
    %541 = arith.subf %540, %534 : vector<1x32xf32>
    %542 = arith.mulf %541, %539 : vector<1x32xf32>
    %543 = arith.mulf %534, %473 : vector<1x32xf32>
    %544 = arith.addf %542, %543 : vector<1x32xf32>
    %545 = arith.index_cast %511 : i32 to index
    %c0_172 = arith.constant 0 : index
    %546 = vector.load %arg22[%545, %c0_172] : memref<8x96xf32, #tpu.memory_space<vmem>>, vector<1x96xf32>
    %547 = arith.truncf %506 : vector<1x32xf32> to vector<1x32xbf16>
    %c0_173 = arith.constant 0 : index
    %c0_174 = arith.constant 0 : index
    %548 = vector.load %arg7[%c0_173, %c0_174] : memref<32x96xbf16, #tpu.memory_space<vmem>>, vector<32x96xbf16>
    %cst_175 = arith.constant dense<0.000000e+00> : vector<1x96xf32>
    %549 = tpu.matmul %547, %548, %cst_175 {dimension_numbers = #tpu.dot_dimension_numbers<[1], [0], [0], [1], [0, 0, 1, 1], [], []>} : vector<1x32xbf16>, vector<32x96xbf16>, vector<1x96xf32> -> vector<1x96xf32>
    %c0_176 = arith.constant 0 : index
    %c0_177 = arith.constant 0 : index
    %550 = vector.load %arg9[%c0_176, %c0_177] : memref<1x96xf32, #tpu.memory_space<vmem>>, vector<1x96xf32>
    %551 = arith.addf %549, %550 : vector<1x96xf32>
    %552 = vector.extract_strided_slice %546 {offsets = [0, 0], sizes = [1, 32], strides = [1, 1]} : vector<1x96xf32> to vector<1x32xf32>
    %553 = vector.extract_strided_slice %551 {offsets = [0, 0], sizes = [1, 32], strides = [1, 1]} : vector<1x96xf32> to vector<1x32xf32>
    %554 = arith.addf %552, %553 : vector<1x32xf32>
    %555 = arith.negf %554 : vector<1x32xf32>
    %556 = math.exp %555 : vector<1x32xf32>
    %cst_178 = arith.constant 1.000000e+00 : f32
    %557 = vector.broadcast %cst_178 : f32 to vector<1x32xf32>
    %558 = arith.addf %557, %556 : vector<1x32xf32>
    %559 = arith.divf %557, %558 : vector<1x32xf32>
    %560 = vector.extract_strided_slice %546 {offsets = [0, 32], sizes = [1, 32], strides = [1, 1]} : vector<1x96xf32> to vector<1x32xf32>
    %561 = vector.extract_strided_slice %551 {offsets = [0, 32], sizes = [1, 32], strides = [1, 1]} : vector<1x96xf32> to vector<1x32xf32>
    %562 = arith.addf %560, %561 : vector<1x32xf32>
    %563 = arith.negf %562 : vector<1x32xf32>
    %564 = math.exp %563 : vector<1x32xf32>
    %cst_179 = arith.constant 1.000000e+00 : f32
    %565 = vector.broadcast %cst_179 : f32 to vector<1x32xf32>
    %566 = arith.addf %565, %564 : vector<1x32xf32>
    %567 = arith.divf %565, %566 : vector<1x32xf32>
    %568 = vector.extract_strided_slice %546 {offsets = [0, 64], sizes = [1, 32], strides = [1, 1]} : vector<1x96xf32> to vector<1x32xf32>
    %569 = vector.extract_strided_slice %551 {offsets = [0, 64], sizes = [1, 32], strides = [1, 1]} : vector<1x96xf32> to vector<1x32xf32>
    %570 = arith.mulf %559, %569 : vector<1x32xf32>
    %571 = arith.addf %568, %570 : vector<1x32xf32>
    %572 = math.tanh %571 : vector<1x32xf32>
    %cst_180 = arith.constant 1.000000e+00 : f32
    %573 = vector.broadcast %cst_180 : f32 to vector<1x32xf32>
    %574 = arith.subf %573, %567 : vector<1x32xf32>
    %575 = arith.mulf %574, %572 : vector<1x32xf32>
    %576 = arith.mulf %567, %506 : vector<1x32xf32>
    %577 = arith.addf %575, %576 : vector<1x32xf32>
    %578 = arith.index_cast %c7_i32_161 : i32 to index
    %c0_181 = arith.constant 0 : index
    %579 = vector.load %arg23[%578, %c0_181] : memref<8x32xf32, #tpu.memory_space<vmem>>, vector<1x32xf32>
    tpu.vector_store %arg23[%578, %c0_181], %544 {strides = array<i32>} : memref<8x32xf32, #tpu.memory_space<vmem>>, vector<1x32xf32>,
    %580 = arith.index_cast %511 : i32 to index
    %c0_182 = arith.constant 0 : index
    %581 = vector.load %arg24[%580, %c0_182] : memref<8x32xf32, #tpu.memory_space<vmem>>, vector<1x32xf32>
    tpu.vector_store %arg24[%580, %c0_182], %577 {strides = array<i32>} : memref<8x32xf32, #tpu.memory_space<vmem>>, vector<1x32xf32>,
    %c8_i32 = arith.constant 8 : i32
    %c0_183 = arith.constant 0 : index
    %c0_184 = arith.constant 0 : index
    %582 = vector.load %arg23[%c0_183, %c0_184] : memref<8x32xf32, #tpu.memory_space<vmem>>, vector<8x32xf32>
    %c0_185 = arith.constant 0 : index
    %c0_186 = arith.constant 0 : index
    %583 = vector.load %arg24[%c0_185, %c0_186] : memref<8x32xf32, #tpu.memory_space<vmem>>, vector<8x32xf32>
    %584 = arith.addf %582, %583 : vector<8x32xf32>
    %c0_187 = arith.constant 0 : index
    %c0_188 = arith.constant 0 : index
    %585 = vector.load %arg23[%c0_187, %c0_188] : memref<8x32xf32, #tpu.memory_space<vmem>>, vector<8x32xf32>
    tpu.vector_store %arg23[%c0_187, %c0_188], %584 {strides = array<i32>} : memref<8x32xf32, #tpu.memory_space<vmem>>, vector<8x32xf32>,
    %586 = tpu.iota {dimensions = array<i32: 1>} : vector<1x64xi32>
    %c1_i32_189 = arith.constant 1 : i32
    %c0_i32_190 = arith.constant 0 : i32
    %587 = arith.index_cast %c1_i32_189 : i32 to index
    %c0_191 = arith.constant 0 : index
    %588 = vector.load %arg1[%587, %c0_191] : memref<64x32xf32, #tpu.memory_space<vmem>>, vector<1x32xf32>
    %589 = arith.truncf %588 : vector<1x32xf32> to vector<1x32xbf16>
    %c0_192 = arith.constant 0 : index
    %c0_193 = arith.constant 0 : index
    %590 = vector.load %arg10[%c0_192, %c0_193] : memref<32x96xbf16, #tpu.memory_space<vmem>>, vector<32x96xbf16>
    %cst_194 = arith.constant dense<0.000000e+00> : vector<1x96xf32>
    %591 = tpu.matmul %589, %590, %cst_194 {dimension_numbers = #tpu.dot_dimension_numbers<[1], [0], [0], [1], [0, 0, 1, 1], [], []>} : vector<1x32xbf16>, vector<32x96xbf16>, vector<1x96xf32> -> vector<1x96xf32>
    %c0_195 = arith.constant 0 : index
    %c0_196 = arith.constant 0 : index
    %592 = vector.load %arg12[%c0_195, %c0_196] : memref<1x96xf32, #tpu.memory_space<vmem>>, vector<1x96xf32>
    %593 = arith.addf %591, %592 : vector<1x96xf32>
    %594 = arith.truncf %544 : vector<1x32xf32> to vector<1x32xbf16>
    %c0_197 = arith.constant 0 : index
    %c0_198 = arith.constant 0 : index
    %595 = vector.load %arg11[%c0_197, %c0_198] : memref<32x96xbf16, #tpu.memory_space<vmem>>, vector<32x96xbf16>
    %cst_199 = arith.constant dense<0.000000e+00> : vector<1x96xf32>
    %596 = tpu.matmul %594, %595, %cst_199 {dimension_numbers = #tpu.dot_dimension_numbers<[1], [0], [0], [1], [0, 0, 1, 1], [], []>} : vector<1x32xbf16>, vector<32x96xbf16>, vector<1x96xf32> -> vector<1x96xf32>
    %c0_200 = arith.constant 0 : index
    %c0_201 = arith.constant 0 : index
    %597 = vector.load %arg13[%c0_200, %c0_201] : memref<1x96xf32, #tpu.memory_space<vmem>>, vector<1x96xf32>
    %598 = arith.addf %596, %597 : vector<1x96xf32>
    %599 = vector.extract_strided_slice %593 {offsets = [0, 0], sizes = [1, 32], strides = [1, 1]} : vector<1x96xf32> to vector<1x32xf32>
    %600 = vector.extract_strided_slice %598 {offsets = [0, 0], sizes = [1, 32], strides = [1, 1]} : vector<1x96xf32> to vector<1x32xf32>
    %601 = arith.addf %599, %600 : vector<1x32xf32>
    %602 = arith.negf %601 : vector<1x32xf32>
    %603 = math.exp %602 : vector<1x32xf32>
    %cst_202 = arith.constant 1.000000e+00 : f32
    %604 = vector.broadcast %cst_202 : f32 to vector<1x32xf32>
    %605 = arith.addf %604, %603 : vector<1x32xf32>
    %606 = arith.divf %604, %605 : vector<1x32xf32>
    %607 = vector.extract_strided_slice %593 {offsets = [0, 32], sizes = [1, 32], strides = [1, 1]} : vector<1x96xf32> to vector<1x32xf32>
    %608 = vector.extract_strided_slice %598 {offsets = [0, 32], sizes = [1, 32], strides = [1, 1]} : vector<1x96xf32> to vector<1x32xf32>
    %609 = arith.addf %607, %608 : vector<1x32xf32>
    %610 = arith.negf %609 : vector<1x32xf32>
    %611 = math.exp %610 : vector<1x32xf32>
    %cst_203 = arith.constant 1.000000e+00 : f32
    %612 = vector.broadcast %cst_203 : f32 to vector<1x32xf32>
    %613 = arith.addf %612, %611 : vector<1x32xf32>
    %614 = arith.divf %612, %613 : vector<1x32xf32>
    %615 = vector.extract_strided_slice %593 {offsets = [0, 64], sizes = [1, 32], strides = [1, 1]} : vector<1x96xf32> to vector<1x32xf32>
    %616 = vector.extract_strided_slice %598 {offsets = [0, 64], sizes = [1, 32], strides = [1, 1]} : vector<1x96xf32> to vector<1x32xf32>
    %617 = arith.mulf %606, %616 : vector<1x32xf32>
    %618 = arith.addf %615, %617 : vector<1x32xf32>
    %619 = math.tanh %618 : vector<1x32xf32>
    %cst_204 = arith.constant 1.000000e+00 : f32
    %620 = vector.broadcast %cst_204 : f32 to vector<1x32xf32>
    %621 = arith.subf %620, %614 : vector<1x32xf32>
    %622 = arith.mulf %621, %619 : vector<1x32xf32>
    %623 = arith.mulf %614, %544 : vector<1x32xf32>
    %624 = arith.addf %622, %623 : vector<1x32xf32>
    %c0_205 = arith.constant 0 : index
    %c0_206 = arith.constant 0 : index
    %625 = vector.load %arg23[%c0_205, %c0_206] : memref<8x32xf32, #tpu.memory_space<vmem>>, vector<8x32xf32>
    %cst_207 = arith.constant dense<0.000000e+00> : vector<1x8xf32>
    %626 = tpu.matmul %624, %625, %cst_207 {dimension_numbers = #tpu.dot_dimension_numbers<[1], [1], [0], [0], [0, 0, 1, 0], [], []>} : vector<1x32xf32>, vector<8x32xf32>, vector<1x8xf32> -> vector<1x8xf32>
    %cst_208 = arith.constant dense<0xFF800000> : vector<1xf32>
    %627 = vector.multi_reduction <maximumf>, %626, %cst_208 [1] : vector<1x8xf32> to vector<1xf32>
    %628 = vector.shape_cast %627 : vector<1xf32> to vector<1x1xf32>
    %629 = vector.broadcast %628 : vector<1x1xf32> to vector<1x8xf32>
    %630 = arith.subf %626, %629 : vector<1x8xf32>
    %631 = math.exp %630 : vector<1x8xf32>
    %cst_209 = arith.constant dense<0.000000e+00> : vector<1xf32>
    %632 = vector.multi_reduction <add>, %631, %cst_209 [1] : vector<1x8xf32> to vector<1xf32>
    %633 = vector.shape_cast %632 : vector<1xf32> to vector<1x1xf32>
    %634 = tpu.reciprocal %633 {approx = true} : vector<1x1xf32> -> vector<1x1xf32>
    %635 = vector.broadcast %634 : vector<1x1xf32> to vector<1x8xf32>
    %636 = arith.mulf %631, %635 : vector<1x8xf32>
    %cst_210 = arith.constant dense<0.000000e+00> : vector<1x32xf32>
    %637 = tpu.matmul %636, %625, %cst_210 {dimension_numbers = #tpu.dot_dimension_numbers<[1], [0], [0], [1], [0, 0, 1, 1], [], []>} : vector<1x8xf32>, vector<8x32xf32>, vector<1x32xf32> -> vector<1x32xf32>
    %638 = arith.truncf %624 : vector<1x32xf32> to vector<1x32xbf16>
    %c0_211 = arith.constant 0 : index
    %c0_212 = arith.constant 0 : index
    %639 = vector.load %arg14[%c0_211, %c0_212] : memref<32x32xbf16, #tpu.memory_space<vmem>>, vector<32x32xbf16>
    %cst_213 = arith.constant dense<0.000000e+00> : vector<1x32xf32>
    %640 = tpu.matmul %638, %639, %cst_213 {dimension_numbers = #tpu.dot_dimension_numbers<[1], [0], [0], [1], [0, 0, 1, 1], [], []>} : vector<1x32xbf16>, vector<32x32xbf16>, vector<1x32xf32> -> vector<1x32xf32>
    %641 = arith.truncf %637 : vector<1x32xf32> to vector<1x32xbf16>
    %c0_214 = arith.constant 0 : index
    %c0_215 = arith.constant 0 : index
    %642 = vector.load %arg15[%c0_214, %c0_215] : memref<32x32xbf16, #tpu.memory_space<vmem>>, vector<32x32xbf16>
    %cst_216 = arith.constant dense<0.000000e+00> : vector<1x32xf32>
    %643 = tpu.matmul %641, %642, %cst_216 {dimension_numbers = #tpu.dot_dimension_numbers<[1], [0], [0], [1], [0, 0, 1, 1], [], []>} : vector<1x32xbf16>, vector<32x32xbf16>, vector<1x32xf32> -> vector<1x32xf32>
    %644 = arith.addf %640, %643 : vector<1x32xf32>
    %c0_217 = arith.constant 0 : index
    %c0_218 = arith.constant 0 : index
    %645 = vector.load %arg16[%c0_217, %c0_218] : memref<1x32xf32, #tpu.memory_space<vmem>>, vector<1x32xf32>
    %646 = arith.addf %644, %645 : vector<1x32xf32>
    %647 = math.tanh %646 : vector<1x32xf32>
    %648 = arith.truncf %647 : vector<1x32xf32> to vector<1x32xbf16>
    %c0_219 = arith.constant 0 : index
    %c0_220 = arith.constant 0 : index
    %649 = vector.load %arg17[%c0_219, %c0_220] : memref<32x64xbf16, #tpu.memory_space<vmem>>, vector<32x64xbf16>
    %cst_221 = arith.constant dense<0.000000e+00> : vector<1x64xf32>
    %650 = tpu.matmul %648, %649, %cst_221 {dimension_numbers = #tpu.dot_dimension_numbers<[1], [0], [0], [1], [0, 0, 1, 1], [], []>} : vector<1x32xbf16>, vector<32x64xbf16>, vector<1x64xf32> -> vector<1x64xf32>
    %c0_222 = arith.constant 0 : index
    %c0_223 = arith.constant 0 : index
    %651 = vector.load %arg18[%c0_222, %c0_223] : memref<1x64xf32, #tpu.memory_space<vmem>>, vector<1x64xf32>
    %652 = arith.addf %650, %651 : vector<1x64xf32>
    %cst_224 = arith.constant dense<0xFF800000> : vector<1xf32>
    %653 = vector.multi_reduction <maximumf>, %652, %cst_224 [1] : vector<1x64xf32> to vector<1xf32>
    %654 = vector.shape_cast %653 : vector<1xf32> to vector<1x1xf32>
    %655 = vector.broadcast %654 : vector<1x1xf32> to vector<1x64xf32>
    %656 = arith.subf %652, %655 : vector<1x64xf32>
    %657 = math.exp %656 : vector<1x64xf32>
    %cst_225 = arith.constant dense<0.000000e+00> : vector<1xf32>
    %658 = vector.multi_reduction <add>, %657, %cst_225 [1] : vector<1x64xf32> to vector<1xf32>
    %659 = vector.shape_cast %658 : vector<1xf32> to vector<1x1xf32>
    %660 = tpu.reciprocal %659 {approx = true} : vector<1x1xf32> -> vector<1x1xf32>
    %661 = vector.extract %660[0, 0] : f32 from vector<1x1xf32>
    %662 = vector.broadcast %654 : vector<1x1xf32> to vector<1x64xf32>
    %663 = arith.cmpf oge, %652, %662 : vector<1x64xf32>
    %c64_i32 = arith.constant 64 : i32
    %664 = vector.broadcast %c64_i32 : i32 to vector<1x64xi32>
    %665 = arith.select %663, %586, %664 : vector<1x64xi1>, vector<1x64xi32>
    %cst_226 = arith.constant dense<2147483647> : vector<1xi32>
    %666 = vector.multi_reduction <minsi>, %665, %cst_226 [1] : vector<1x64xi32> to vector<1xi32>
    %667 = vector.shape_cast %666 : vector<1xi32> to vector<1x1xi32>
    %668 = vector.extract %667[0, 0] : i32 from vector<1x1xi32>
    %669 = arith.index_cast %c0_i32_190 : i32 to index
    %670 = memref.load %arg19[%669] : memref<5xi32, #tpu.memory_space<smem>>
    memref.store %668, %arg19[%669] : memref<5xi32, #tpu.memory_space<smem>>
    %671 = arith.index_cast %c0_i32_190 : i32 to index
    %672 = memref.load %arg20[%671] : memref<5xf32, #tpu.memory_space<smem>>
    memref.store %661, %arg20[%671] : memref<5xf32, #tpu.memory_space<smem>>
    %c1_i32_227 = arith.constant 1 : i32
    %673 = arith.index_cast %668 : i32 to index
    %c0_228 = arith.constant 0 : index
    %674 = vector.load %arg1[%673, %c0_228] : memref<64x32xf32, #tpu.memory_space<vmem>>, vector<1x32xf32>
    %675 = arith.truncf %674 : vector<1x32xf32> to vector<1x32xbf16>
    %c0_229 = arith.constant 0 : index
    %c0_230 = arith.constant 0 : index
    %676 = vector.load %arg10[%c0_229, %c0_230] : memref<32x96xbf16, #tpu.memory_space<vmem>>, vector<32x96xbf16>
    %cst_231 = arith.constant dense<0.000000e+00> : vector<1x96xf32>
    %677 = tpu.matmul %675, %676, %cst_231 {dimension_numbers = #tpu.dot_dimension_numbers<[1], [0], [0], [1], [0, 0, 1, 1], [], []>} : vector<1x32xbf16>, vector<32x96xbf16>, vector<1x96xf32> -> vector<1x96xf32>
    %c0_232 = arith.constant 0 : index
    %c0_233 = arith.constant 0 : index
    %678 = vector.load %arg12[%c0_232, %c0_233] : memref<1x96xf32, #tpu.memory_space<vmem>>, vector<1x96xf32>
    %679 = arith.addf %677, %678 : vector<1x96xf32>
    %680 = arith.truncf %624 : vector<1x32xf32> to vector<1x32xbf16>
    %c0_234 = arith.constant 0 : index
    %c0_235 = arith.constant 0 : index
    %681 = vector.load %arg11[%c0_234, %c0_235] : memref<32x96xbf16, #tpu.memory_space<vmem>>, vector<32x96xbf16>
    %cst_236 = arith.constant dense<0.000000e+00> : vector<1x96xf32>
    %682 = tpu.matmul %680, %681, %cst_236 {dimension_numbers = #tpu.dot_dimension_numbers<[1], [0], [0], [1], [0, 0, 1, 1], [], []>} : vector<1x32xbf16>, vector<32x96xbf16>, vector<1x96xf32> -> vector<1x96xf32>
    %c0_237 = arith.constant 0 : index
    %c0_238 = arith.constant 0 : index
    %683 = vector.load %arg13[%c0_237, %c0_238] : memref<1x96xf32, #tpu.memory_space<vmem>>, vector<1x96xf32>
    %684 = arith.addf %682, %683 : vector<1x96xf32>
    %685 = vector.extract_strided_slice %679 {offsets = [0, 0], sizes = [1, 32], strides = [1, 1]} : vector<1x96xf32> to vector<1x32xf32>
    %686 = vector.extract_strided_slice %684 {offsets = [0, 0], sizes = [1, 32], strides = [1, 1]} : vector<1x96xf32> to vector<1x32xf32>
    %687 = arith.addf %685, %686 : vector<1x32xf32>
    %688 = arith.negf %687 : vector<1x32xf32>
    %689 = math.exp %688 : vector<1x32xf32>
    %cst_239 = arith.constant 1.000000e+00 : f32
    %690 = vector.broadcast %cst_239 : f32 to vector<1x32xf32>
    %691 = arith.addf %690, %689 : vector<1x32xf32>
    %692 = arith.divf %690, %691 : vector<1x32xf32>
    %693 = vector.extract_strided_slice %679 {offsets = [0, 32], sizes = [1, 32], strides = [1, 1]} : vector<1x96xf32> to vector<1x32xf32>
    %694 = vector.extract_strided_slice %684 {offsets = [0, 32], sizes = [1, 32], strides = [1, 1]} : vector<1x96xf32> to vector<1x32xf32>
    %695 = arith.addf %693, %694 : vector<1x32xf32>
    %696 = arith.negf %695 : vector<1x32xf32>
    %697 = math.exp %696 : vector<1x32xf32>
    %cst_240 = arith.constant 1.000000e+00 : f32
    %698 = vector.broadcast %cst_240 : f32 to vector<1x32xf32>
    %699 = arith.addf %698, %697 : vector<1x32xf32>
    %700 = arith.divf %698, %699 : vector<1x32xf32>
    %701 = vector.extract_strided_slice %679 {offsets = [0, 64], sizes = [1, 32], strides = [1, 1]} : vector<1x96xf32> to vector<1x32xf32>
    %702 = vector.extract_strided_slice %684 {offsets = [0, 64], sizes = [1, 32], strides = [1, 1]} : vector<1x96xf32> to vector<1x32xf32>
    %703 = arith.mulf %692, %702 : vector<1x32xf32>
    %704 = arith.addf %701, %703 : vector<1x32xf32>
    %705 = math.tanh %704 : vector<1x32xf32>
    %cst_241 = arith.constant 1.000000e+00 : f32
    %706 = vector.broadcast %cst_241 : f32 to vector<1x32xf32>
    %707 = arith.subf %706, %700 : vector<1x32xf32>
    %708 = arith.mulf %707, %705 : vector<1x32xf32>
    %709 = arith.mulf %700, %624 : vector<1x32xf32>
    %710 = arith.addf %708, %709 : vector<1x32xf32>
    %c0_242 = arith.constant 0 : index
    %c0_243 = arith.constant 0 : index
    %711 = vector.load %arg23[%c0_242, %c0_243] : memref<8x32xf32, #tpu.memory_space<vmem>>, vector<8x32xf32>
    %cst_244 = arith.constant dense<0.000000e+00> : vector<1x8xf32>
    %712 = tpu.matmul %710, %711, %cst_244 {dimension_numbers = #tpu.dot_dimension_numbers<[1], [1], [0], [0], [0, 0, 1, 0], [], []>} : vector<1x32xf32>, vector<8x32xf32>, vector<1x8xf32> -> vector<1x8xf32>
    %cst_245 = arith.constant dense<0xFF800000> : vector<1xf32>
    %713 = vector.multi_reduction <maximumf>, %712, %cst_245 [1] : vector<1x8xf32> to vector<1xf32>
    %714 = vector.shape_cast %713 : vector<1xf32> to vector<1x1xf32>
    %715 = vector.broadcast %714 : vector<1x1xf32> to vector<1x8xf32>
    %716 = arith.subf %712, %715 : vector<1x8xf32>
    %717 = math.exp %716 : vector<1x8xf32>
    %cst_246 = arith.constant dense<0.000000e+00> : vector<1xf32>
    %718 = vector.multi_reduction <add>, %717, %cst_246 [1] : vector<1x8xf32> to vector<1xf32>
    %719 = vector.shape_cast %718 : vector<1xf32> to vector<1x1xf32>
    %720 = tpu.reciprocal %719 {approx = true} : vector<1x1xf32> -> vector<1x1xf32>
    %721 = vector.broadcast %720 : vector<1x1xf32> to vector<1x8xf32>
    %722 = arith.mulf %717, %721 : vector<1x8xf32>
    %cst_247 = arith.constant dense<0.000000e+00> : vector<1x32xf32>
    %723 = tpu.matmul %722, %711, %cst_247 {dimension_numbers = #tpu.dot_dimension_numbers<[1], [0], [0], [1], [0, 0, 1, 1], [], []>} : vector<1x8xf32>, vector<8x32xf32>, vector<1x32xf32> -> vector<1x32xf32>
    %724 = arith.truncf %710 : vector<1x32xf32> to vector<1x32xbf16>
    %c0_248 = arith.constant 0 : index
    %c0_249 = arith.constant 0 : index
    %725 = vector.load %arg14[%c0_248, %c0_249] : memref<32x32xbf16, #tpu.memory_space<vmem>>, vector<32x32xbf16>
    %cst_250 = arith.constant dense<0.000000e+00> : vector<1x32xf32>
    %726 = tpu.matmul %724, %725, %cst_250 {dimension_numbers = #tpu.dot_dimension_numbers<[1], [0], [0], [1], [0, 0, 1, 1], [], []>} : vector<1x32xbf16>, vector<32x32xbf16>, vector<1x32xf32> -> vector<1x32xf32>
    %727 = arith.truncf %723 : vector<1x32xf32> to vector<1x32xbf16>
    %c0_251 = arith.constant 0 : index
    %c0_252 = arith.constant 0 : index
    %728 = vector.load %arg15[%c0_251, %c0_252] : memref<32x32xbf16, #tpu.memory_space<vmem>>, vector<32x32xbf16>
    %cst_253 = arith.constant dense<0.000000e+00> : vector<1x32xf32>
    %729 = tpu.matmul %727, %728, %cst_253 {dimension_numbers = #tpu.dot_dimension_numbers<[1], [0], [0], [1], [0, 0, 1, 1], [], []>} : vector<1x32xbf16>, vector<32x32xbf16>, vector<1x32xf32> -> vector<1x32xf32>
    %730 = arith.addf %726, %729 : vector<1x32xf32>
    %c0_254 = arith.constant 0 : index
    %c0_255 = arith.constant 0 : index
    %731 = vector.load %arg16[%c0_254, %c0_255] : memref<1x32xf32, #tpu.memory_space<vmem>>, vector<1x32xf32>
    %732 = arith.addf %730, %731 : vector<1x32xf32>
    %733 = math.tanh %732 : vector<1x32xf32>
    %734 = arith.truncf %733 : vector<1x32xf32> to vector<1x32xbf16>
    %c0_256 = arith.constant 0 : index
    %c0_257 = arith.constant 0 : index
    %735 = vector.load %arg17[%c0_256, %c0_257] : memref<32x64xbf16, #tpu.memory_space<vmem>>, vector<32x64xbf16>
    %cst_258 = arith.constant dense<0.000000e+00> : vector<1x64xf32>
    %736 = tpu.matmul %734, %735, %cst_258 {dimension_numbers = #tpu.dot_dimension_numbers<[1], [0], [0], [1], [0, 0, 1, 1], [], []>} : vector<1x32xbf16>, vector<32x64xbf16>, vector<1x64xf32> -> vector<1x64xf32>
    %c0_259 = arith.constant 0 : index
    %c0_260 = arith.constant 0 : index
    %737 = vector.load %arg18[%c0_259, %c0_260] : memref<1x64xf32, #tpu.memory_space<vmem>>, vector<1x64xf32>
    %738 = arith.addf %736, %737 : vector<1x64xf32>
    %cst_261 = arith.constant dense<0xFF800000> : vector<1xf32>
    %739 = vector.multi_reduction <maximumf>, %738, %cst_261 [1] : vector<1x64xf32> to vector<1xf32>
    %740 = vector.shape_cast %739 : vector<1xf32> to vector<1x1xf32>
    %741 = vector.broadcast %740 : vector<1x1xf32> to vector<1x64xf32>
    %742 = arith.subf %738, %741 : vector<1x64xf32>
    %743 = math.exp %742 : vector<1x64xf32>
    %cst_262 = arith.constant dense<0.000000e+00> : vector<1xf32>
    %744 = vector.multi_reduction <add>, %743, %cst_262 [1] : vector<1x64xf32> to vector<1xf32>
    %745 = vector.shape_cast %744 : vector<1xf32> to vector<1x1xf32>
    %746 = tpu.reciprocal %745 {approx = true} : vector<1x1xf32> -> vector<1x1xf32>
    %747 = vector.extract %746[0, 0] : f32 from vector<1x1xf32>
    %748 = vector.broadcast %740 : vector<1x1xf32> to vector<1x64xf32>
    %749 = arith.cmpf oge, %738, %748 : vector<1x64xf32>
    %c64_i32_263 = arith.constant 64 : i32
    %750 = vector.broadcast %c64_i32_263 : i32 to vector<1x64xi32>
    %751 = arith.select %749, %586, %750 : vector<1x64xi1>, vector<1x64xi32>
    %cst_264 = arith.constant dense<2147483647> : vector<1xi32>
    %752 = vector.multi_reduction <minsi>, %751, %cst_264 [1] : vector<1x64xi32> to vector<1xi32>
    %753 = vector.shape_cast %752 : vector<1xi32> to vector<1x1xi32>
    %754 = vector.extract %753[0, 0] : i32 from vector<1x1xi32>
    %755 = arith.index_cast %c1_i32_227 : i32 to index
    %756 = memref.load %arg19[%755] : memref<5xi32, #tpu.memory_space<smem>>
    memref.store %754, %arg19[%755] : memref<5xi32, #tpu.memory_space<smem>>
    %757 = arith.index_cast %c1_i32_227 : i32 to index
    %758 = memref.load %arg20[%757] : memref<5xf32, #tpu.memory_space<smem>>
    memref.store %747, %arg20[%757] : memref<5xf32, #tpu.memory_space<smem>>
    %c2_i32_265 = arith.constant 2 : i32
    %759 = arith.index_cast %754 : i32 to index
    %c0_266 = arith.constant 0 : index
    %760 = vector.load %arg1[%759, %c0_266] : memref<64x32xf32, #tpu.memory_space<vmem>>, vector<1x32xf32>
    %761 = arith.truncf %760 : vector<1x32xf32> to vector<1x32xbf16>
    %c0_267 = arith.constant 0 : index
    %c0_268 = arith.constant 0 : index
    %762 = vector.load %arg10[%c0_267, %c0_268] : memref<32x96xbf16, #tpu.memory_space<vmem>>, vector<32x96xbf16>
    %cst_269 = arith.constant dense<0.000000e+00> : vector<1x96xf32>
    %763 = tpu.matmul %761, %762, %cst_269 {dimension_numbers = #tpu.dot_dimension_numbers<[1], [0], [0], [1], [0, 0, 1, 1], [], []>} : vector<1x32xbf16>, vector<32x96xbf16>, vector<1x96xf32> -> vector<1x96xf32>
    %c0_270 = arith.constant 0 : index
    %c0_271 = arith.constant 0 : index
    %764 = vector.load %arg12[%c0_270, %c0_271] : memref<1x96xf32, #tpu.memory_space<vmem>>, vector<1x96xf32>
    %765 = arith.addf %763, %764 : vector<1x96xf32>
    %766 = arith.truncf %710 : vector<1x32xf32> to vector<1x32xbf16>
    %c0_272 = arith.constant 0 : index
    %c0_273 = arith.constant 0 : index
    %767 = vector.load %arg11[%c0_272, %c0_273] : memref<32x96xbf16, #tpu.memory_space<vmem>>, vector<32x96xbf16>
    %cst_274 = arith.constant dense<0.000000e+00> : vector<1x96xf32>
    %768 = tpu.matmul %766, %767, %cst_274 {dimension_numbers = #tpu.dot_dimension_numbers<[1], [0], [0], [1], [0, 0, 1, 1], [], []>} : vector<1x32xbf16>, vector<32x96xbf16>, vector<1x96xf32> -> vector<1x96xf32>
    %c0_275 = arith.constant 0 : index
    %c0_276 = arith.constant 0 : index
    %769 = vector.load %arg13[%c0_275, %c0_276] : memref<1x96xf32, #tpu.memory_space<vmem>>, vector<1x96xf32>
    %770 = arith.addf %768, %769 : vector<1x96xf32>
    %771 = vector.extract_strided_slice %765 {offsets = [0, 0], sizes = [1, 32], strides = [1, 1]} : vector<1x96xf32> to vector<1x32xf32>
    %772 = vector.extract_strided_slice %770 {offsets = [0, 0], sizes = [1, 32], strides = [1, 1]} : vector<1x96xf32> to vector<1x32xf32>
    %773 = arith.addf %771, %772 : vector<1x32xf32>
    %774 = arith.negf %773 : vector<1x32xf32>
    %775 = math.exp %774 : vector<1x32xf32>
    %cst_277 = arith.constant 1.000000e+00 : f32
    %776 = vector.broadcast %cst_277 : f32 to vector<1x32xf32>
    %777 = arith.addf %776, %775 : vector<1x32xf32>
    %778 = arith.divf %776, %777 : vector<1x32xf32>
    %779 = vector.extract_strided_slice %765 {offsets = [0, 32], sizes = [1, 32], strides = [1, 1]} : vector<1x96xf32> to vector<1x32xf32>
    %780 = vector.extract_strided_slice %770 {offsets = [0, 32], sizes = [1, 32], strides = [1, 1]} : vector<1x96xf32> to vector<1x32xf32>
    %781 = arith.addf %779, %780 : vector<1x32xf32>
    %782 = arith.negf %781 : vector<1x32xf32>
    %783 = math.exp %782 : vector<1x32xf32>
    %cst_278 = arith.constant 1.000000e+00 : f32
    %784 = vector.broadcast %cst_278 : f32 to vector<1x32xf32>
    %785 = arith.addf %784, %783 : vector<1x32xf32>
    %786 = arith.divf %784, %785 : vector<1x32xf32>
    %787 = vector.extract_strided_slice %765 {offsets = [0, 64], sizes = [1, 32], strides = [1, 1]} : vector<1x96xf32> to vector<1x32xf32>
    %788 = vector.extract_strided_slice %770 {offsets = [0, 64], sizes = [1, 32], strides = [1, 1]} : vector<1x96xf32> to vector<1x32xf32>
    %789 = arith.mulf %778, %788 : vector<1x32xf32>
    %790 = arith.addf %787, %789 : vector<1x32xf32>
    %791 = math.tanh %790 : vector<1x32xf32>
    %cst_279 = arith.constant 1.000000e+00 : f32
    %792 = vector.broadcast %cst_279 : f32 to vector<1x32xf32>
    %793 = arith.subf %792, %786 : vector<1x32xf32>
    %794 = arith.mulf %793, %791 : vector<1x32xf32>
    %795 = arith.mulf %786, %710 : vector<1x32xf32>
    %796 = arith.addf %794, %795 : vector<1x32xf32>
    %c0_280 = arith.constant 0 : index
    %c0_281 = arith.constant 0 : index
    %797 = vector.load %arg23[%c0_280, %c0_281] : memref<8x32xf32, #tpu.memory_space<vmem>>, vector<8x32xf32>
    %cst_282 = arith.constant dense<0.000000e+00> : vector<1x8xf32>
    %798 = tpu.matmul %796, %797, %cst_282 {dimension_numbers = #tpu.dot_dimension_numbers<[1], [1], [0], [0], [0, 0, 1, 0], [], []>} : vector<1x32xf32>, vector<8x32xf32>, vector<1x8xf32> -> vector<1x8xf32>
    %cst_283 = arith.constant dense<0xFF800000> : vector<1xf32>
    %799 = vector.multi_reduction <maximumf>, %798, %cst_283 [1] : vector<1x8xf32> to vector<1xf32>
    %800 = vector.shape_cast %799 : vector<1xf32> to vector<1x1xf32>
    %801 = vector.broadcast %800 : vector<1x1xf32> to vector<1x8xf32>
    %802 = arith.subf %798, %801 : vector<1x8xf32>
    %803 = math.exp %802 : vector<1x8xf32>
    %cst_284 = arith.constant dense<0.000000e+00> : vector<1xf32>
    %804 = vector.multi_reduction <add>, %803, %cst_284 [1] : vector<1x8xf32> to vector<1xf32>
    %805 = vector.shape_cast %804 : vector<1xf32> to vector<1x1xf32>
    %806 = tpu.reciprocal %805 {approx = true} : vector<1x1xf32> -> vector<1x1xf32>
    %807 = vector.broadcast %806 : vector<1x1xf32> to vector<1x8xf32>
    %808 = arith.mulf %803, %807 : vector<1x8xf32>
    %cst_285 = arith.constant dense<0.000000e+00> : vector<1x32xf32>
    %809 = tpu.matmul %808, %797, %cst_285 {dimension_numbers = #tpu.dot_dimension_numbers<[1], [0], [0], [1], [0, 0, 1, 1], [], []>} : vector<1x8xf32>, vector<8x32xf32>, vector<1x32xf32> -> vector<1x32xf32>
    %810 = arith.truncf %796 : vector<1x32xf32> to vector<1x32xbf16>
    %c0_286 = arith.constant 0 : index
    %c0_287 = arith.constant 0 : index
    %811 = vector.load %arg14[%c0_286, %c0_287] : memref<32x32xbf16, #tpu.memory_space<vmem>>, vector<32x32xbf16>
    %cst_288 = arith.constant dense<0.000000e+00> : vector<1x32xf32>
    %812 = tpu.matmul %810, %811, %cst_288 {dimension_numbers = #tpu.dot_dimension_numbers<[1], [0], [0], [1], [0, 0, 1, 1], [], []>} : vector<1x32xbf16>, vector<32x32xbf16>, vector<1x32xf32> -> vector<1x32xf32>
    %813 = arith.truncf %809 : vector<1x32xf32> to vector<1x32xbf16>
    %c0_289 = arith.constant 0 : index
    %c0_290 = arith.constant 0 : index
    %814 = vector.load %arg15[%c0_289, %c0_290] : memref<32x32xbf16, #tpu.memory_space<vmem>>, vector<32x32xbf16>
    %cst_291 = arith.constant dense<0.000000e+00> : vector<1x32xf32>
    %815 = tpu.matmul %813, %814, %cst_291 {dimension_numbers = #tpu.dot_dimension_numbers<[1], [0], [0], [1], [0, 0, 1, 1], [], []>} : vector<1x32xbf16>, vector<32x32xbf16>, vector<1x32xf32> -> vector<1x32xf32>
    %816 = arith.addf %812, %815 : vector<1x32xf32>
    %c0_292 = arith.constant 0 : index
    %c0_293 = arith.constant 0 : index
    %817 = vector.load %arg16[%c0_292, %c0_293] : memref<1x32xf32, #tpu.memory_space<vmem>>, vector<1x32xf32>
    %818 = arith.addf %816, %817 : vector<1x32xf32>
    %819 = math.tanh %818 : vector<1x32xf32>
    %820 = arith.truncf %819 : vector<1x32xf32> to vector<1x32xbf16>
    %c0_294 = arith.constant 0 : index
    %c0_295 = arith.constant 0 : index
    %821 = vector.load %arg17[%c0_294, %c0_295] : memref<32x64xbf16, #tpu.memory_space<vmem>>, vector<32x64xbf16>
    %cst_296 = arith.constant dense<0.000000e+00> : vector<1x64xf32>
    %822 = tpu.matmul %820, %821, %cst_296 {dimension_numbers = #tpu.dot_dimension_numbers<[1], [0], [0], [1], [0, 0, 1, 1], [], []>} : vector<1x32xbf16>, vector<32x64xbf16>, vector<1x64xf32> -> vector<1x64xf32>
    %c0_297 = arith.constant 0 : index
    %c0_298 = arith.constant 0 : index
    %823 = vector.load %arg18[%c0_297, %c0_298] : memref<1x64xf32, #tpu.memory_space<vmem>>, vector<1x64xf32>
    %824 = arith.addf %822, %823 : vector<1x64xf32>
    %cst_299 = arith.constant dense<0xFF800000> : vector<1xf32>
    %825 = vector.multi_reduction <maximumf>, %824, %cst_299 [1] : vector<1x64xf32> to vector<1xf32>
    %826 = vector.shape_cast %825 : vector<1xf32> to vector<1x1xf32>
    %827 = vector.broadcast %826 : vector<1x1xf32> to vector<1x64xf32>
    %828 = arith.subf %824, %827 : vector<1x64xf32>
    %829 = math.exp %828 : vector<1x64xf32>
    %cst_300 = arith.constant dense<0.000000e+00> : vector<1xf32>
    %830 = vector.multi_reduction <add>, %829, %cst_300 [1] : vector<1x64xf32> to vector<1xf32>
    %831 = vector.shape_cast %830 : vector<1xf32> to vector<1x1xf32>
    %832 = tpu.reciprocal %831 {approx = true} : vector<1x1xf32> -> vector<1x1xf32>
    %833 = vector.extract %832[0, 0] : f32 from vector<1x1xf32>
    %834 = vector.broadcast %826 : vector<1x1xf32> to vector<1x64xf32>
    %835 = arith.cmpf oge, %824, %834 : vector<1x64xf32>
    %c64_i32_301 = arith.constant 64 : i32
    %836 = vector.broadcast %c64_i32_301 : i32 to vector<1x64xi32>
    %837 = arith.select %835, %586, %836 : vector<1x64xi1>, vector<1x64xi32>
    %cst_302 = arith.constant dense<2147483647> : vector<1xi32>
    %838 = vector.multi_reduction <minsi>, %837, %cst_302 [1] : vector<1x64xi32> to vector<1xi32>
    %839 = vector.shape_cast %838 : vector<1xi32> to vector<1x1xi32>
    %840 = vector.extract %839[0, 0] : i32 from vector<1x1xi32>
    %841 = arith.index_cast %c2_i32_265 : i32 to index
    %842 = memref.load %arg19[%841] : memref<5xi32, #tpu.memory_space<smem>>
    memref.store %840, %arg19[%841] : memref<5xi32, #tpu.memory_space<smem>>
    %843 = arith.index_cast %c2_i32_265 : i32 to index
    %844 = memref.load %arg20[%843] : memref<5xf32, #tpu.memory_space<smem>>
    memref.store %833, %arg20[%843] : memref<5xf32, #tpu.memory_space<smem>>
    %c3_i32_303 = arith.constant 3 : i32
    %845 = arith.index_cast %840 : i32 to index
    %c0_304 = arith.constant 0 : index
    %846 = vector.load %arg1[%845, %c0_304] : memref<64x32xf32, #tpu.memory_space<vmem>>, vector<1x32xf32>
    %847 = arith.truncf %846 : vector<1x32xf32> to vector<1x32xbf16>
    %c0_305 = arith.constant 0 : index
    %c0_306 = arith.constant 0 : index
    %848 = vector.load %arg10[%c0_305, %c0_306] : memref<32x96xbf16, #tpu.memory_space<vmem>>, vector<32x96xbf16>
    %cst_307 = arith.constant dense<0.000000e+00> : vector<1x96xf32>
    %849 = tpu.matmul %847, %848, %cst_307 {dimension_numbers = #tpu.dot_dimension_numbers<[1], [0], [0], [1], [0, 0, 1, 1], [], []>} : vector<1x32xbf16>, vector<32x96xbf16>, vector<1x96xf32> -> vector<1x96xf32>
    %c0_308 = arith.constant 0 : index
    %c0_309 = arith.constant 0 : index
    %850 = vector.load %arg12[%c0_308, %c0_309] : memref<1x96xf32, #tpu.memory_space<vmem>>, vector<1x96xf32>
    %851 = arith.addf %849, %850 : vector<1x96xf32>
    %852 = arith.truncf %796 : vector<1x32xf32> to vector<1x32xbf16>
    %c0_310 = arith.constant 0 : index
    %c0_311 = arith.constant 0 : index
    %853 = vector.load %arg11[%c0_310, %c0_311] : memref<32x96xbf16, #tpu.memory_space<vmem>>, vector<32x96xbf16>
    %cst_312 = arith.constant dense<0.000000e+00> : vector<1x96xf32>
    %854 = tpu.matmul %852, %853, %cst_312 {dimension_numbers = #tpu.dot_dimension_numbers<[1], [0], [0], [1], [0, 0, 1, 1], [], []>} : vector<1x32xbf16>, vector<32x96xbf16>, vector<1x96xf32> -> vector<1x96xf32>
    %c0_313 = arith.constant 0 : index
    %c0_314 = arith.constant 0 : index
    %855 = vector.load %arg13[%c0_313, %c0_314] : memref<1x96xf32, #tpu.memory_space<vmem>>, vector<1x96xf32>
    %856 = arith.addf %854, %855 : vector<1x96xf32>
    %857 = vector.extract_strided_slice %851 {offsets = [0, 0], sizes = [1, 32], strides = [1, 1]} : vector<1x96xf32> to vector<1x32xf32>
    %858 = vector.extract_strided_slice %856 {offsets = [0, 0], sizes = [1, 32], strides = [1, 1]} : vector<1x96xf32> to vector<1x32xf32>
    %859 = arith.addf %857, %858 : vector<1x32xf32>
    %860 = arith.negf %859 : vector<1x32xf32>
    %861 = math.exp %860 : vector<1x32xf32>
    %cst_315 = arith.constant 1.000000e+00 : f32
    %862 = vector.broadcast %cst_315 : f32 to vector<1x32xf32>
    %863 = arith.addf %862, %861 : vector<1x32xf32>
    %864 = arith.divf %862, %863 : vector<1x32xf32>
    %865 = vector.extract_strided_slice %851 {offsets = [0, 32], sizes = [1, 32], strides = [1, 1]} : vector<1x96xf32> to vector<1x32xf32>
    %866 = vector.extract_strided_slice %856 {offsets = [0, 32], sizes = [1, 32], strides = [1, 1]} : vector<1x96xf32> to vector<1x32xf32>
    %867 = arith.addf %865, %866 : vector<1x32xf32>
    %868 = arith.negf %867 : vector<1x32xf32>
    %869 = math.exp %868 : vector<1x32xf32>
    %cst_316 = arith.constant 1.000000e+00 : f32
    %870 = vector.broadcast %cst_316 : f32 to vector<1x32xf32>
    %871 = arith.addf %870, %869 : vector<1x32xf32>
    %872 = arith.divf %870, %871 : vector<1x32xf32>
    %873 = vector.extract_strided_slice %851 {offsets = [0, 64], sizes = [1, 32], strides = [1, 1]} : vector<1x96xf32> to vector<1x32xf32>
    %874 = vector.extract_strided_slice %856 {offsets = [0, 64], sizes = [1, 32], strides = [1, 1]} : vector<1x96xf32> to vector<1x32xf32>
    %875 = arith.mulf %864, %874 : vector<1x32xf32>
    %876 = arith.addf %873, %875 : vector<1x32xf32>
    %877 = math.tanh %876 : vector<1x32xf32>
    %cst_317 = arith.constant 1.000000e+00 : f32
    %878 = vector.broadcast %cst_317 : f32 to vector<1x32xf32>
    %879 = arith.subf %878, %872 : vector<1x32xf32>
    %880 = arith.mulf %879, %877 : vector<1x32xf32>
    %881 = arith.mulf %872, %796 : vector<1x32xf32>
    %882 = arith.addf %880, %881 : vector<1x32xf32>
    %c0_318 = arith.constant 0 : index
    %c0_319 = arith.constant 0 : index
    %883 = vector.load %arg23[%c0_318, %c0_319] : memref<8x32xf32, #tpu.memory_space<vmem>>, vector<8x32xf32>
    %cst_320 = arith.constant dense<0.000000e+00> : vector<1x8xf32>
    %884 = tpu.matmul %882, %883, %cst_320 {dimension_numbers = #tpu.dot_dimension_numbers<[1], [1], [0], [0], [0, 0, 1, 0], [], []>} : vector<1x32xf32>, vector<8x32xf32>, vector<1x8xf32> -> vector<1x8xf32>
    %cst_321 = arith.constant dense<0xFF800000> : vector<1xf32>
    %885 = vector.multi_reduction <maximumf>, %884, %cst_321 [1] : vector<1x8xf32> to vector<1xf32>
    %886 = vector.shape_cast %885 : vector<1xf32> to vector<1x1xf32>
    %887 = vector.broadcast %886 : vector<1x1xf32> to vector<1x8xf32>
    %888 = arith.subf %884, %887 : vector<1x8xf32>
    %889 = math.exp %888 : vector<1x8xf32>
    %cst_322 = arith.constant dense<0.000000e+00> : vector<1xf32>
    %890 = vector.multi_reduction <add>, %889, %cst_322 [1] : vector<1x8xf32> to vector<1xf32>
    %891 = vector.shape_cast %890 : vector<1xf32> to vector<1x1xf32>
    %892 = tpu.reciprocal %891 {approx = true} : vector<1x1xf32> -> vector<1x1xf32>
    %893 = vector.broadcast %892 : vector<1x1xf32> to vector<1x8xf32>
    %894 = arith.mulf %889, %893 : vector<1x8xf32>
    %cst_323 = arith.constant dense<0.000000e+00> : vector<1x32xf32>
    %895 = tpu.matmul %894, %883, %cst_323 {dimension_numbers = #tpu.dot_dimension_numbers<[1], [0], [0], [1], [0, 0, 1, 1], [], []>} : vector<1x8xf32>, vector<8x32xf32>, vector<1x32xf32> -> vector<1x32xf32>
    %896 = arith.truncf %882 : vector<1x32xf32> to vector<1x32xbf16>
    %c0_324 = arith.constant 0 : index
    %c0_325 = arith.constant 0 : index
    %897 = vector.load %arg14[%c0_324, %c0_325] : memref<32x32xbf16, #tpu.memory_space<vmem>>, vector<32x32xbf16>
    %cst_326 = arith.constant dense<0.000000e+00> : vector<1x32xf32>
    %898 = tpu.matmul %896, %897, %cst_326 {dimension_numbers = #tpu.dot_dimension_numbers<[1], [0], [0], [1], [0, 0, 1, 1], [], []>} : vector<1x32xbf16>, vector<32x32xbf16>, vector<1x32xf32> -> vector<1x32xf32>
    %899 = arith.truncf %895 : vector<1x32xf32> to vector<1x32xbf16>
    %c0_327 = arith.constant 0 : index
    %c0_328 = arith.constant 0 : index
    %900 = vector.load %arg15[%c0_327, %c0_328] : memref<32x32xbf16, #tpu.memory_space<vmem>>, vector<32x32xbf16>
    %cst_329 = arith.constant dense<0.000000e+00> : vector<1x32xf32>
    %901 = tpu.matmul %899, %900, %cst_329 {dimension_numbers = #tpu.dot_dimension_numbers<[1], [0], [0], [1], [0, 0, 1, 1], [], []>} : vector<1x32xbf16>, vector<32x32xbf16>, vector<1x32xf32> -> vector<1x32xf32>
    %902 = arith.addf %898, %901 : vector<1x32xf32>
    %c0_330 = arith.constant 0 : index
    %c0_331 = arith.constant 0 : index
    %903 = vector.load %arg16[%c0_330, %c0_331] : memref<1x32xf32, #tpu.memory_space<vmem>>, vector<1x32xf32>
    %904 = arith.addf %902, %903 : vector<1x32xf32>
    %905 = math.tanh %904 : vector<1x32xf32>
    %906 = arith.truncf %905 : vector<1x32xf32> to vector<1x32xbf16>
    %c0_332 = arith.constant 0 : index
    %c0_333 = arith.constant 0 : index
    %907 = vector.load %arg17[%c0_332, %c0_333] : memref<32x64xbf16, #tpu.memory_space<vmem>>, vector<32x64xbf16>
    %cst_334 = arith.constant dense<0.000000e+00> : vector<1x64xf32>
    %908 = tpu.matmul %906, %907, %cst_334 {dimension_numbers = #tpu.dot_dimension_numbers<[1], [0], [0], [1], [0, 0, 1, 1], [], []>} : vector<1x32xbf16>, vector<32x64xbf16>, vector<1x64xf32> -> vector<1x64xf32>
    %c0_335 = arith.constant 0 : index
    %c0_336 = arith.constant 0 : index
    %909 = vector.load %arg18[%c0_335, %c0_336] : memref<1x64xf32, #tpu.memory_space<vmem>>, vector<1x64xf32>
    %910 = arith.addf %908, %909 : vector<1x64xf32>
    %cst_337 = arith.constant dense<0xFF800000> : vector<1xf32>
    %911 = vector.multi_reduction <maximumf>, %910, %cst_337 [1] : vector<1x64xf32> to vector<1xf32>
    %912 = vector.shape_cast %911 : vector<1xf32> to vector<1x1xf32>
    %913 = vector.broadcast %912 : vector<1x1xf32> to vector<1x64xf32>
    %914 = arith.subf %910, %913 : vector<1x64xf32>
    %915 = math.exp %914 : vector<1x64xf32>
    %cst_338 = arith.constant dense<0.000000e+00> : vector<1xf32>
    %916 = vector.multi_reduction <add>, %915, %cst_338 [1] : vector<1x64xf32> to vector<1xf32>
    %917 = vector.shape_cast %916 : vector<1xf32> to vector<1x1xf32>
    %918 = tpu.reciprocal %917 {approx = true} : vector<1x1xf32> -> vector<1x1xf32>
    %919 = vector.extract %918[0, 0] : f32 from vector<1x1xf32>
    %920 = vector.broadcast %912 : vector<1x1xf32> to vector<1x64xf32>
    %921 = arith.cmpf oge, %910, %920 : vector<1x64xf32>
    %c64_i32_339 = arith.constant 64 : i32
    %922 = vector.broadcast %c64_i32_339 : i32 to vector<1x64xi32>
    %923 = arith.select %921, %586, %922 : vector<1x64xi1>, vector<1x64xi32>
    %cst_340 = arith.constant dense<2147483647> : vector<1xi32>
    %924 = vector.multi_reduction <minsi>, %923, %cst_340 [1] : vector<1x64xi32> to vector<1xi32>
    %925 = vector.shape_cast %924 : vector<1xi32> to vector<1x1xi32>
    %926 = vector.extract %925[0, 0] : i32 from vector<1x1xi32>
    %927 = arith.index_cast %c3_i32_303 : i32 to index
    %928 = memref.load %arg19[%927] : memref<5xi32, #tpu.memory_space<smem>>
    memref.store %926, %arg19[%927] : memref<5xi32, #tpu.memory_space<smem>>
    %929 = arith.index_cast %c3_i32_303 : i32 to index
    %930 = memref.load %arg20[%929] : memref<5xf32, #tpu.memory_space<smem>>
    memref.store %919, %arg20[%929] : memref<5xf32, #tpu.memory_space<smem>>
    %c4_i32_341 = arith.constant 4 : i32
    %931 = arith.index_cast %926 : i32 to index
    %c0_342 = arith.constant 0 : index
    %932 = vector.load %arg1[%931, %c0_342] : memref<64x32xf32, #tpu.memory_space<vmem>>, vector<1x32xf32>
    %933 = arith.truncf %932 : vector<1x32xf32> to vector<1x32xbf16>
    %c0_343 = arith.constant 0 : index
    %c0_344 = arith.constant 0 : index
    %934 = vector.load %arg10[%c0_343, %c0_344] : memref<32x96xbf16, #tpu.memory_space<vmem>>, vector<32x96xbf16>
    %cst_345 = arith.constant dense<0.000000e+00> : vector<1x96xf32>
    %935 = tpu.matmul %933, %934, %cst_345 {dimension_numbers = #tpu.dot_dimension_numbers<[1], [0], [0], [1], [0, 0, 1, 1], [], []>} : vector<1x32xbf16>, vector<32x96xbf16>, vector<1x96xf32> -> vector<1x96xf32>
    %c0_346 = arith.constant 0 : index
    %c0_347 = arith.constant 0 : index
    %936 = vector.load %arg12[%c0_346, %c0_347] : memref<1x96xf32, #tpu.memory_space<vmem>>, vector<1x96xf32>
    %937 = arith.addf %935, %936 : vector<1x96xf32>
    %938 = arith.truncf %882 : vector<1x32xf32> to vector<1x32xbf16>
    %c0_348 = arith.constant 0 : index
    %c0_349 = arith.constant 0 : index
    %939 = vector.load %arg11[%c0_348, %c0_349] : memref<32x96xbf16, #tpu.memory_space<vmem>>, vector<32x96xbf16>
    %cst_350 = arith.constant dense<0.000000e+00> : vector<1x96xf32>
    %940 = tpu.matmul %938, %939, %cst_350 {dimension_numbers = #tpu.dot_dimension_numbers<[1], [0], [0], [1], [0, 0, 1, 1], [], []>} : vector<1x32xbf16>, vector<32x96xbf16>, vector<1x96xf32> -> vector<1x96xf32>
    %c0_351 = arith.constant 0 : index
    %c0_352 = arith.constant 0 : index
    %941 = vector.load %arg13[%c0_351, %c0_352] : memref<1x96xf32, #tpu.memory_space<vmem>>, vector<1x96xf32>
    %942 = arith.addf %940, %941 : vector<1x96xf32>
    %943 = vector.extract_strided_slice %937 {offsets = [0, 0], sizes = [1, 32], strides = [1, 1]} : vector<1x96xf32> to vector<1x32xf32>
    %944 = vector.extract_strided_slice %942 {offsets = [0, 0], sizes = [1, 32], strides = [1, 1]} : vector<1x96xf32> to vector<1x32xf32>
    %945 = arith.addf %943, %944 : vector<1x32xf32>
    %946 = arith.negf %945 : vector<1x32xf32>
    %947 = math.exp %946 : vector<1x32xf32>
    %cst_353 = arith.constant 1.000000e+00 : f32
    %948 = vector.broadcast %cst_353 : f32 to vector<1x32xf32>
    %949 = arith.addf %948, %947 : vector<1x32xf32>
    %950 = arith.divf %948, %949 : vector<1x32xf32>
    %951 = vector.extract_strided_slice %937 {offsets = [0, 32], sizes = [1, 32], strides = [1, 1]} : vector<1x96xf32> to vector<1x32xf32>
    %952 = vector.extract_strided_slice %942 {offsets = [0, 32], sizes = [1, 32], strides = [1, 1]} : vector<1x96xf32> to vector<1x32xf32>
    %953 = arith.addf %951, %952 : vector<1x32xf32>
    %954 = arith.negf %953 : vector<1x32xf32>
    %955 = math.exp %954 : vector<1x32xf32>
    %cst_354 = arith.constant 1.000000e+00 : f32
    %956 = vector.broadcast %cst_354 : f32 to vector<1x32xf32>
    %957 = arith.addf %956, %955 : vector<1x32xf32>
    %958 = arith.divf %956, %957 : vector<1x32xf32>
    %959 = vector.extract_strided_slice %937 {offsets = [0, 64], sizes = [1, 32], strides = [1, 1]} : vector<1x96xf32> to vector<1x32xf32>
    %960 = vector.extract_strided_slice %942 {offsets = [0, 64], sizes = [1, 32], strides = [1, 1]} : vector<1x96xf32> to vector<1x32xf32>
    %961 = arith.mulf %950, %960 : vector<1x32xf32>
    %962 = arith.addf %959, %961 : vector<1x32xf32>
    %963 = math.tanh %962 : vector<1x32xf32>
    %cst_355 = arith.constant 1.000000e+00 : f32
    %964 = vector.broadcast %cst_355 : f32 to vector<1x32xf32>
    %965 = arith.subf %964, %958 : vector<1x32xf32>
    %966 = arith.mulf %965, %963 : vector<1x32xf32>
    %967 = arith.mulf %958, %882 : vector<1x32xf32>
    %968 = arith.addf %966, %967 : vector<1x32xf32>
    %c0_356 = arith.constant 0 : index
    %c0_357 = arith.constant 0 : index
    %969 = vector.load %arg23[%c0_356, %c0_357] : memref<8x32xf32, #tpu.memory_space<vmem>>, vector<8x32xf32>
    %cst_358 = arith.constant dense<0.000000e+00> : vector<1x8xf32>
    %970 = tpu.matmul %968, %969, %cst_358 {dimension_numbers = #tpu.dot_dimension_numbers<[1], [1], [0], [0], [0, 0, 1, 0], [], []>} : vector<1x32xf32>, vector<8x32xf32>, vector<1x8xf32> -> vector<1x8xf32>
    %cst_359 = arith.constant dense<0xFF800000> : vector<1xf32>
    %971 = vector.multi_reduction <maximumf>, %970, %cst_359 [1] : vector<1x8xf32> to vector<1xf32>
    %972 = vector.shape_cast %971 : vector<1xf32> to vector<1x1xf32>
    %973 = vector.broadcast %972 : vector<1x1xf32> to vector<1x8xf32>
    %974 = arith.subf %970, %973 : vector<1x8xf32>
    %975 = math.exp %974 : vector<1x8xf32>
    %cst_360 = arith.constant dense<0.000000e+00> : vector<1xf32>
    %976 = vector.multi_reduction <add>, %975, %cst_360 [1] : vector<1x8xf32> to vector<1xf32>
    %977 = vector.shape_cast %976 : vector<1xf32> to vector<1x1xf32>
    %978 = tpu.reciprocal %977 {approx = true} : vector<1x1xf32> -> vector<1x1xf32>
    %979 = vector.broadcast %978 : vector<1x1xf32> to vector<1x8xf32>
    %980 = arith.mulf %975, %979 : vector<1x8xf32>
    %cst_361 = arith.constant dense<0.000000e+00> : vector<1x32xf32>
    %981 = tpu.matmul %980, %969, %cst_361 {dimension_numbers = #tpu.dot_dimension_numbers<[1], [0], [0], [1], [0, 0, 1, 1], [], []>} : vector<1x8xf32>, vector<8x32xf32>, vector<1x32xf32> -> vector<1x32xf32>
    %982 = arith.truncf %968 : vector<1x32xf32> to vector<1x32xbf16>
    %c0_362 = arith.constant 0 : index
    %c0_363 = arith.constant 0 : index
    %983 = vector.load %arg14[%c0_362, %c0_363] : memref<32x32xbf16, #tpu.memory_space<vmem>>, vector<32x32xbf16>
    %cst_364 = arith.constant dense<0.000000e+00> : vector<1x32xf32>
    %984 = tpu.matmul %982, %983, %cst_364 {dimension_numbers = #tpu.dot_dimension_numbers<[1], [0], [0], [1], [0, 0, 1, 1], [], []>} : vector<1x32xbf16>, vector<32x32xbf16>, vector<1x32xf32> -> vector<1x32xf32>
    %985 = arith.truncf %981 : vector<1x32xf32> to vector<1x32xbf16>
    %c0_365 = arith.constant 0 : index
    %c0_366 = arith.constant 0 : index
    %986 = vector.load %arg15[%c0_365, %c0_366] : memref<32x32xbf16, #tpu.memory_space<vmem>>, vector<32x32xbf16>
    %cst_367 = arith.constant dense<0.000000e+00> : vector<1x32xf32>
    %987 = tpu.matmul %985, %986, %cst_367 {dimension_numbers = #tpu.dot_dimension_numbers<[1], [0], [0], [1], [0, 0, 1, 1], [], []>} : vector<1x32xbf16>, vector<32x32xbf16>, vector<1x32xf32> -> vector<1x32xf32>
    %988 = arith.addf %984, %987 : vector<1x32xf32>
    %c0_368 = arith.constant 0 : index
    %c0_369 = arith.constant 0 : index
    %989 = vector.load %arg16[%c0_368, %c0_369] : memref<1x32xf32, #tpu.memory_space<vmem>>, vector<1x32xf32>
    %990 = arith.addf %988, %989 : vector<1x32xf32>
    %991 = math.tanh %990 : vector<1x32xf32>
    %992 = arith.truncf %991 : vector<1x32xf32> to vector<1x32xbf16>
    %c0_370 = arith.constant 0 : index
    %c0_371 = arith.constant 0 : index
    %993 = vector.load %arg17[%c0_370, %c0_371] : memref<32x64xbf16, #tpu.memory_space<vmem>>, vector<32x64xbf16>
    %cst_372 = arith.constant dense<0.000000e+00> : vector<1x64xf32>
    %994 = tpu.matmul %992, %993, %cst_372 {dimension_numbers = #tpu.dot_dimension_numbers<[1], [0], [0], [1], [0, 0, 1, 1], [], []>} : vector<1x32xbf16>, vector<32x64xbf16>, vector<1x64xf32> -> vector<1x64xf32>
    %c0_373 = arith.constant 0 : index
    %c0_374 = arith.constant 0 : index
    %995 = vector.load %arg18[%c0_373, %c0_374] : memref<1x64xf32, #tpu.memory_space<vmem>>, vector<1x64xf32>
    %996 = arith.addf %994, %995 : vector<1x64xf32>
    %cst_375 = arith.constant dense<0xFF800000> : vector<1xf32>
    %997 = vector.multi_reduction <maximumf>, %996, %cst_375 [1] : vector<1x64xf32> to vector<1xf32>
    %998 = vector.shape_cast %997 : vector<1xf32> to vector<1x1xf32>
    %999 = vector.broadcast %998 : vector<1x1xf32> to vector<1x64xf32>
    %1000 = arith.subf %996, %999 : vector<1x64xf32>
    %1001 = math.exp %1000 : vector<1x64xf32>
    %cst_376 = arith.constant dense<0.000000e+00> : vector<1xf32>
    %1002 = vector.multi_reduction <add>, %1001, %cst_376 [1] : vector<1x64xf32> to vector<1xf32>
    %1003 = vector.shape_cast %1002 : vector<1xf32> to vector<1x1xf32>
    %1004 = tpu.reciprocal %1003 {approx = true} : vector<1x1xf32> -> vector<1x1xf32>
    %1005 = vector.extract %1004[0, 0] : f32 from vector<1x1xf32>
    %1006 = vector.broadcast %998 : vector<1x1xf32> to vector<1x64xf32>
    %1007 = arith.cmpf oge, %996, %1006 : vector<1x64xf32>
    %c64_i32_377 = arith.constant 64 : i32
    %1008 = vector.broadcast %c64_i32_377 : i32 to vector<1x64xi32>
    %1009 = arith.select %1007, %586, %1008 : vector<1x64xi1>, vector<1x64xi32>
    %cst_378 = arith.constant dense<2147483647> : vector<1xi32>
    %1010 = vector.multi_reduction <minsi>, %1009, %cst_378 [1] : vector<1x64xi32> to vector<1xi32>
    %1011 = vector.shape_cast %1010 : vector<1xi32> to vector<1x1xi32>
    %1012 = vector.extract %1011[0, 0] : i32 from vector<1x1xi32>
    %1013 = arith.index_cast %c4_i32_341 : i32 to index
    %1014 = memref.load %arg19[%1013] : memref<5xi32, #tpu.memory_space<smem>>
    memref.store %1012, %arg19[%1013] : memref<5xi32, #tpu.memory_space<smem>>
    %1015 = arith.index_cast %c4_i32_341 : i32 to index
    %1016 = memref.load %arg20[%1015] : memref<5xf32, #tpu.memory_space<smem>>
    memref.store %1005, %arg20[%1015] : memref<5xf32, #tpu.memory_space<smem>>
    %c5_i32_379 = arith.constant 5 : i32
    return
  }
}

</mosaic_0001>

<bundles_post_ra>
// kernel: tpu_custom_call.1
= control target key start
LH: loop header
LB: loop body
LE: loop exit
PB: predicated region body
PF: predicated region fallthrough
CT: control target
= control target key end

     0   :  { %s6717_s0 = inlined_call_operand.hbm [shape: bf16[8,32], index: 0, kind: input, shape index: {}]   ;;  %s6718_s1 = inlined_call_operand.vmem [shape: f32[64,32], index: 1, kind: input, shape index: {}]   ;;  %s6719_s2 = inlined_call_operand.vmem [shape: bf16[32,96], index: 2, kind: input, shape index: {}]   ;;  %s6720_s3 = inlined_call_operand.vmem [shape: bf16[32,96], index: 3, kind: input, shape index: {}]   ;;  %s6721_s4 = inlined_call_operand.vmem [shape: f32[1,96], index: 4, kind: input, shape index: {}]   ;;  %s6722_s5 = inlined_call_operand.hbm [shape: f32[1,96], index: 5, kind: input, shape index: {}]   ;;  %s6723_s6 = inlined_call_operand.vmem [shape: bf16[32,96], index: 6, kind: input, shape index: {}]   ;;  %s6724_s7 = inlined_call_operand.vmem [shape: bf16[32,96], index: 7, kind: input, shape index: {}]   ;;  %s6725_s8 = inlined_call_operand.hbm [shape: f32[1,96], index: 8, kind: input, shape index: {}]   ;;  %s6726_s9 = inlined_call_operand.hbm [shape: f32[1,96], index: 9, kind: input, shape index: {}]   ;;  %s6727_s10 = inlined_call_operand.vmem [shape: bf16[32,96], index: 10, kind: input, shape index: {}]   ;;  %s6728_s11 = inlined_call_operand.vmem [shape: bf16[32,96], index: 11, kind: input, shape index: {}]   ;;  %s6729_s12 = inlined_call_operand.hbm [shape: f32[1,96], index: 12, kind: input, shape index: {}]   ;;  %s6730_s13 = inlined_call_operand.hbm [shape: f32[1,96], index: 13, kind: input, shape index: {}]   ;;  %s6731_s14 = inlined_call_operand.vmem [shape: bf16[32,32], index: 14, kind: input, shape index: {}]   ;;  %s6732_s15 = inlined_call_operand.vmem [shape: bf16[32,32], index: 15, kind: input, shape index: {}]   ;;  %s6733_s16 = inlined_call_operand.vmem [shape: f32[1,32], index: 16, kind: input, shape index: {}]   ;;  %s6734_s17 = inlined_call_operand.vmem [shape: bf16[32,64], index: 17, kind: input, shape index: {}]   ;;  %s6735_s18 = inlined_call_operand.vmem [shape: f32[1,64], index: 18, kind: input, shape index: {}]   ;;  %s6736_s19 = inlined_call_operand.hbm [shape: s32[5], index: 19, kind: output, shape index: {0}]   ;;  %s6737_s20 = inlined_call_operand.hbm [shape: f32[5], index: 20, kind: output, shape index: {1}]  }
   0x1   :  { %6742 = sst [smem:[#allocation26_spill]] %s6717_s0 }
   0x2   :  { %6743 = sst [smem:[#allocation27_spill]] %s6718_s1 }
   0x3   :  { %6744 = sst [smem:[#allocation28_spill]] %s6719_s2 }
   0x4   :  { %6745 = sst [smem:[#allocation29_spill]] %s6720_s3 }
   0x5   :  { %6746 = sst [smem:[#allocation30_spill]] %s6721_s4 }
   0x6   :  { %26 = vsyncpa [#allocation7], 0 }
   0x7   :  { %27 = vsyncpa [#allocation10], 0 }
   0x8   :  { %28 = vsyncpa [#allocation13], 0 }
   0x9   :  { %29 = vsyncpa [#allocation16], 0 }
   0xa   :  { %30 = vsyncpa [#allocation8], 0 }
   0xb   :  { %31 = vsyncpa [#allocation19], 0  ;;  %s5657_s1 = smov [#allocation9]   ;;  %s5658_s23 = smov [#allocation12]  }
   0xc   :  { %s56_s22 = sshll.u32 %s5657_s1, 4  ;;  %s80_s24 = sshll.u32 %s5658_s23, 4  ;;  %s57_s22 = int_to_ptr.vmem [resolvable:$true] %s56_s22  ;;  %s81_s24 = int_to_ptr.vmem [resolvable:$true] %s80_s24 }
   0xd   :  { %s5493_s3 = scalar_lea.hbm %s6722_s5, 16 }
   0xe   :  { %p5494_p0 = scmp.ne.s32.totalorder %s6722_s5, %s5493_s3  ;;  %p5497_p1 = scmp.lt.u32.totalorder %s5493_s3, %s6722_s5 }
  0x10   :  { %p5499_p2 = pnand %p5497_p1, %p5494_p0 }
  0x12   :  { %5502 = shalt.err (!%p5499_p2)
}
  0x13   :  { %s5503_s29 = scalar_lea.vmem %s57_s22, 16  ;;  %s5507_s30 = scalar_lea.vmem %s57_s22, 32 }
  0x14   :  { %p5504_p3 = scmp.ne.s32.totalorder %s57_s22, %s5503_s29  ;;  %p5508_p4 = scmp.lt.s32.totalorder %s57_s22, %s57_s22 }
  0x15   :  { %p5509_p5 = scmp.lt.s32.totalorder %s5507_s30, %s5503_s29 }
  0x17   :  { %p5510_p6 = por %p5509_p5, %p5508_p4 }
  0x19   :  { %p5511_p7 = pnand %p5510_p6, %p5504_p3 }
  0x1b   :  { %5514 = shalt.err (!%p5511_p7)
}
  0x1c   :  { %59 = dma.hbm_to_vmem [thread:$0]  %s6722_s5, 16, %s57_s22, [#allocation10]  }
  0x1d   :  { %s5515_s2 = scalar_lea.hbm %s6726_s9, 16 }
  0x1e   :  { %p5516_p8 = scmp.ne.s32.totalorder %s6726_s9, %s5515_s2  ;;  %p5519_p9 = scmp.lt.u32.totalorder %s5515_s2, %s6726_s9 }
  0x20   :  { %p5521_p10 = pnand %p5519_p9, %p5516_p8 }
  0x22   :  { %5524 = shalt.err (!%p5521_p10)
}
  0x23   :  { %s5525_s28 = scalar_lea.vmem %s81_s24, 16  ;;  %s5529_s4 = scalar_lea.vmem %s81_s24, 32 }
  0x24   :  { %p5526_p11 = scmp.ne.s32.totalorder %s81_s24, %s5525_s28  ;;  %p5530_p12 = scmp.lt.s32.totalorder %s81_s24, %s81_s24 }
  0x25   :  { %p5531_p13 = scmp.lt.s32.totalorder %s5529_s4, %s5525_s28 }
  0x27   :  { %p5532_p0 = por %p5531_p13, %p5530_p12 }
  0x29   :  { %p5533_p1 = pnand %p5532_p0, %p5526_p11 }
  0x2b   :  { %5536 = shalt.err (!%p5533_p1)
}
  0x2c   :  { %83 = dma.hbm_to_vmem [thread:$0]  %s6726_s9, 16, %s81_s24, [#allocation13]  }
  0x2d   :  { %s5659_s29 = smov [#allocation6]   ;;  %s5660_s0 = smov [#allocation11]  }
  0x2e   :  { %s38_s30 = sshll.u32 %s5659_s29, 4  ;;  %s70_s21 = sshll.u32 %s5660_s0, 4  ;;  %s39_s30 = int_to_ptr.vmem [resolvable:$true] %s38_s30  ;;  %s71_s21 = int_to_ptr.vmem [resolvable:$true] %s70_s21 }
  0x2f   :  { %s6747_s2 = sld [smem:[#allocation26_spill]] }
  0x35   :  { %s5537_s25 = scalar_lea.hbm %s6747_s2, 64 }
  0x36   :  { %p5538_p2 = scmp.ne.s32.totalorder %s6747_s2, %s5537_s25  ;;  %p5541_p3 = scmp.lt.u32.totalorder %s5537_s25, %s6747_s2 }
  0x38   :  { %p5543_p4 = pnand %p5541_p3, %p5538_p2 }
  0x3a   :  { %5546 = shalt.err (!%p5543_p4)
}
  0x3b   :  { %s5547_s9 = scalar_lea.vmem %s39_s30, 64  ;;  %p5552_p6 = scmp.lt.s32.totalorder %s39_s30, %s39_s30 }
  0x3c   :  { %p5548_p5 = scmp.ne.s32.totalorder %s39_s30, %s5547_s9  ;;  %p5553_p7 = scmp.lt.s32.totalorder %s5547_s9, %s5547_s9 }
  0x3e   :  { %p5554_p8 = por %p5553_p7, %p5552_p6 }
  0x40   :  { %p5555_p9 = pnand %p5554_p8, %p5548_p5 }
  0x42   :  { %5558 = shalt.err (!%p5555_p9)
}
  0x43   :  { %41 = dma.hbm_to_vmem [thread:$0]  %s6747_s2, 64, %s39_s30, [#allocation7]  }
  0x44   :  { %s5559_s29 = scalar_lea.hbm %s6725_s8, 16 }
  0x45   :  { %p5560_p10 = scmp.ne.s32.totalorder %s6725_s8, %s5559_s29  ;;  %p5563_p11 = scmp.lt.u32.totalorder %s5559_s29, %s6725_s8 }
  0x47   :  { %p5565_p12 = pnand %p5563_p11, %p5560_p10 }
  0x49   :  { %5568 = shalt.err (!%p5565_p12)
}
  0x4a   :  { %s5569_s3 = scalar_lea.vmem %s71_s21, 16  ;;  %s5573_s26 = scalar_lea.vmem %s71_s21, 32 }
  0x4b   :  { %p5570_p13 = scmp.ne.s32.totalorder %s71_s21, %s5569_s3  ;;  %p5574_p0 = scmp.lt.s32.totalorder %s71_s21, %s71_s21 }
  0x4c   :  { %p5575_p1 = scmp.lt.s32.totalorder %s5573_s26, %s5569_s3 }
  0x4e   :  { %p5576_p2 = por %p5575_p1, %p5574_p0 }
  0x50   :  { %p5577_p3 = pnand %p5576_p2, %p5570_p13 }
  0x52   :  { %5580 = shalt.err (!%p5577_p3)
}
  0x53   :  { %73 = dma.hbm_to_vmem [thread:$0]  %s6725_s8, 16, %s71_s21, [#allocation10]  }
  0x54   :  { %s5661_s27 = smov [#allocation14]   ;;  %s5662_s9 = smov [#allocation15]  }
  0x55   :  { %s94_s28 = sshll.u32 %s5661_s27, 4  ;;  %s104_s24 = sshll.u32 %s5662_s9, 4  ;;  %s95_s28 = int_to_ptr.vmem [resolvable:$true] %s94_s28  ;;  %s105_s24 = int_to_ptr.vmem [resolvable:$true] %s104_s24 }
  0x56   :  { %s5581_s22 = scalar_lea.hbm %s6729_s12, 16 }
  0x57   :  { %p5582_p4 = scmp.ne.s32.totalorder %s6729_s12, %s5581_s22  ;;  %p5585_p5 = scmp.lt.u32.totalorder %s5581_s22, %s6729_s12 }
  0x59   :  { %p5587_p6 = pnand %p5585_p5, %p5582_p4 }
  0x5b   :  { %5590 = shalt.err (!%p5587_p6)
}
  0x5c   :  { %s5591_s8 = scalar_lea.vmem %s95_s28, 16  ;;  %s5595_s21 = scalar_lea.vmem %s95_s28, 32 }
  0x5d   :  { %p5592_p7 = scmp.ne.s32.totalorder %s95_s28, %s5591_s8  ;;  %p5596_p8 = scmp.lt.s32.totalorder %s95_s28, %s95_s28 }
  0x5e   :  { %p5597_p9 = scmp.lt.s32.totalorder %s5595_s21, %s5591_s8 }
  0x60   :  { %p5598_p10 = por %p5597_p9, %p5596_p8 }
  0x62   :  { %p5599_p11 = pnand %p5598_p10, %p5592_p7 }
  0x64   :  { %5602 = shalt.err (!%p5599_p11)
}
  0x65   :  { %97 = dma.hbm_to_vmem [thread:$0]  %s6729_s12, 16, %s95_s28, [#allocation13]  }
  0x66   :  { %s5603_s2 = scalar_lea.hbm %s6730_s13, 16 }
  0x67   :  { %p5604_p12 = scmp.ne.s32.totalorder %s6730_s13, %s5603_s2  ;;  %p5607_p13 = scmp.lt.u32.totalorder %s5603_s2, %s6730_s13 }
  0x69   :  { %p5609_p0 = pnand %p5607_p13, %p5604_p12 }
  0x6b   :  { %5612 = shalt.err (!%p5609_p0)
}
  0x6c   :  { %s5613_s22 = scalar_lea.vmem %s105_s24, 16  ;;  %s5617_s29 = scalar_lea.vmem %s105_s24, 32 }
  0x6d   :  { %p5614_p1 = scmp.ne.s32.totalorder %s105_s24, %s5613_s22  ;;  %p5618_p2 = scmp.lt.s32.totalorder %s105_s24, %s105_s24 }
  0x6e   :  { %p5619_p3 = scmp.lt.s32.totalorder %s5617_s29, %s5613_s22 }
  0x70   :  { %p5620_p4 = por %p5619_p3, %p5618_p2 }
  0x72   :  { %p5621_p5 = pnand %p5620_p4, %p5614_p1 }
  0x74   :  { %5624 = shalt.err (!%p5621_p5)
}
  0x75   :  { %107 = dma.hbm_to_vmem [thread:$0]  %s6730_s13, 16, %s105_s24, [#allocation16]  }
  0x76   :  { %5645 = dma.done.wait [#allocation7], 64  }
  0x77   :  { %5646 = vsyncadd [#allocation7], 4294967232 }
  0x78   :  { %5647 = dma.done.wait [#allocation10], 32  }
  0x79   :  { %5648 = vsyncadd [#allocation10], 4294967264 }
  0x7a   :  { %5649 = dma.done.wait [#allocation13], 32  }
  0x7b   :  { %5650 = vsyncadd [#allocation13], 4294967264 }
  0x7c   :  { %5651 = dma.done.wait [#allocation16], 16  }
  0x7d   :  { %5652 = vsyncadd [#allocation16], 4294967280  ;;  %v5663_v0 = vmov 0.0   ;;  %vm5664_vm0 = vmmov 0   ;;  %s6748_s0 = sld [smem:[#allocation28_spill]]  ;;  %v5235_v4 = vld [vmem:[%s6723_s6] sm:$0xff]  }
  0x7e   :  { %4804 = vmatprep.subr.bf16.mxu0 %v5663_v0  ;;  %4808 = vmatprep.mubr.msk.bf16.mxu0 %vm5664_vm0, %v5663_v0  ;;  %v137_v3 = vld [vmem:[#allocation6] sm:$0xf]  ;;  %vm161_vm1 = vcmask 261120   ;;  %s6749_s26 = sld [smem:[#allocation29_spill]]  ;;  %v5236_v6 = vld [vmem:[%s6723_s6 + $0x8] sm:$0xff]   ;;  %v5665_v10 = vmov 0  }
  0x7f   :  { %4812 = vmatprep.subr.bf16.mxu1 %v5663_v0  ;;  %4816 = vmatprep.mubr.msk.bf16.mxu1 %vm5664_vm0, %v5663_v0  ;;  %v5237_v8 = vld [vmem:[%s6724_s7] sm:$0xff]   ;;  %v5238_v9 = vld [vmem:[%s6724_s7 + $0x8] sm:$0xff]   ;;  %s6750_s28 = sld [smem:[#allocation30_spill]]  ;;  %vm205_vm2 = vcmask 785408   ;;  %s5666_s13 = smov 64   ;;  %vm446_vm3 = vcmask 253952  }
  0x80   :  { %4813 = vmatpush3.bf16.msra.mxu1 %v5235_v4  ;;  %v4494_v17 = vld [vmem:[#allocation11] ss:$0 sm:$0xff]  ;;  %v276_v19 = vld [vmem:[#allocation9] sm:$0x1]  ;;  %v363_v40 = vld [vmem:[#allocation12] sm:$0x1] }
  0x81   :  { %4814 = vmatprep.subr.bf16.mxu1 %v5663_v0  ;;  %s5667_s8 = smov 96   ;;  %v5241_v60 = vld [vmem:[%s6724_s7] sm:$0xff]   ;;  %v5242_v63 = vld [vmem:[%s6724_s7 + $0x8] sm:$0xff]   ;;  %s6751_s9 = sld [smem:[#allocation27_spill]]  ;;  %vm2034_vm4 = vcmask 57344   ;;  %vm2046_vm5 = vcmask 64512  }
  0x82   :  { %vm2307_vm6 = vcmask 516096   ;;  %s5625_s1 = scalar_lea.hbm %s6737_s20, 16 }
  0x83   :  { %v5231_v1 = vld [vmem:[%s6748_s0] sm:$0xff]   ;;  %v5232_v2 = vld [vmem:[%s6748_s0 + $0x8] sm:$0xff]   ;;  %p5626_p6 = scmp.ne.s32.totalorder %s6737_s20, %s5625_s1  ;;  %p5629_p7 = scmp.lt.u32.totalorder %s5625_s1, %s6737_s20 }
  0x84   :  { %4805 = vmatpush3.bf16.msra.mxu0 %v5231_v1  ;;  %v5233_v5 = vld [vmem:[%s6749_s26] sm:$0xff]   ;;  %v5234_v7 = vld [vmem:[%s6749_s26 + $0x8] sm:$0xff]   ;;  %4815 = vmatpush3.bf16.msra.mxu1 %v5236_v6 }
  0x85   :  { %4806 = vmatprep.subr.bf16.mxu0 %v5663_v0  ;;  %4828 = vmatprep.subr.bf16.mxu1 %v5663_v0  ;;  %v4490_v11 = vld [vmem:[%s6750_s28] ss:$0 sm:$0xff]  ;;  %v5240_v54 = vld [vmem:[%s6749_s26 + $0x8] sm:$0xff]   ;;  %p5631_p8 = pnand %p5629_p7, %p5626_p6 }
  0x86   :  { %v5239_v53 = vld [vmem:[%s6749_s26] sm:$0xff]  }
  0x87   :  { %4817 = vmatmul.mubr.msk.bf16.vlgmr.msra.gmra.mrb[0].mxu1 %vm161_vm1, %v137_v3 }
  0x88   :  { %4807 = vmatpush3.bf16.msra.mxu0 %v5232_v2  ;;  %4829 = vmatpush3.bf16.msra.mxu1 %v5237_v8 }
  0x89   :  { %4820 = vmatprep.subr.bf16.mxu0 %v5663_v0  ;;  %4832 = vmatprep.mubr.msk.bf16.mxu1 %vm5664_vm0, %v5663_v0 }
  0x8a   :  { %4830 = vmatprep.subr.bf16.mxu1 %v5663_v0 }
  0x8b   :  { %4809 = vmatmul.mubr.msk.bf16.vlgmr.msra.gmra.mrb[0].mxu0 %vm161_vm1, %v137_v3 }
  0x8c   :  { %4821 = vmatpush3.bf16.msra.mxu0 %v5233_v5  ;;  %4824 = vmatprep.mubr.msk.bf16.mxu0 %vm5664_vm0, %v5663_v0 }
  0x8d   :  { %4822 = vmatprep.subr.bf16.mxu0 %v5663_v0  ;;  %4831 = vmatpush3.bf16.msra.mxu1 %v5238_v9 }
  0x8e   :  { %4844 = vmatprep.subr.bf16.mxu1 %v5663_v0 }
  0x90   :  { %4823 = vmatpush3.bf16.msra.mxu0 %v5234_v7  ;;  %4833 = vmatmul.mubr.bf16.vlgmr.msra.gmra.mrb[4].mxu1 %v5665_v10 }
  0x91   :  { %4836 = vmatprep.subr.bf16.mxu0 %v5663_v0  ;;  %4848 = vmatprep.mubr.msk.bf16.mxu1 %vm5664_vm0, %v5663_v0 }
  0x92   :  { %4845 = vmatpush3.bf16.msra.mxu1 %v5241_v60 }
  0x93   :  { %4825 = vmatmul.mubr.bf16.vlgmr.msra.gmra.mrb[4].mxu0 %v5665_v10  ;;  %4846 = vmatprep.subr.bf16.mxu1 %v5663_v0 }
  0x94   :  { %4840 = vmatprep.mubr.msk.bf16.mxu0 %vm5664_vm0, %v5663_v0  ;;  %4837 = vmatpush3.bf16.msra.mxu0 %v5239_v53 }
  0x95   :  { %4838 = vmatprep.subr.bf16.mxu0 %v5663_v0 }
  0x96   :  { %4847 = vmatpush3.bf16.msra.mxu1 %v5242_v63 }
  0x97   :  { %4860 = vmatprep.subr.bf16.mxu1 %v5663_v0 }
  0x98   :  { %4839 = vmatpush3.bf16.msra.mxu0 %v5240_v54 }
  0x99   :  { %4852 = vmatprep.subr.bf16.mxu0 %v5663_v0 }
 0x15a   :  { %v264_v18 = vpop.f32.mrb[0].mxu1 }
 0x15b   :  { %v265_v20 = vadd.f32 %v4494_v17, %v264_v18  ;;  %v4818_v21 = vpop.f32.mrb[1].mxu1 }
 0x15c   :  { %v267_v22 = vpop.f32.mrb[2].mxu1 }
 0x15d   :  { %270 = vst.msk [vmem:[#allocation3] sm:$0xff] %vm205_vm2, %v265_v20  ;;  %v4819_v24 = vpop.f32.mrb[3].mxu1 }
 0x15e   :  { %v199_v12 = vpop.f32.mrb[0].mxu0 }
 0x15f   :  { %v200_v13 = vadd.f32 %v4490_v11, %v199_v12  ;;  %v4810_v14 = vpop.f32.mrb[1].mxu0  ;;  %v459_v12 = vld [vmem:[#allocation9] sm:$0x1] }
 0x160   :  { %v202_v15 = vpop.f32.mrb[2].mxu0 }
 0x161   :  { %206 = vst.msk [vmem:[#allocation2] sm:$0xff] %vm205_vm2, %v200_v13  ;;  %v4811_v16 = vpop.f32.mrb[3].mxu0 }
 0x163   :  { %v410_v29 = vpop.f32.mrb[4].mxu1 }
 0x164   :  { %v4834_v30 = vpop.f32.mrb[5].mxu1  ;;  %v411_v42 = vadd.f32 %v410_v29, %v363_v40  ;;  %v358_v43 = vld [vmem:[#allocation3 + $0x7] sm:$0x1] }
 0x165   :  { %v413_v31 = vpop.f32.mrb[6].mxu1 }
 0x166   :  { %v326_v23 = vpop.f32.mrb[4].mxu0  ;;  %v4835_v32 = vpop.f32.mrb[7].mxu1  ;;  %v416_v44 = vadd.f32 %v411_v42, %v358_v43 }
 0x167   :  { %v327_v25 = vadd.f32 %v326_v23, %v276_v19  ;;  %v4826_v26 = vpop.f32.mrb[5].mxu0  ;;  %v544_v32 = vld [vmem:[#allocation3 + $0x6] sm:$0x1] }
 0x168   :  { %v329_v27 = vpop.f32.mrb[6].mxu0  ;;  %v271_v33 = vld [vmem:[#allocation2] sm:$0x1]  ;;  %v4503_v45 = vmul.f32 -1.442695, %v416_v44 }
 0x169   :  { %340 = vrot.lane.b32.xlu0 %v327_v25, %s5666_s13  ;;  %v4827_v28 = vpop.f32.mrb[7].mxu0  ;;  %v332_v34 = vadd.f32 %v327_v25, %v271_v33  ;;  %v453_v18 = vld [vmem:[#allocation2 + $0x1] sm:$0x1]  ;;  %v550_v26 = vld [vmem:[#allocation12] sm:$0x1] }
 0x16b   :  { %v4500_v35 = vmul.f32 -1.442695, %v332_v34 }
 0x16d   :  { %5317 = vpow2.f32 %v4500_v35 }
 0x177   :  { %v5318_v36 = vpop.eup %5317 }
 0x178   :  { %v336_v37 = vadd.f32 1.0, %v5318_v36 }
 0x17a   :  { %5319 = vrcp.f32 %v336_v37 }
 0x17b   :  { %5321 = vpow2.f32 %v4503_v45 }
 0x184   :  { %v5320_v38 = vpop.eup %5319 }
 0x185   :  { %v5322_v46 = vpop.eup %5321  ;;  %v350_v58 = vsub.f32 1.0, %v5320_v38  ;;  %v356_v61 = vmul.f32 0.0, %v5320_v38 }
 0x186   :  { %v420_v47 = vadd.f32 1.0, %v5322_v46 }
 0x188   :  { %5323 = vrcp.f32 %v420_v47 }
 0x192   :  { %v5324_v50 = vpop.eup %5323 }
 0x193   :  { %v434_v4 = vsub.f32 1.0, %v5324_v50  ;;  %v440_v5 = vmul.f32 0.0, %v5324_v50 }
 0x1db   :  { %v341_v39 = vpop.permute.xlu0 %340 }
 0x1dc   :  { %v343_v41 = vmul.f32 %v5320_v38, %v341_v39 }
 0x1de   :  { %345 = vrot.lane.b32.xlu0 %v343_v41, %s5666_s13 }
 0x1e2   :  { %424 = vrot.lane.b32.xlu0 %v411_v42, %s5666_s13  ;;  %v5243_v42 = vld [vmem:[%s6749_s26] sm:$0xff]  }
 0x250   :  { %v346_v48 = vpop.permute.xlu0 %345 }
 0x251   :  { %v348_v49 = vadd.f32 %v346_v48, %v271_v33 }
 0x253   :  { %5325 = vtanh.f32 %v348_v49  ;;  %v5245_v49 = vld [vmem:[%s6724_s7] sm:$0xff]  }
 0x254   :  { %v425_v51 = vpop.permute.xlu0 %424 }
 0x255   :  { %v427_v52 = vmul.f32 %v5324_v50, %v425_v51 }
 0x257   :  { %429 = vrot.lane.b32.xlu0 %v427_v52, %s5666_s13  ;;  %v5246_v52 = vld [vmem:[%s6724_s7 + $0x8] sm:$0xff]  }
 0x25d   :  { %v5326_v55 = vpop.eup %5325 }
 0x25e   :  { %352 = vrot.lane.b32.xlu1 %v5326_v55, %s5667_s8 }
 0x2c9   :  { %v430_v56 = vpop.permute.xlu0 %429 }
 0x2ca   :  { %v432_v57 = vadd.f32 %v430_v56, %v358_v43  ;;  %v5244_v43 = vld [vmem:[%s6749_s26 + $0x8] sm:$0xff]  }
 0x2cc   :  { %5327 = vtanh.f32 %v432_v57 }
 0x2d0   :  { %v353_v59 = vpop.permute.xlu1 %352 }
 0x2d1   :  { %v355_v62 = vmul.f32 %v353_v59, %v350_v58 }
 0x2d3   :  { %v5917_v1 = vadd.f32 %v356_v61, %v355_v62 }
 0x2d5   :  { %v454_v2 = vpack.c.bf16 %v5917_v1, %v5917_v1 }
 0x2d6   :  { %v5328_v3 = vpop.eup %5327 }
 0x2d7   :  { %461 = vrot.lane.b32.xlu1 %v454_v2, %s5667_s8  ;;  %436 = vrot.lane.b32.xlu0 %v5328_v3, %s5667_s8  ;;  %v651_v2 = vld [vmem:[#allocation9] sm:$0x1] }
 0x349   :  { %v462_v6 = vpop.permute.xlu1 %461  ;;  %v437_v7 = vpop.permute.xlu0 %436 }
 0x34a   :  { %v439_v8 = vmul.f32 %v437_v7, %v434_v4  ;;  %4841 = vmatmul.mubr.msk.bf16.vlgmr.msra.gmra.mrb[8].mxu0 %vm161_vm1, %v462_v6 }
 0x34b   :  { %4856 = vmatprep.mubr.msk.bf16.mxu0 %vm5664_vm0, %v5663_v0  ;;  %4853 = vmatpush3.bf16.msra.mxu0 %v5243_v42 }
 0x34c   :  { %v5928_v9 = vadd.f32 %v440_v5, %v439_v8  ;;  %4854 = vmatprep.subr.bf16.mxu0 %v5663_v0  ;;  %v645_v8 = vld [vmem:[#allocation2 + $0x2] sm:$0x1] }
 0x34e   :  { %v545_v10 = vpack.c.bf16 %v5928_v9, %v5928_v9 }
 0x34f   :  { %4855 = vmatpush3.bf16.msra.mxu0 %v5244_v43  ;;  %v5250_v43 = vld [vmem:[%s6724_s7 + $0x8] sm:$0xff]  }
 0x350   :  { %552 = vrot.lane.b32.xlu0 %v545_v10, %s5667_s8  ;;  %4868 = vmatprep.subr.bf16.mxu0 %v5663_v0 }
 0x3c2   :  { %v553_v11 = vpop.permute.xlu0 %552 }
 0x3c3   :  { %4849 = vmatmul.mubr.msk.bf16.vlgmr.msra.gmra.mrb[8].mxu1 %vm161_vm1, %v553_v11 }
 0x3c4   :  { %4864 = vmatprep.mubr.msk.bf16.mxu1 %vm5664_vm0, %v5663_v0  ;;  %4861 = vmatpush3.bf16.msra.mxu1 %v5245_v49 }
 0x3c5   :  { %4862 = vmatprep.subr.bf16.mxu1 %v5663_v0 }
 0x3c8   :  { %4863 = vmatpush3.bf16.msra.mxu1 %v5246_v52 }
 0x3c9   :  { %4876 = vmatprep.subr.bf16.mxu1 %v5663_v0 }
 0x41d   :  { %v512_v13 = vpop.f32.mrb[8].mxu0 }
 0x41e   :  { %v513_v14 = vadd.f32 %v512_v13, %v459_v12  ;;  %v4842_v15 = vpop.f32.mrb[9].mxu0 }
 0x41f   :  { %v515_v16 = vpop.f32.mrb[10].mxu0 }
 0x420   :  { %526 = vrot.lane.b32.xlu1 %v513_v14, %s5666_s13  ;;  %v4843_v17 = vpop.f32.mrb[11].mxu0  ;;  %v518_v19 = vadd.f32 %v513_v14, %v453_v18 }
 0x421   :  { %v742_v17 = vld [vmem:[#allocation12] sm:$0x1] }
 0x422   :  { %v4507_v20 = vmul.f32 -1.442695, %v518_v19 }
 0x424   :  { %5329 = vpow2.f32 %v4507_v20 }
 0x42e   :  { %v5330_v21 = vpop.eup %5329 }
 0x42f   :  { %v522_v22 = vadd.f32 1.0, %v5330_v21 }
 0x431   :  { %5331 = vrcp.f32 %v522_v22 }
 0x43b   :  { %v5332_v23 = vpop.eup %5331 }
 0x43c   :  { %v536_v47 = vsub.f32 1.0, %v5332_v23  ;;  %v542_v50 = vmul.f32 %v5332_v23, %v5917_v1 }
 0x492   :  { %v527_v24 = vpop.permute.xlu1 %526 }
 0x493   :  { %v529_v25 = vmul.f32 %v5332_v23, %v527_v24  ;;  %v736_v23 = vld [vmem:[#allocation3 + $0x5] sm:$0x1] }
 0x495   :  { %531 = vrot.lane.b32.xlu1 %v529_v25, %s5666_s13 }
 0x496   :  { %v603_v27 = vpop.f32.mrb[8].mxu1 }
 0x497   :  { %v604_v28 = vadd.f32 %v603_v27, %v550_v26  ;;  %v4850_v29 = vpop.f32.mrb[9].mxu1 }
 0x498   :  { %v606_v30 = vpop.f32.mrb[10].mxu1 }
 0x499   :  { %617 = vrot.lane.b32.xlu0 %v604_v28, %s5666_s13  ;;  %v4851_v31 = vpop.f32.mrb[11].mxu1  ;;  %v609_v33 = vadd.f32 %v604_v28, %v544_v32 }
 0x49b   :  { %v4511_v34 = vmul.f32 -1.442695, %v609_v33  ;;  %v5247_v33 = vld [vmem:[%s6749_s26] sm:$0xff]  }
 0x49d   :  { %5333 = vpow2.f32 %v4511_v34  ;;  %v5248_v34 = vld [vmem:[%s6749_s26 + $0x8] sm:$0xff]  }
 0x4a7   :  { %v5334_v35 = vpop.eup %5333 }
 0x4a8   :  { %v613_v36 = vadd.f32 1.0, %v5334_v35 }
 0x4aa   :  { %5335 = vrcp.f32 %v613_v36 }
 0x4b4   :  { %v5336_v39 = vpop.eup %5335 }
 0x4b5   :  { %v627_v56 = vsub.f32 1.0, %v5336_v39  ;;  %v633_v59 = vmul.f32 %v5336_v39, %v5928_v9 }
 0x507   :  { %v532_v37 = vpop.permute.xlu1 %531 }
 0x508   :  { %v534_v38 = vadd.f32 %v532_v37, %v453_v18 }
 0x50a   :  { %5337 = vtanh.f32 %v534_v38 }
 0x50b   :  { %v618_v40 = vpop.permute.xlu0 %617 }
 0x50c   :  { %v620_v41 = vmul.f32 %v5336_v39, %v618_v40  ;;  %v5249_v40 = vld [vmem:[%s6724_s7] sm:$0xff]  }
 0x50e   :  { %622 = vrot.lane.b32.xlu0 %v620_v41, %s5666_s13 }
 0x514   :  { %v5338_v44 = vpop.eup %5337 }
 0x515   :  { %538 = vrot.lane.b32.xlu1 %v5338_v44, %s5667_s8 }
 0x580   :  { %v623_v45 = vpop.permute.xlu0 %622 }
 0x581   :  { %v625_v46 = vadd.f32 %v623_v45, %v544_v32 }
 0x583   :  { %5339 = vtanh.f32 %v625_v46 }
 0x587   :  { %v539_v48 = vpop.permute.xlu1 %538 }
 0x588   :  { %v541_v51 = vmul.f32 %v539_v48, %v536_v47 }
 0x58a   :  { %v5956_v53 = vadd.f32 %v542_v50, %v541_v51 }
 0x58c   :  { %v646_v54 = vpack.c.bf16 %v5956_v53, %v5956_v53 }
 0x58d   :  { %v5340_v55 = vpop.eup %5339 }
 0x58e   :  { %629 = vrot.lane.b32.xlu0 %v5340_v55, %s5667_s8  ;;  %653 = vrot.lane.b32.xlu1 %v646_v54, %s5667_s8 }
 0x600   :  { %v630_v57 = vpop.permute.xlu0 %629  ;;  %v654_v58 = vpop.permute.xlu1 %653 }
 0x601   :  { %v632_v60 = vmul.f32 %v630_v57, %v627_v56  ;;  %4857 = vmatmul.mubr.msk.bf16.vlgmr.msra.gmra.mrb[12].mxu0 %vm161_vm1, %v654_v58  ;;  %v843_v56 = vld [vmem:[#allocation9] sm:$0x1] }
 0x602   :  { %4872 = vmatprep.mubr.msk.bf16.mxu0 %vm5664_vm0, %v5663_v0  ;;  %4869 = vmatpush3.bf16.msra.mxu0 %v5247_v33  ;;  %v5253_v33 = vld [vmem:[%s6724_s7] sm:$0xff]  }
 0x603   :  { %v5968_v61 = vadd.f32 %v633_v59, %v632_v60  ;;  %4870 = vmatprep.subr.bf16.mxu0 %v5663_v0 }
 0x605   :  { %v737_v62 = vpack.c.bf16 %v5968_v61, %v5968_v61 }
 0x606   :  { %4871 = vmatpush3.bf16.msra.mxu0 %v5248_v34 }
 0x607   :  { %744 = vrot.lane.b32.xlu0 %v737_v62, %s5667_s8  ;;  %4884 = vmatprep.subr.bf16.mxu0 %v5663_v0 }
 0x679   :  { %v745_v63 = vpop.permute.xlu0 %744 }
 0x67a   :  { %4865 = vmatmul.mubr.msk.bf16.vlgmr.msra.gmra.mrb[12].mxu1 %vm161_vm1, %v745_v63  ;;  %v837_v63 = vld [vmem:[#allocation2 + $0x3] sm:$0x1] }
 0x67b   :  { %4880 = vmatprep.mubr.msk.bf16.mxu1 %vm5664_vm0, %v5663_v0  ;;  %4877 = vmatpush3.bf16.msra.mxu1 %v5249_v40 }
 0x67c   :  { %4878 = vmatprep.subr.bf16.mxu1 %v5663_v0 }
 0x67f   :  { %4879 = vmatpush3.bf16.msra.mxu1 %v5250_v43 }
 0x680   :  { %4892 = vmatprep.subr.bf16.mxu1 %v5663_v0 }
 0x6d4   :  { %v704_v3 = vpop.f32.mrb[12].mxu0 }
 0x6d5   :  { %v705_v4 = vadd.f32 %v704_v3, %v651_v2  ;;  %v4858_v5 = vpop.f32.mrb[13].mxu0 }
 0x6d6   :  { %v707_v6 = vpop.f32.mrb[14].mxu0 }
 0x6d7   :  { %718 = vrot.lane.b32.xlu1 %v705_v4, %s5666_s13  ;;  %v4859_v7 = vpop.f32.mrb[15].mxu0  ;;  %v710_v10 = vadd.f32 %v705_v4, %v645_v8 }
 0x6d9   :  { %v4515_v11 = vmul.f32 -1.442695, %v710_v10  ;;  %v934_v10 = vld [vmem:[#allocation12] sm:$0x1] }
 0x6db   :  { %5341 = vpow2.f32 %v4515_v11 }
 0x6e5   :  { %v5342_v12 = vpop.eup %5341 }
 0x6e6   :  { %v714_v13 = vadd.f32 1.0, %v5342_v12 }
 0x6e8   :  { %5343 = vrcp.f32 %v714_v13 }
 0x6f2   :  { %v5344_v14 = vpop.eup %5343 }
 0x6f3   :  { %v728_v38 = vsub.f32 1.0, %v5344_v14  ;;  %v734_v41 = vmul.f32 %v5344_v14, %v5956_v53 }
 0x749   :  { %v719_v15 = vpop.permute.xlu1 %718 }
 0x74a   :  { %v721_v16 = vmul.f32 %v5344_v14, %v719_v15 }
 0x74c   :  { %723 = vrot.lane.b32.xlu1 %v721_v16, %s5666_s13  ;;  %v928_v16 = vld [vmem:[#allocation3 + $0x4] sm:$0x1] }
 0x74d   :  { %v795_v18 = vpop.f32.mrb[12].mxu1 }
 0x74e   :  { %v796_v19 = vadd.f32 %v795_v18, %v742_v17  ;;  %v4866_v20 = vpop.f32.mrb[13].mxu1 }
 0x74f   :  { %v798_v21 = vpop.f32.mrb[14].mxu1 }
 0x750   :  { %809 = vrot.lane.b32.xlu0 %v796_v19, %s5666_s13  ;;  %v4867_v22 = vpop.f32.mrb[15].mxu1  ;;  %v801_v24 = vadd.f32 %v796_v19, %v736_v23 }
 0x752   :  { %v4519_v25 = vmul.f32 -1.442695, %v801_v24 }
 0x754   :  { %5345 = vpow2.f32 %v4519_v25 }
 0x75e   :  { %v5346_v26 = vpop.eup %5345 }
 0x75f   :  { %v805_v27 = vadd.f32 1.0, %v5346_v26  ;;  %v5251_v26 = vld [vmem:[%s6749_s26] sm:$0xff]  }
 0x761   :  { %5347 = vrcp.f32 %v805_v27  ;;  %v5252_v27 = vld [vmem:[%s6749_s26 + $0x8] sm:$0xff]  }
 0x76b   :  { %v5348_v30 = vpop.eup %5347 }
 0x76c   :  { %v819_v47 = vsub.f32 1.0, %v5348_v30  ;;  %v825_v50 = vmul.f32 %v5348_v30, %v5968_v61 }
 0x7be   :  { %v724_v28 = vpop.permute.xlu1 %723 }
 0x7bf   :  { %v726_v29 = vadd.f32 %v724_v28, %v645_v8 }
 0x7c1   :  { %5349 = vtanh.f32 %v726_v29 }
 0x7c2   :  { %v810_v31 = vpop.permute.xlu0 %809 }
 0x7c3   :  { %v812_v32 = vmul.f32 %v5348_v30, %v810_v31 }
 0x7c5   :  { %814 = vrot.lane.b32.xlu0 %v812_v32, %s5666_s13 }
 0x7cb   :  { %v5350_v35 = vpop.eup %5349 }
 0x7cc   :  { %730 = vrot.lane.b32.xlu1 %v5350_v35, %s5667_s8 }
 0x837   :  { %v815_v36 = vpop.permute.xlu0 %814 }
 0x838   :  { %v817_v37 = vadd.f32 %v815_v36, %v736_v23  ;;  %v5254_v36 = vld [vmem:[%s6724_s7 + $0x8] sm:$0xff]  }
 0x83a   :  { %5351 = vtanh.f32 %v817_v37 }
 0x83e   :  { %v731_v39 = vpop.permute.xlu1 %730 }
 0x83f   :  { %v733_v42 = vmul.f32 %v731_v39, %v728_v38 }
 0x841   :  { %v5996_v44 = vadd.f32 %v734_v41, %v733_v42 }
 0x843   :  { %v838_v45 = vpack.c.bf16 %v5996_v44, %v5996_v44 }
 0x844   :  { %v5352_v46 = vpop.eup %5351 }
 0x845   :  { %821 = vrot.lane.b32.xlu0 %v5352_v46, %s5667_s8  ;;  %845 = vrot.lane.b32.xlu1 %v838_v45, %s5667_s8 }
 0x8b7   :  { %v822_v48 = vpop.permute.xlu0 %821  ;;  %v846_v49 = vpop.permute.xlu1 %845 }
 0x8b8   :  { %v824_v51 = vmul.f32 %v822_v48, %v819_v47  ;;  %4873 = vmatmul.mubr.msk.bf16.vlgmr.msra.gmra.mrb[16].mxu0 %vm161_vm1, %v846_v49  ;;  %v1035_v49 = vld [vmem:[#allocation9] sm:$0x1] }
 0x8b9   :  { %4888 = vmatprep.mubr.msk.bf16.mxu0 %vm5664_vm0, %v5663_v0  ;;  %4885 = vmatpush3.bf16.msra.mxu0 %v5251_v26 }
 0x8ba   :  { %v6008_v52 = vadd.f32 %v825_v50, %v824_v51  ;;  %4886 = vmatprep.subr.bf16.mxu0 %v5663_v0 }
 0x8bc   :  { %v929_v54 = vpack.c.bf16 %v6008_v52, %v6008_v52 }
 0x8bd   :  { %4887 = vmatpush3.bf16.msra.mxu0 %v5252_v27 }
 0x8be   :  { %936 = vrot.lane.b32.xlu0 %v929_v54, %s5667_s8  ;;  %4900 = vmatprep.subr.bf16.mxu0 %v5663_v0 }
 0x930   :  { %v937_v55 = vpop.permute.xlu0 %936 }
 0x931   :  { %4881 = vmatmul.mubr.msk.bf16.vlgmr.msra.gmra.mrb[16].mxu1 %vm161_vm1, %v937_v55 }
 0x932   :  { %4896 = vmatprep.mubr.msk.bf16.mxu1 %vm5664_vm0, %v5663_v0  ;;  %4893 = vmatpush3.bf16.msra.mxu1 %v5253_v33 }
 0x933   :  { %4894 = vmatprep.subr.bf16.mxu1 %v5663_v0 }
 0x936   :  { %4895 = vmatpush3.bf16.msra.mxu1 %v5254_v36 }
 0x937   :  { %4908 = vmatprep.subr.bf16.mxu1 %v5663_v0 }
 0x98b   :  { %v896_v57 = vpop.f32.mrb[16].mxu0 }
 0x98c   :  { %v897_v58 = vadd.f32 %v896_v57, %v843_v56  ;;  %v4874_v59 = vpop.f32.mrb[17].mxu0  ;;  %v1029_v57 = vld [vmem:[#allocation2 + $0x4] sm:$0x1] }
 0x98d   :  { %v899_v60 = vpop.f32.mrb[18].mxu0 }
 0x98e   :  { %910 = vrot.lane.b32.xlu1 %v897_v58, %s5666_s13  ;;  %v4875_v62 = vpop.f32.mrb[19].mxu0  ;;  %v902_v2 = vadd.f32 %v897_v58, %v837_v63 }
 0x990   :  { %v4523_v3 = vmul.f32 -1.442695, %v902_v2 }
 0x992   :  { %5353 = vpow2.f32 %v4523_v3 }
 0x99c   :  { %v5354_v4 = vpop.eup %5353 }
 0x99d   :  { %v906_v5 = vadd.f32 1.0, %v5354_v4  ;;  %v1126_v4 = vld [vmem:[#allocation12] sm:$0x1] }
 0x99f   :  { %5355 = vrcp.f32 %v906_v5 }
 0x9a9   :  { %v5356_v6 = vpop.eup %5355 }
 0x9aa   :  { %v920_v31 = vsub.f32 1.0, %v5356_v6  ;;  %v926_v34 = vmul.f32 %v5356_v6, %v5996_v44 }
 0xa00   :  { %v911_v7 = vpop.permute.xlu1 %910 }
 0xa01   :  { %v913_v8 = vmul.f32 %v5356_v6, %v911_v7 }
 0xa03   :  { %915 = vrot.lane.b32.xlu1 %v913_v8, %s5666_s13 }
 0xa04   :  { %v987_v11 = vpop.f32.mrb[16].mxu1 }
 0xa05   :  { %v988_v12 = vadd.f32 %v987_v11, %v934_v10  ;;  %v4882_v13 = vpop.f32.mrb[17].mxu1  ;;  %v1120_v11 = vld [vmem:[#allocation3 + $0x3] sm:$0x1] }
 0xa06   :  { %v990_v14 = vpop.f32.mrb[18].mxu1 }
 0xa07   :  { %1001 = vrot.lane.b32.xlu0 %v988_v12, %s5666_s13  ;;  %v4883_v15 = vpop.f32.mrb[19].mxu1  ;;  %v993_v17 = vadd.f32 %v988_v12, %v928_v16 }
 0xa09   :  { %v4527_v18 = vmul.f32 -1.442695, %v993_v17 }
 0xa0b   :  { %5357 = vpow2.f32 %v4527_v18 }
 0xa15   :  { %v5358_v19 = vpop.eup %5357 }
 0xa16   :  { %v997_v20 = vadd.f32 1.0, %v5358_v19 }
 0xa18   :  { %5359 = vrcp.f32 %v997_v20 }
 0xa22   :  { %v5360_v23 = vpop.eup %5359 }
 0xa23   :  { %v1011_v40 = vsub.f32 1.0, %v5360_v23  ;;  %v1017_v43 = vmul.f32 %v5360_v23, %v6008_v52 }
 0xa75   :  { %v916_v21 = vpop.permute.xlu1 %915 }
 0xa76   :  { %v918_v22 = vadd.f32 %v916_v21, %v837_v63  ;;  %v5255_v21 = vld [vmem:[%s6749_s26] sm:$0xff]  }
 0xa78   :  { %5361 = vtanh.f32 %v918_v22  ;;  %v5256_v22 = vld [vmem:[%s6749_s26 + $0x8] sm:$0xff]  }
 0xa79   :  { %v1002_v24 = vpop.permute.xlu0 %1001 }
 0xa7a   :  { %v1004_v25 = vmul.f32 %v5360_v23, %v1002_v24 }
 0xa7c   :  { %1006 = vrot.lane.b32.xlu0 %v1004_v25, %s5666_s13 }
 0xa82   :  { %v5362_v28 = vpop.eup %5361 }
 0xa83   :  { %922 = vrot.lane.b32.xlu1 %v5362_v28, %s5667_s8  ;;  %v5257_v28 = vld [vmem:[%s6724_s7] sm:$0xff]  }
 0xaee   :  { %v1007_v29 = vpop.permute.xlu0 %1006 }
 0xaef   :  { %v1009_v30 = vadd.f32 %v1007_v29, %v928_v16 }
 0xaf1   :  { %5363 = vtanh.f32 %v1009_v30 }
 0xaf5   :  { %v923_v32 = vpop.permute.xlu1 %922 }
 0xaf6   :  { %v925_v35 = vmul.f32 %v923_v32, %v920_v31  ;;  %v5258_v31 = vld [vmem:[%s6724_s7 + $0x8] sm:$0xff]  }
 0xaf8   :  { %v6036_v37 = vadd.f32 %v926_v34, %v925_v35 }
 0xafa   :  { %v1030_v38 = vpack.c.bf16 %v6036_v37, %v6036_v37 }
 0xafb   :  { %v5364_v39 = vpop.eup %5363 }
 0xafc   :  { %1013 = vrot.lane.b32.xlu0 %v5364_v39, %s5667_s8  ;;  %1037 = vrot.lane.b32.xlu1 %v1030_v38, %s5667_s8 }
 0xb6e   :  { %v1014_v41 = vpop.permute.xlu0 %1013  ;;  %v1038_v42 = vpop.permute.xlu1 %1037 }
 0xb6f   :  { %v1016_v45 = vmul.f32 %v1014_v41, %v1011_v40  ;;  %4889 = vmatmul.mubr.msk.bf16.vlgmr.msra.gmra.mrb[20].mxu0 %vm161_vm1, %v1038_v42 }
 0xb70   :  { %4904 = vmatprep.mubr.msk.bf16.mxu0 %vm5664_vm0, %v5663_v0  ;;  %4901 = vmatpush3.bf16.msra.mxu0 %v5255_v21 }
 0xb71   :  { %v6048_v46 = vadd.f32 %v1017_v43, %v1016_v45  ;;  %4902 = vmatprep.subr.bf16.mxu0 %v5663_v0  ;;  %v1227_v45 = vld [vmem:[#allocation9] sm:$0x1] }
 0xb73   :  { %v1121_v47 = vpack.c.bf16 %v6048_v46, %v6048_v46 }
 0xb74   :  { %4903 = vmatpush3.bf16.msra.mxu0 %v5256_v22 }
 0xb75   :  { %1128 = vrot.lane.b32.xlu0 %v1121_v47, %s5667_s8  ;;  %4916 = vmatprep.subr.bf16.mxu0 %v5663_v0 }
 0xbe7   :  { %v1129_v48 = vpop.permute.xlu0 %1128 }
 0xbe8   :  { %4897 = vmatmul.mubr.msk.bf16.vlgmr.msra.gmra.mrb[20].mxu1 %vm161_vm1, %v1129_v48 }
 0xbe9   :  { %4912 = vmatprep.mubr.msk.bf16.mxu1 %vm5664_vm0, %v5663_v0  ;;  %4909 = vmatpush3.bf16.msra.mxu1 %v5257_v28  ;;  %v5262_v28 = vld [vmem:[%s6724_s7 + $0x8] sm:$0xff]  }
 0xbea   :  { %4910 = vmatprep.subr.bf16.mxu1 %v5663_v0 }
 0xbed   :  { %4911 = vmatpush3.bf16.msra.mxu1 %v5258_v31 }
 0xbee   :  { %4924 = vmatprep.subr.bf16.mxu1 %v5663_v0 }
 0xc42   :  { %v1088_v50 = vpop.f32.mrb[20].mxu0 }
 0xc43   :  { %v1089_v51 = vadd.f32 %v1088_v50, %v1035_v49  ;;  %v4890_v54 = vpop.f32.mrb[21].mxu0 }
 0xc44   :  { %v1091_v55 = vpop.f32.mrb[22].mxu0  ;;  %v1221_v54 = vld [vmem:[#allocation2 + $0x5] sm:$0x1] }
 0xc45   :  { %1102 = vrot.lane.b32.xlu1 %v1089_v51, %s5666_s13  ;;  %v4891_v56 = vpop.f32.mrb[23].mxu0  ;;  %v1094_v58 = vadd.f32 %v1089_v51, %v1029_v57 }
 0xc47   :  { %v4531_v59 = vmul.f32 -1.442695, %v1094_v58 }
 0xc49   :  { %5365 = vpow2.f32 %v4531_v59 }
 0xc53   :  { %v5366_v60 = vpop.eup %5365 }
 0xc54   :  { %v1098_v62 = vadd.f32 1.0, %v5366_v60 }
 0xc56   :  { %5367 = vrcp.f32 %v1098_v62 }
 0xc60   :  { %v5368_v63 = vpop.eup %5367 }
 0xc61   :  { %v1112_v26 = vsub.f32 1.0, %v5368_v63  ;;  %v1118_v29 = vmul.f32 %v5368_v63, %v6036_v37 }
 0xcb7   :  { %v1103_v2 = vpop.permute.xlu1 %1102 }
 0xcb8   :  { %v1105_v3 = vmul.f32 %v5368_v63, %v1103_v2  ;;  %v1318_v63 = vld [vmem:[#allocation12] sm:$0x1] }
 0xcba   :  { %1107 = vrot.lane.b32.xlu1 %v1105_v3, %s5666_s13 }
 0xcbb   :  { %v1179_v5 = vpop.f32.mrb[20].mxu1 }
 0xcbc   :  { %v1180_v6 = vadd.f32 %v1179_v5, %v1126_v4  ;;  %v4898_v7 = vpop.f32.mrb[21].mxu1 }
 0xcbd   :  { %v1182_v8 = vpop.f32.mrb[22].mxu1  ;;  %v1312_v7 = vld [vmem:[#allocation3 + $0x2] sm:$0x1] }
 0xcbe   :  { %1193 = vrot.lane.b32.xlu0 %v1180_v6, %s5666_s13  ;;  %v4899_v10 = vpop.f32.mrb[23].mxu1  ;;  %v1185_v12 = vadd.f32 %v1180_v6, %v1120_v11 }
 0xcc0   :  { %v4535_v13 = vmul.f32 -1.442695, %v1185_v12 }
 0xcc2   :  { %5369 = vpow2.f32 %v4535_v13 }
 0xccc   :  { %v5370_v14 = vpop.eup %5369 }
 0xccd   :  { %v1189_v15 = vadd.f32 1.0, %v5370_v14 }
 0xccf   :  { %5371 = vrcp.f32 %v1189_v15 }
 0xcd9   :  { %v5372_v18 = vpop.eup %5371 }
 0xcda   :  { %v1203_v35 = vsub.f32 1.0, %v5372_v18  ;;  %v1209_v39 = vmul.f32 %v5372_v18, %v6048_v46 }
 0xd2c   :  { %v1108_v16 = vpop.permute.xlu1 %1107 }
 0xd2d   :  { %v1110_v17 = vadd.f32 %v1108_v16, %v1029_v57 }
 0xd2f   :  { %5373 = vtanh.f32 %v1110_v17 }
 0xd30   :  { %v1194_v19 = vpop.permute.xlu0 %1193 }
 0xd31   :  { %v1196_v20 = vmul.f32 %v5372_v18, %v1194_v19  ;;  %v5259_v18 = vld [vmem:[%s6749_s26] sm:$0xff]   ;;  %v5260_v19 = vld [vmem:[%s6749_s26 + $0x8] sm:$0xff]  }
 0xd33   :  { %1198 = vrot.lane.b32.xlu0 %v1196_v20, %s5666_s13 }
 0xd39   :  { %v5374_v23 = vpop.eup %5373 }
 0xd3a   :  { %1114 = vrot.lane.b32.xlu1 %v5374_v23, %s5667_s8 }
 0xda5   :  { %v1199_v24 = vpop.permute.xlu0 %1198 }
 0xda6   :  { %v1201_v25 = vadd.f32 %v1199_v24, %v1120_v11 }
 0xda8   :  { %5375 = vtanh.f32 %v1201_v25  ;;  %v5261_v25 = vld [vmem:[%s6724_s7] sm:$0xff]  }
 0xdac   :  { %v1115_v27 = vpop.permute.xlu1 %1114 }
 0xdad   :  { %v1117_v30 = vmul.f32 %v1115_v27, %v1112_v26 }
 0xdaf   :  { %v6076_v32 = vadd.f32 %v1118_v29, %v1117_v30 }
 0xdb1   :  { %v1222_v33 = vpack.c.bf16 %v6076_v32, %v6076_v32 }
 0xdb2   :  { %v5376_v34 = vpop.eup %5375 }
 0xdb3   :  { %1205 = vrot.lane.b32.xlu0 %v5376_v34, %s5667_s8  ;;  %1229 = vrot.lane.b32.xlu1 %v1222_v33, %s5667_s8 }
 0xe25   :  { %v1206_v36 = vpop.permute.xlu0 %1205  ;;  %v1230_v38 = vpop.permute.xlu1 %1229 }
 0xe26   :  { %v1208_v40 = vmul.f32 %v1206_v36, %v1203_v35  ;;  %4905 = vmatmul.mubr.msk.bf16.vlgmr.msra.gmra.mrb[24].mxu0 %vm161_vm1, %v1230_v38 }
 0xe27   :  { %4920 = vmatprep.mubr.msk.bf16.mxu0 %vm5664_vm0, %v5663_v0  ;;  %4917 = vmatpush3.bf16.msra.mxu0 %v5259_v18  ;;  %v5264_v18 = vld [vmem:[%s6749_s26 + $0x8] sm:$0xff]  }
 0xe28   :  { %v6088_v41 = vadd.f32 %v1209_v39, %v1208_v40  ;;  %4918 = vmatprep.subr.bf16.mxu0 %v5663_v0 }
 0xe2a   :  { %v1313_v42 = vpack.c.bf16 %v6088_v41, %v6088_v41 }
 0xe2b   :  { %4919 = vmatpush3.bf16.msra.mxu0 %v5260_v19 }
 0xe2c   :  { %1320 = vrot.lane.b32.xlu0 %v1313_v42, %s5667_s8  ;;  %4932 = vmatprep.subr.bf16.mxu0 %v5663_v0 }
 0xe9e   :  { %v1321_v43 = vpop.permute.xlu0 %1320 }
 0xe9f   :  { %4913 = vmatmul.mubr.msk.bf16.vlgmr.msra.gmra.mrb[24].mxu1 %vm161_vm1, %v1321_v43  ;;  %v1419_v43 = vld [vmem:[#allocation9] sm:$0x1] }
 0xea0   :  { %4928 = vmatprep.mubr.msk.bf16.mxu1 %vm5664_vm0, %v5663_v0  ;;  %4925 = vmatpush3.bf16.msra.mxu1 %v5261_v25 }
 0xea1   :  { %4926 = vmatprep.subr.bf16.mxu1 %v5663_v0 }
 0xea4   :  { %4927 = vmatpush3.bf16.msra.mxu1 %v5262_v28 }
 0xea5   :  { %4940 = vmatprep.subr.bf16.mxu1 %v5663_v0 }
 0xef9   :  { %v1280_v47 = vpop.f32.mrb[24].mxu0 }
 0xefa   :  { %v1281_v48 = vadd.f32 %v1280_v47, %v1227_v45  ;;  %v4906_v49 = vpop.f32.mrb[25].mxu0 }
 0xefb   :  { %v1283_v50 = vpop.f32.mrb[26].mxu0 }
 0xefc   :  { %1294 = vrot.lane.b32.xlu1 %v1281_v48, %s5666_s13  ;;  %v4907_v51 = vpop.f32.mrb[27].mxu0  ;;  %v1286_v55 = vadd.f32 %v1281_v48, %v1221_v54 }
 0xefd   :  { %v1413_v51 = vld [vmem:[#allocation2 + $0x6] sm:$0x1] }
 0xefe   :  { %v4539_v56 = vmul.f32 -1.442695, %v1286_v55 }
 0xf00   :  { %5377 = vpow2.f32 %v4539_v56 }
 0xf0a   :  { %v5378_v57 = vpop.eup %5377 }
 0xf0b   :  { %v1290_v58 = vadd.f32 1.0, %v5378_v57 }
 0xf0d   :  { %5379 = vrcp.f32 %v1290_v58 }
 0xf17   :  { %v5380_v59 = vpop.eup %5379 }
 0xf18   :  { %v1304_v23 = vsub.f32 1.0, %v5380_v59  ;;  %v1310_v26 = vmul.f32 %v5380_v59, %v6076_v32 }
 0xf6e   :  { %v1295_v60 = vpop.permute.xlu1 %1294 }
 0xf6f   :  { %v1297_v62 = vmul.f32 %v5380_v59, %v1295_v60 }
 0xf71   :  { %1299 = vrot.lane.b32.xlu1 %v1297_v62, %s5666_s13  ;;  %v1510_v62 = vld [vmem:[#allocation12] sm:$0x1] }
 0xf72   :  { %v1371_v2 = vpop.f32.mrb[24].mxu1 }
 0xf73   :  { %v1372_v3 = vadd.f32 %v1371_v2, %v1318_v63  ;;  %v4914_v4 = vpop.f32.mrb[25].mxu1 }
 0xf74   :  { %v1374_v5 = vpop.f32.mrb[26].mxu1 }
 0xf75   :  { %1385 = vrot.lane.b32.xlu0 %v1372_v3, %s5666_s13  ;;  %v4915_v6 = vpop.f32.mrb[27].mxu1  ;;  %v1377_v8 = vadd.f32 %v1372_v3, %v1312_v7 }
 0xf76   :  { %v1504_v6 = vld [vmem:[#allocation3 + $0x1] sm:$0x1] }
 0xf77   :  { %v4543_v10 = vmul.f32 -1.442695, %v1377_v8 }
 0xf79   :  { %5381 = vpow2.f32 %v4543_v10 }
 0xf83   :  { %v5382_v11 = vpop.eup %5381 }
 0xf84   :  { %v1381_v12 = vadd.f32 1.0, %v5382_v11 }
 0xf86   :  { %5383 = vrcp.f32 %v1381_v12 }
 0xf90   :  { %v5384_v15 = vpop.eup %5383 }
 0xf91   :  { %v1395_v33 = vsub.f32 1.0, %v5384_v15  ;;  %v1401_v36 = vmul.f32 %v5384_v15, %v6088_v41 }
 0xfe3   :  { %v1300_v13 = vpop.permute.xlu1 %1299 }
 0xfe4   :  { %v1302_v14 = vadd.f32 %v1300_v13, %v1221_v54 }
 0xfe6   :  { %5385 = vtanh.f32 %v1302_v14 }
 0xfe7   :  { %v1386_v16 = vpop.permute.xlu0 %1385 }
 0xfe8   :  { %v1388_v17 = vmul.f32 %v5384_v15, %v1386_v16 }
 0xfea   :  { %1390 = vrot.lane.b32.xlu0 %v1388_v17, %s5666_s13  ;;  %v5263_v17 = vld [vmem:[%s6749_s26] sm:$0xff]  }
 0xff0   :  { %v5386_v20 = vpop.eup %5385 }
 0xff1   :  { %1306 = vrot.lane.b32.xlu1 %v5386_v20, %s5667_s8 }
0x105c   :  { %v1391_v21 = vpop.permute.xlu0 %1390 }
0x105d   :  { %v1393_v22 = vadd.f32 %v1391_v21, %v1312_v7 }
0x105f   :  { %5387 = vtanh.f32 %v1393_v22 }
0x1063   :  { %v1307_v24 = vpop.permute.xlu1 %1306 }
0x1064   :  { %v1309_v27 = vmul.f32 %v1307_v24, %v1304_v23  ;;  %v5265_v24 = vld [vmem:[%s6724_s7] sm:$0xff]  }
0x1066   :  { %v6116_v29 = vadd.f32 %v1310_v26, %v1309_v27  ;;  %v5266_v27 = vld [vmem:[%s6724_s7 + $0x8] sm:$0xff]  }
0x1068   :  { %v1414_v30 = vpack.c.bf16 %v6116_v29, %v6116_v29 }
0x1069   :  { %v5388_v31 = vpop.eup %5387 }
0x106a   :  { %1397 = vrot.lane.b32.xlu0 %v5388_v31, %s5667_s8  ;;  %1421 = vrot.lane.b32.xlu1 %v1414_v30, %s5667_s8 }
0x10dc   :  { %v1398_v34 = vpop.permute.xlu0 %1397  ;;  %v1422_v35 = vpop.permute.xlu1 %1421 }
0x10dd   :  { %v1400_v38 = vmul.f32 %v1398_v34, %v1395_v33  ;;  %4921 = vmatmul.mubr.msk.bf16.vlgmr.msra.gmra.mrb[28].mxu0 %vm161_vm1, %v1422_v35 }
0x10de   :  { %4936 = vmatprep.mubr.msk.bf16.mxu0 %vm5664_vm0, %v5663_v0  ;;  %4933 = vmatpush3.bf16.msra.mxu0 %v5263_v17 }
0x10df   :  { %v6128_v39 = vadd.f32 %v1401_v36, %v1400_v38  ;;  %4934 = vmatprep.subr.bf16.mxu0 %v5663_v0 }
0x10e1   :  { %v1505_v40 = vpack.c.bf16 %v6128_v39, %v6128_v39 }
0x10e2   :  { %4935 = vmatpush3.bf16.msra.mxu0 %v5264_v18 }
0x10e3   :  { %1512 = vrot.lane.b32.xlu0 %v1505_v40, %s5667_s8  ;;  %4948 = vmatprep.subr.bf16.mxu0 %v5663_v0 }
0x1155   :  { %v1513_v42 = vpop.permute.xlu0 %1512 }
0x1156   :  { %4929 = vmatmul.mubr.msk.bf16.vlgmr.msra.gmra.mrb[28].mxu1 %vm161_vm1, %v1513_v42 }
0x1157   :  { %4944 = vmatprep.mubr.msk.bf16.mxu1 %vm5664_vm0, %v5663_v0  ;;  %4941 = vmatpush3.bf16.msra.mxu1 %v5265_v24 }
0x1158   :  { %4942 = vmatprep.subr.bf16.mxu1 %v5663_v0 }
0x115b   :  { %4943 = vmatpush3.bf16.msra.mxu1 %v5266_v27 }
0x115c   :  { %4956 = vmatprep.subr.bf16.mxu1 %v5663_v0 }
0x11b0   :  { %v1472_v45 = vpop.f32.mrb[28].mxu0 }
0x11b1   :  { %v1473_v47 = vadd.f32 %v1472_v45, %v1419_v43  ;;  %v4922_v48 = vpop.f32.mrb[29].mxu0  ;;  %v1611_v45 = vld [vmem:[#allocation9] sm:$0x1] }
0x11b2   :  { %v1475_v49 = vpop.f32.mrb[30].mxu0 }
0x11b3   :  { %1486 = vrot.lane.b32.xlu1 %v1473_v47, %s5666_s13  ;;  %v4923_v50 = vpop.f32.mrb[31].mxu0  ;;  %v1478_v54 = vadd.f32 %v1473_v47, %v1413_v51 }
0x11b5   :  { %v4547_v55 = vmul.f32 -1.442695, %v1478_v54  ;;  %v1605_v54 = vld [vmem:[#allocation2 + $0x7] sm:$0x1] }
0x11b7   :  { %5389 = vpow2.f32 %v4547_v55 }
0x11c1   :  { %v5390_v56 = vpop.eup %5389 }
0x11c2   :  { %v1482_v57 = vadd.f32 1.0, %v5390_v56 }
0x11c4   :  { %5391 = vrcp.f32 %v1482_v57 }
0x11ce   :  { %v5392_v58 = vpop.eup %5391 }
0x11cf   :  { %v1496_v22 = vsub.f32 1.0, %v5392_v58  ;;  %v1502_v25 = vmul.f32 %v5392_v58, %v6116_v29 }
0x1225   :  { %v1487_v59 = vpop.permute.xlu1 %1486 }
0x1226   :  { %v1489_v60 = vmul.f32 %v5392_v58, %v1487_v59 }
0x1228   :  { %1491 = vrot.lane.b32.xlu1 %v1489_v60, %s5666_s13 }
0x1229   :  { %v1563_v63 = vpop.f32.mrb[28].mxu1 }
0x122a   :  { %v1564_v2 = vadd.f32 %v1563_v63, %v1510_v62  ;;  %v4930_v3 = vpop.f32.mrb[29].mxu1  ;;  %v1702_v63 = vld [vmem:[#allocation12] sm:$0x1] }
0x122b   :  { %v1566_v4 = vpop.f32.mrb[30].mxu1 }
0x122c   :  { %1577 = vrot.lane.b32.xlu0 %v1564_v2, %s5666_s13  ;;  %v4931_v5 = vpop.f32.mrb[31].mxu1  ;;  %v1569_v7 = vadd.f32 %v1564_v2, %v1504_v6 }
0x122e   :  { %v4551_v8 = vmul.f32 -1.442695, %v1569_v7  ;;  %v1696_v7 = vld [vmem:[#allocation3] sm:$0x1] }
0x1230   :  { %5393 = vpow2.f32 %v4551_v8 }
0x123a   :  { %v5394_v10 = vpop.eup %5393 }
0x123b   :  { %v1573_v11 = vadd.f32 1.0, %v5394_v10 }
0x123d   :  { %5395 = vrcp.f32 %v1573_v11 }
0x1247   :  { %v5396_v14 = vpop.eup %5395 }
0x1248   :  { %v1587_v33 = vsub.f32 1.0, %v5396_v14  ;;  %v1593_v36 = vmul.f32 %v5396_v14, %v6128_v39 }
0x129a   :  { %v1492_v12 = vpop.permute.xlu1 %1491 }
0x129b   :  { %v1494_v13 = vadd.f32 %v1492_v12, %v1413_v51 }
0x129d   :  { %5397 = vtanh.f32 %v1494_v13 }
0x129e   :  { %v1578_v15 = vpop.permute.xlu0 %1577 }
0x129f   :  { %v1580_v16 = vmul.f32 %v5396_v14, %v1578_v15 }
0x12a1   :  { %1582 = vrot.lane.b32.xlu0 %v1580_v16, %s5666_s13 }
0x12a7   :  { %v5398_v19 = vpop.eup %5397 }
0x12a8   :  { %1498 = vrot.lane.b32.xlu1 %v5398_v19, %s5667_s8  ;;  %v5267_v19 = vld [vmem:[%s6727_s10] sm:$0xff]  }
0x1313   :  { %v1583_v20 = vpop.permute.xlu0 %1582 }
0x1314   :  { %v1585_v21 = vadd.f32 %v1583_v20, %v1504_v6  ;;  %v5268_v20 = vld [vmem:[%s6728_s11] sm:$0xff]  }
0x1316   :  { %5399 = vtanh.f32 %v1585_v21  ;;  %v5269_v21 = vld [vmem:[%s6727_s10 + $0x8] sm:$0xff]  }
0x131a   :  { %v1499_v23 = vpop.permute.xlu1 %1498 }
0x131b   :  { %v1501_v26 = vmul.f32 %v1499_v23, %v1496_v22  ;;  %v5270_v22 = vld [vmem:[%s6728_s11 + $0x8] sm:$0xff]  }
0x131d   :  { %v6156_v28 = vadd.f32 %v1502_v25, %v1501_v26  ;;  %v1803_v25 = vld [vmem:[%s6751_s9 + $0x1] sm:$0x1] }
0x131e   :  { %v1804_v26 = vpack.c.bf16 %v1803_v25, %v1803_v25 }
0x131f   :  { %v1606_v30 = vpack.c.bf16 %v6156_v28, %v6156_v28 }
0x1320   :  { %v5400_v31 = vpop.eup %5399 }
0x1321   :  { %1589 = vrot.lane.b32.xlu0 %v5400_v31, %s5667_s8  ;;  %1613 = vrot.lane.b32.xlu1 %v1606_v30, %s5667_s8 }
0x1393   :  { %v1590_v34 = vpop.permute.xlu0 %1589  ;;  %v1614_v35 = vpop.permute.xlu1 %1613 }
0x1394   :  { %v1592_v38 = vmul.f32 %v1590_v34, %v1587_v33  ;;  %4937 = vmatmul.mubr.msk.bf16.vlgmr.msra.gmra.mrb[32].mxu0 %vm161_vm1, %v1614_v35 }
0x1395   :  { %4952 = vmatprep.mubr.msk.bf16.mxu0 %vm5664_vm0, %v5663_v0  ;;  %4949 = vmatpush3.bf16.msra.mxu0 %v5267_v19 }
0x1396   :  { %v6168_v40 = vadd.f32 %v1593_v36, %v1592_v38  ;;  %4950 = vmatprep.subr.bf16.mxu0 %v5663_v0 }
0x1398   :  { %v1697_v42 = vpack.c.bf16 %v6168_v40, %v6168_v40 }
0x1399   :  { %4951 = vmatpush3.bf16.msra.mxu0 %v5269_v21 }
0x139a   :  { %1704 = vrot.lane.b32.xlu0 %v1697_v42, %s5667_s8  ;;  %4974 = vmatprep.subr.bf16.mxu0 %v5663_v0 }
0x139c   :  { %4953 = vmatmul.mubr.msk.bf16.vlgmr.msra.gmra.mrb[36].mxu0 %vm161_vm1, %v1804_v26 }
0x139d   :  { %4978 = vmatprep.mubr.msk.bf16.mxu0 %vm5664_vm0, %v5663_v0 }
0x140c   :  { %v1705_v43 = vpop.permute.xlu0 %1704 }
0x140d   :  { %4945 = vmatmul.mubr.msk.bf16.vlgmr.msra.gmra.mrb[32].mxu1 %vm161_vm1, %v1705_v43 }
0x140e   :  { %4960 = vmatprep.mubr.msk.bf16.mxu1 %vm5664_vm0, %v5663_v0  ;;  %4957 = vmatpush3.bf16.msra.mxu1 %v5268_v20 }
0x140f   :  { %4958 = vmatprep.subr.bf16.mxu1 %v5663_v0 }
0x1412   :  { %4959 = vmatpush3.bf16.msra.mxu1 %v5270_v22 }
0x1413   :  { %4964 = vmatprep.subr.mxu1 %v5663_v0 }
0x1467   :  { %v1664_v47 = vpop.f32.mrb[32].mxu0 }
0x1468   :  { %v1665_v48 = vadd.f32 %v1664_v47, %v1611_v45  ;;  %v4938_v49 = vpop.f32.mrb[33].mxu0 }
0x1469   :  { %v1667_v50 = vpop.f32.mrb[34].mxu0 }
0x146a   :  { %1678 = vrot.lane.b32.xlu1 %v1665_v48, %s5666_s13  ;;  %v4939_v51 = vpop.f32.mrb[35].mxu0  ;;  %v1670_v55 = vadd.f32 %v1665_v48, %v1605_v54  ;;  %v1870_v50 = vld [vmem:[#allocation15] sm:$0x1] }
0x146c   :  { %v4555_v56 = vmul.f32 -1.442695, %v1670_v55 }
0x146e   :  { %5401 = vpow2.f32 %v4555_v56 }
0x146f   :  { %v1859_v45 = vpop.f32.mrb[36].mxu0 }
0x1470   :  { %v4954_v47 = vpop.f32.mrb[37].mxu0 }
0x1471   :  { %v1862_v48 = vpop.f32.mrb[38].mxu0 }
0x1472   :  { %v4955_v49 = vpop.f32.mrb[39].mxu0 }
0x1478   :  { %v5402_v57 = vpop.eup %5401 }
0x1479   :  { %v1674_v58 = vadd.f32 1.0, %v5402_v57 }
0x147b   :  { %5403 = vrcp.f32 %v1674_v58  ;;  %v1809_v58 = vld [vmem:[#allocation14] sm:$0x1] }
0x1485   :  { %v5404_v59 = vpop.eup %5403 }
0x1486   :  { %v1688_v27 = vsub.f32 1.0, %v5404_v59  ;;  %v1694_v31 = vmul.f32 %v5404_v59, %v6156_v28 }
0x14dc   :  { %v1679_v60 = vpop.permute.xlu1 %1678 }
0x14dd   :  { %v1681_v62 = vmul.f32 %v5404_v59, %v1679_v60  ;;  %v1860_v59 = vadd.f32 %v1859_v45, %v1809_v58 }
0x14df   :  { %1683 = vrot.lane.b32.xlu1 %v1681_v62, %s5666_s13 }
0x14e0   :  { %v1755_v2 = vpop.f32.mrb[32].mxu1 }
0x14e1   :  { %v1756_v3 = vadd.f32 %v1755_v2, %v1702_v63  ;;  %v4946_v4 = vpop.f32.mrb[33].mxu1 }
0x14e2   :  { %v1758_v5 = vpop.f32.mrb[34].mxu1 }
0x14e3   :  { %1769 = vrot.lane.b32.xlu0 %v1756_v3, %s5666_s13  ;;  %v4947_v6 = vpop.f32.mrb[35].mxu1  ;;  %v1761_v8 = vadd.f32 %v1756_v3, %v1696_v7 }
0x14e5   :  { %v4559_v10 = vmul.f32 -1.442695, %v1761_v8 }
0x14e7   :  { %5405 = vpow2.f32 %v4559_v10 }
0x14f1   :  { %v5406_v11 = vpop.eup %5405 }
0x14f2   :  { %v1765_v12 = vadd.f32 1.0, %v5406_v11 }
0x14f4   :  { %5407 = vrcp.f32 %v1765_v12 }
0x14fe   :  { %v6179_v15 = vpop.eup %5407 }
0x14ff   :  { %v1779_v10 = vsub.f32 1.0, %v6179_v15 }
0x1551   :  { %v1684_v13 = vpop.permute.xlu1 %1683 }
0x1552   :  { %v1686_v14 = vadd.f32 %v1684_v13, %v1605_v54 }
0x1554   :  { %5409 = vtanh.f32 %v1686_v14 }
0x1555   :  { %v1770_v16 = vpop.permute.xlu0 %1769 }
0x1556   :  { %v1772_v17 = vmul.f32 %v6179_v15, %v1770_v16 }
0x1558   :  { %1774 = vrot.lane.b32.xlu0 %v1772_v17, %s5666_s13 }
0x155e   :  { %v5410_v18 = vpop.eup %5409 }
0x155f   :  { %1690 = vrot.lane.b32.xlu1 %v5410_v18, %s5667_s8 }
0x15ca   :  { %v1775_v23 = vpop.permute.xlu0 %1774 }
0x15cb   :  { %v1777_v24 = vadd.f32 %v1775_v23, %v1696_v7 }
0x15cd   :  { %5411 = vtanh.f32 %v1777_v24 }
0x15d1   :  { %v1691_v30 = vpop.permute.xlu1 %1690 }
0x15d2   :  { %v1693_v33 = vmul.f32 %v1691_v30, %v1688_v27 }
0x15d4   :  { %v6207_v34 = vadd.f32 %v1694_v31, %v1693_v33 }
0x15d6   :  { %v1865_v35 = vpack.c.bf16 %v6207_v34, %v6207_v34 }
0x15d7   :  { %v5412_v36 = vpop.eup %5411 }
0x15d8   :  { %1781 = vrot.lane.b32.xlu0 %v5412_v36, %s5667_s8  ;;  %1872 = vrot.lane.b32.xlu1 %v1865_v35, %s5667_s8 }
0x15dc   :  { %443 = vrot.lane.b32.xlu0 %v5917_v1, %s5667_s8 }
0x15e0   :  { %636 = vrot.lane.b32.xlu0 %v5956_v53, %s5667_s8 }
0x15e4   :  { %828 = vrot.lane.b32.xlu0 %v5996_v44, %s5667_s8 }
0x15e8   :  { %1020 = vrot.lane.b32.xlu0 %v6036_v37, %s5667_s8 }
0x15ec   :  { %1212 = vrot.lane.b32.xlu0 %v6076_v32, %s5667_s8 }
0x15f0   :  { %1404 = vrot.lane.b32.xlu0 %v6116_v29, %s5667_s8 }
0x15f4   :  { %1596 = vrot.lane.b32.xlu0 %v6156_v28, %s5667_s8 }
0x15f8   :  { %1788 = vrot.lane.b32.xlu0 %v6207_v34, %s5667_s8 }
0x164a   :  { %v1782_v1 = vpop.permute.xlu0 %1781  ;;  %v1873_v53 = vpop.permute.xlu1 %1872 }
0x164b   :  { %4961 = vmatmul.mubr.msk.bf16.vlgmr.msra.gmra.mrb[36].mxu1 %vm161_vm1, %v1873_v53  ;;  %v1784_v11 = vmul.f32 %v1782_v1, %v1779_v10  ;;  %v5273_v1 = vld [vmem:[%s6732_s15] sm:$0xff]  }
0x164c   :  { %4966 = vmatprep.mubr.msk.f32.mxu1 %vm5664_vm0, %v5663_v0  ;;  %4975 = vmatpush3.bf16.msra.mxu0 %v5273_v1 }
0x164d   :  { %4976 = vmatprep.subr.bf16.mxu0 %v5663_v0 }
0x164e   :  { %v444_v44 = vpop.permute.xlu0 %443 }
0x164f   :  { %447 = vst.msk [vmem:[#allocation4] sm:$0x1] %vm446_vm3, %v444_v44 }
0x1652   :  { %v637_v37 = vpop.permute.xlu0 %636 }
0x1653   :  { %639 = vst.msk [vmem:[#allocation4 + $0x1] sm:$0x1] %vm446_vm3, %v637_v37  ;;  %v5271_v37 = vld [vmem:[%s6731_s14] sm:$0xff]  }
0x1656   :  { %v829_v32 = vpop.permute.xlu0 %828 }
0x1657   :  { %831 = vst.msk [vmem:[#allocation4 + $0x2] sm:$0x1] %vm446_vm3, %v829_v32 }
0x165a   :  { %v1021_v29 = vpop.permute.xlu0 %1020 }
0x165b   :  { %1023 = vst.msk [vmem:[#allocation4 + $0x3] sm:$0x1] %vm446_vm3, %v1021_v29  ;;  %v5272_v29 = vld [vmem:[%s6731_s14 + $0x8] sm:$0xff]  }
0x165e   :  { %v1213_v28 = vpop.permute.xlu0 %1212 }
0x165f   :  { %1215 = vst.msk [vmem:[#allocation4 + $0x4] sm:$0x1] %vm446_vm3, %v1213_v28 }
0x1662   :  { %v1405_v38 = vpop.permute.xlu0 %1404 }
0x1663   :  { %1407 = vst.msk [vmem:[#allocation4 + $0x5] sm:$0x1] %vm446_vm3, %v1405_v38  ;;  %v5274_v38 = vld [vmem:[%s6732_s15 + $0x8] sm:$0xff]  }
0x1664   :  { %4977 = vmatpush3.bf16.msra.mxu0 %v5274_v38 }
0x1665   :  { %4990 = vmatprep.subr.bf16.mxu0 %v5663_v0 }
0x1666   :  { %v1597_v42 = vpop.permute.xlu0 %1596 }
0x1667   :  { %1599 = vst.msk [vmem:[#allocation4 + $0x6] sm:$0x1] %vm446_vm3, %v1597_v42 }
0x166a   :  { %v1789_v43 = vpop.permute.xlu0 %1788 }
0x166b   :  { %1791 = vst.msk [vmem:[#allocation4 + $0x7] sm:$0x1] %vm446_vm3, %v1789_v43 }
0x1672   :  { %v1797_v20 = vld [vmem:[#allocation4] sm:$0xff] }
0x171e   :  { %v1923_v51 = vpop.f32.mrb[36].mxu1 }
0x171f   :  { %v1924_v54 = vadd.f32 %v1923_v51, %v1870_v50  ;;  %v4962_v55 = vpop.f32.mrb[37].mxu1  ;;  %v5275_v51 = vld [vmem:[%s6734_s17] sm:$0xff]  }
0x1720   :  { %v1926_v56 = vpop.f32.mrb[38].mxu1 }
0x1721   :  { %1937 = vrot.lane.b32.xlu1 %v1924_v54, %s5666_s13  ;;  %v4963_v57 = vpop.f32.mrb[39].mxu1  ;;  %v1929_v60 = vadd.f32 %v1924_v54, %v1860_v59  ;;  %v5276_v54 = vld [vmem:[%s6734_s17 + $0x8] sm:$0xff]   ;;  %v2243_v56 = vld [vmem:[%s6733_s16] sm:$0x1] }
0x1723   :  { %v4566_v62 = vmul.f32 -1.442695, %v1929_v60 }
0x1725   :  { %5413 = vpow2.f32 %v4566_v62 }
0x172f   :  { %v5414_v63 = vpop.eup %5413 }
0x1730   :  { %v1933_v2 = vadd.f32 1.0, %v5414_v63 }
0x1732   :  { %5415 = vrcp.f32 %v1933_v2  ;;  %v5277_v2 = vld [vmem:[%s6728_s11] sm:$0xff]  }
0x173c   :  { %v5416_v3 = vpop.eup %5415 }
0x173d   :  { %v1953_v12 = vmul.f32 %v5416_v3, %v6207_v34 }
0x1793   :  { %v1938_v4 = vpop.permute.xlu1 %1937 }
0x1794   :  { %v1940_v5 = vmul.f32 %v5416_v3, %v1938_v4  ;;  %v5278_v4 = vld [vmem:[%s6728_s11 + $0x8] sm:$0xff]  }
0x1796   :  { %1942 = vrot.lane.b32.xlu1 %v1940_v5, %s5666_s13  ;;  %v2251_v5 = vld [vmem:[%s6735_s18] sm:$0x1] }
0x1808   :  { %v1943_v6 = vpop.permute.xlu1 %1942 }
0x1809   :  { %v1945_v7 = vadd.f32 %v1943_v6, %v1860_v59 }
0x180b   :  { %5417 = vtanh.f32 %v1945_v7 }
0x1815   :  { %v5418_v8 = vpop.eup %5417 }
0x1816   :  { %1949 = vrot.lane.b32.xlu1 %v5418_v8, %s5667_s8 }
0x181a   :  { %449 = vrot.lane.b32.xlu1 %v5928_v9, %s5667_s8  ;;  %v1785_v9 = vmul.f32 %v6179_v15, %v6168_v40 }
0x181e   :  { %641 = vrot.lane.b32.xlu1 %v5968_v61, %s5667_s8  ;;  %v1786_v61 = vadd.f32 %v1785_v9, %v1784_v11 }
0x1822   :  { %833 = vrot.lane.b32.xlu1 %v6008_v52, %s5667_s8  ;;  %v1947_v52 = vsub.f32 1.0, %v5416_v3 }
0x1826   :  { %1025 = vrot.lane.b32.xlu1 %v6048_v46, %s5667_s8 }
0x182a   :  { %1217 = vrot.lane.b32.xlu1 %v6088_v41, %s5667_s8 }
0x182e   :  { %1409 = vrot.lane.b32.xlu1 %v6128_v39, %s5667_s8 }
0x1832   :  { %1601 = vrot.lane.b32.xlu1 %v6168_v40, %s5667_s8 }
0x1836   :  { %1793 = vrot.lane.b32.xlu1 %v1786_v61, %s5667_s8 }
0x1888   :  { %v1950_v46 = vpop.permute.xlu1 %1949 }
0x1889   :  { %v1952_v41 = vmul.f32 %v1950_v46, %v1947_v52 }
0x188b   :  { %v6262_v13 = vadd.f32 %v1953_v12, %v1952_v41  ;;  %v1801_v41 = vlaneseq }
0x188c   :  { %v450_v14 = vpop.permute.xlu1 %449 }
0x188d   :  { %452 = vst.msk [vmem:[#allocation5 + $0x7] sm:$0x1] %vm446_vm3, %v450_v14  ;;  %1957 = vrot.lane.b32.xlu0 %v6262_v13, %s5667_s8  ;;  %v2120_v36 = vpack.c.bf16 %v6262_v13, %v6262_v13  ;;  %v6344_v14 = vand.u32 127, %v1801_v41  ;;  %v5281_v41 = vld [vmem:[%s6731_s14] sm:$0xff]  }
0x1890   :  { %v642_v39 = vpop.permute.xlu1 %641 }
0x1891   :  { %644 = vst.msk [vmem:[#allocation5 + $0x6] sm:$0x1] %vm446_vm3, %v642_v39 }
0x1894   :  { %v834_v40 = vpop.permute.xlu1 %833 }
0x1895   :  { %836 = vst.msk [vmem:[#allocation5 + $0x5] sm:$0x1] %vm446_vm3, %v834_v40 }
0x1898   :  { %v1026_v15 = vpop.permute.xlu1 %1025 }
0x1899   :  { %1028 = vst.msk [vmem:[#allocation5 + $0x4] sm:$0x1] %vm446_vm3, %v1026_v15 }
0x189c   :  { %v1218_v16 = vpop.permute.xlu1 %1217 }
0x189d   :  { %1220 = vst.msk [vmem:[#allocation5 + $0x3] sm:$0x1] %vm446_vm3, %v1218_v16 }
0x18a0   :  { %v1410_v17 = vpop.permute.xlu1 %1409 }
0x18a1   :  { %1412 = vst.msk [vmem:[#allocation5 + $0x2] sm:$0x1] %vm446_vm3, %v1410_v17 }
0x18a4   :  { %v1602_v18 = vpop.permute.xlu1 %1601 }
0x18a5   :  { %1604 = vst.msk [vmem:[#allocation5 + $0x1] sm:$0x1] %vm446_vm3, %v1602_v18 }
0x18a8   :  { %v1794_v19 = vpop.permute.xlu1 %1793 }
0x18a9   :  { %1796 = vst.msk [vmem:[#allocation5] sm:$0x1] %vm446_vm3, %v1794_v19 }
0x18b0   :  { %v1798_v21 = vld [vmem:[#allocation5] sm:$0xff] }
0x18b1   :  { %v1799_v22 = vadd.f32 %v1798_v21, %v1797_v20 }
0x18b3   :  { %1800 = vst.msk [vmem:[#allocation4] sm:$0xff] %vm161_vm1, %v1799_v22 }
0x18ba   :  { %v6275_v23 = vld [vmem:[#allocation4] sm:$0xff] }
0x18bb   :  { %4965 = vmatpush3.xpose.msk.msra.mxu1 %vm161_vm1, %v6275_v23 }
0x18bc   :  { %4969 = vmatprep.subr.mxu1 %v5663_v0 }
0x18ff   :  { %v1958_v24 = vpop.permute.xlu0 %1957 }
0x1900   :  { %4967 = vmatmul.mubr.msk.f32.vlgmr.msra.gmra.mrb[40].mxu1 %vm161_vm1, %v1958_v24 }
0x1901   :  { %4970 = vmatpush3.msra.mxu1 %v6275_v23  ;;  %4971 = vmatprep.mubr.msk.f32.mxu1 %vm5664_vm0, %v5663_v0 }
0x1902   :  { %4982 = vmatprep.subr.bf16.mxu1 %v5663_v0 }
0x19d3   :  { %v2030_v25 = vpop.f32.mrb[40].mxu1 }
0x19d4   :  { %v4968_v26 = vpop.f32.mrb[41].mxu1  ;;  %v2035_v27 = vsel %vm2034_vm4, %v2030_v25, -inf }
0x19d5   :  { %2036 = vmax.xlane.f32.xlu1 %v2035_v27 }
0x1a62   :  { %v2037_v30 = vpop.xlane.xlu1 %2036 }
0x1a63   :  { %v2038_v31 = vsub.f32 %v2030_v25, %v2037_v30  ;;  %v2408_v30 = vld [vmem:[#allocation15] sm:$0x1] }
0x1a65   :  { %v2039_v33 = vmul.f32 1.442695, %v2038_v31 }
0x1a67   :  { %5419 = vpow2.f32 %v2039_v33 }
0x1a71   :  { %v5420_v34 = vpop.eup %5419 }
0x1a72   :  { %v2041_v35 = vsel %vm2034_vm4, %v5420_v34, 0.0 }
0x1a73   :  { %2042 = vadd.xlane.f32.xlu0 %v2041_v35  ;;  %v5280_v35 = vld [vmem:[%s6727_s10 + $0x8] sm:$0xff]  }
0x1a89   :  { %2186 = vrot.lane.b32.xlu0 %v2120_v36, %s5667_s8 }
0x1b00   :  { %v2043_v53 = vpop.xlane.xlu0 %2042 }
0x1b01   :  { %5421 = vrcp.f32 %v2043_v53 }
0x1b04   :  { %v2187_v28 = vpop.permute.xlu0 %2186 }
0x1b0b   :  { %v5422_v44 = vpop.eup %5421 }
0x1b0c   :  { %v2045_v32 = vmul.f32 %v5422_v44, %v5420_v34  ;;  %v5279_v34 = vld [vmem:[%s6727_s10] sm:$0xff]  }
0x1b0e   :  { %4972 = vmatmul.mubr.msk.f32.vlgmr.msra.gmra.mrb[42].mxu1 %vm2046_vm5, %v2045_v32 }
0x1b0f   :  { %4983 = vmatpush3.bf16.msra.mxu1 %v5271_v37  ;;  %4986 = vmatprep.mubr.msk.bf16.mxu1 %vm5664_vm0, %v5663_v0 }
0x1b10   :  { %4984 = vmatprep.subr.bf16.mxu1 %v5663_v0 }
0x1b13   :  { %4985 = vmatpush3.bf16.msra.mxu1 %v5272_v29 }
0x1b14   :  { %4998 = vmatprep.subr.bf16.mxu1 %v5663_v0 }
0x1b16   :  { %4987 = vmatmul.mubr.msk.bf16.vlgmr.msra.gmra.mrb[44].mxu1 %vm161_vm1, %v2187_v28 }
0x1b17   :  { %5002 = vmatprep.mubr.msk.bf16.mxu1 %vm5664_vm0, %v5663_v0  ;;  %4999 = vmatpush3.bf16.msra.mxu1 %v5279_v34 }
0x1b18   :  { %5000 = vmatprep.subr.bf16.mxu1 %v5663_v0 }
0x1b1b   :  { %5001 = vmatpush3.bf16.msra.mxu1 %v5280_v35 }
0x1b1c   :  { %5014 = vmatprep.subr.mxu1 %v5663_v0 }
0x1be1   :  { %v2116_v42 = vpop.f32.mrb[42].mxu1 }
0x1be2   :  { %v2125_v43 = vpack.c.bf16 %v2116_v42, %v2116_v42  ;;  %v4973_v45 = vpop.f32.mrb[43].mxu1 }
0x1be4   :  { %4979 = vmatmul.mubr.msk.bf16.vlgmr.msra.gmra.mrb[40].mxu0 %vm161_vm1, %v2125_v43 }
0x1be5   :  { %4994 = vmatprep.mubr.msk.bf16.mxu0 %vm5664_vm0, %v5663_v0  ;;  %4991 = vmatpush3.bf16.msra.mxu0 %v5275_v51 }
0x1be6   :  { %4992 = vmatprep.subr.bf16.mxu0 %v5663_v0 }
0x1be9   :  { %v2237_v47 = vpop.f32.mrb[44].mxu1  ;;  %4993 = vmatpush3.bf16.msra.mxu0 %v5276_v54 }
0x1bea   :  { %v4988_v48 = vpop.f32.mrb[45].mxu1  ;;  %5006 = vmatprep.subr.bf16.mxu0 %v5663_v0 }
0x1beb   :  { %v2240_v49 = vpop.f32.mrb[46].mxu1 }
0x1bec   :  { %v4989_v50 = vpop.f32.mrb[47].mxu1 }
0x1cb7   :  { %v2179_v55 = vpop.f32.mrb[40].mxu0 }
0x1cb8   :  { %v2238_v57 = vadd.f32 %v2237_v47, %v2179_v55  ;;  %v4980_v58 = vpop.f32.mrb[41].mxu0 }
0x1cb9   :  { %v2182_v59 = vpop.f32.mrb[42].mxu0 }
0x1cba   :  { %v2244_v60 = vadd.f32 %v2243_v56, %v2238_v57  ;;  %v4981_v62 = vpop.f32.mrb[43].mxu0 }
0x1cbc   :  { %5423 = vtanh.f32 %v2244_v60 }
0x1cc6   :  { %v5424_v63 = vpop.eup %5423 }
0x1cc7   :  { %v2246_v3 = vpack.c.bf16 %v5424_v63, %v5424_v63 }
0x1cc9   :  { %4995 = vmatmul.mubr.msk.bf16.vlgmr.msra.gmra.mrb[44].mxu0 %vm161_vm1, %v2246_v3 }
0x1cca   :  { %5007 = vmatpush3.bf16.msra.mxu0 %v5277_v2  ;;  %5010 = vmatprep.mubr.msk.bf16.mxu0 %vm5664_vm0, %v5663_v0 }
0x1ccb   :  { %5008 = vmatprep.subr.bf16.mxu0 %v5663_v0 }
0x1cce   :  { %5009 = vmatpush3.bf16.msra.mxu0 %v5278_v4 }
0x1ccf   :  { %5024 = vmatprep.subr.bf16.mxu0 %v5663_v0 }
0x1cd1   :  { %5011 = vmatmul.mubr.msk.bf16.vlgmr.msra.gmra.mrb[48].mxu0 %vm161_vm1, %v2187_v28  ;;  %v2348_v28 = vld [vmem:[#allocation14] sm:$0x1] }
0x1cd2   :  { %5028 = vmatprep.mubr.msk.bf16.mxu0 %vm5664_vm0, %v5663_v0 }
0x1d9c   :  { %v2301_v6 = vpop.f32.mrb[44].mxu0 }
0x1d9d   :  { %v2302_v7 = vadd.f32 %v2301_v6, %v2251_v5  ;;  %v4996_v8 = vpop.f32.mrb[45].mxu0 }
0x1d9e   :  { %v2304_v10 = vpop.f32.mrb[46].mxu0 }
0x1d9f   :  { %v4997_v11 = vpop.f32.mrb[47].mxu0  ;;  %v2308_v9 = vsel %vm2307_vm6, %v2302_v7, -inf }
0x1da0   :  { %2309 = vmax.xlane.f32.xlu1 %v2308_v9 }
0x1da4   :  { %v2455_v61 = vpop.f32.mrb[48].mxu0 }
0x1da5   :  { %v5012_v52 = vpop.f32.mrb[49].mxu0  ;;  %v2456_v31 = vadd.f32 %v2455_v61, %v2408_v30  ;;  %v2773_v30 = vld [vmem:[%s6733_s16] sm:$0x1] }
0x1da6   :  { %v2458_v46 = vpop.f32.mrb[50].mxu0  ;;  %v5283_v52 = vld [vmem:[%s6732_s15] sm:$0xff]  }
0x1da7   :  { %v5013_v12 = vpop.f32.mrb[51].mxu0  ;;  %5025 = vmatpush3.bf16.msra.mxu0 %v5283_v52 }
0x1da8   :  { %5026 = vmatprep.subr.bf16.mxu0 %v5663_v0 }
0x1e2d   :  { %v2310_v39 = vpop.xlane.xlu1 %2309 }
0x1e2e   :  { %v2311_v40 = vsub.f32 %v2302_v7, %v2310_v39  ;;  %vm2319_vm7 = vcmp.ge.f32.partialorder %v2302_v7, %v2310_v39 }
0x1e2f   :  { %v2320_v15 = vsel %vm2319_vm7, %v6344_v14, 64 }
0x1e30   :  { %v2312_v16 = vmul.f32 1.442695, %v2311_v40  ;;  %v2321_v17 = vsel %vm2307_vm6, %v2320_v15, 2147483647  ;;  %v5282_v40 = vld [vmem:[%s6731_s14 + $0x8] sm:$0xff]  }
0x1e31   :  { %v2323_v18 = vshra.s32 %v2321_v17, 16  ;;  %v2322_v22 = vand.u32 65535, %v2321_v17 }
0x1e32   :  { %5425 = vpow2.f32 %v2312_v16  ;;  %v5284_v16 = vld [vmem:[%s6732_s15 + $0x8] sm:$0xff]  }
0x1e33   :  { %v2325_v19 = vcvt.s32.f32 %v2323_v18  ;;  %v2324_v25 = vcvt.s32.f32 %v2322_v22  ;;  %5027 = vmatpush3.bf16.msra.mxu0 %v5284_v16 }
0x1e34   :  { %5040 = vmatprep.subr.bf16.mxu0 %v5663_v0 }
0x1e35   :  { %2326 = vmin.xlane.f32.xlu1 %v2325_v19 }
0x1e3c   :  { %v5426_v20 = vpop.eup %5425 }
0x1e3d   :  { %v2314_v21 = vsel %vm2307_vm6, %v5426_v20, 0.0 }
0x1e3e   :  { %2315 = vadd.xlane.f32.xlu1 %v2314_v21 }
0x1ec2   :  { %v2327_v24 = vpop.xlane.xlu1 %2326 }
0x1ec3   :  { %vm2328_vm8 = vcmp.eq.f32.partialorder %v2325_v19, %v2327_v24  ;;  %v2333_v36 = vcvt.f32.s32 %v2327_v24 }
0x1ec4   :  { %v2329_v26 = vsel %vm2328_vm8, %v2324_v25, inf  ;;  %v5285_v25 = vld [vmem:[%s6734_s17] sm:$0xff]  }
0x1ec5   :  { %2330 = vmin.xlane.f32.xlu1 %v2329_v26  ;;  %v2334_v53 = vshll.u32 %v2333_v36, 16  ;;  %v5286_v26 = vld [vmem:[%s6734_s17 + $0x8] sm:$0xff]  }
0x1ecb   :  { %v2316_v27 = vpop.xlane.xlu1 %2315 }
0x1ecc   :  { %5427 = vrcp.f32 %v2316_v27 }
0x1ed6   :  { %v5428_v33 = vpop.eup %5427  ;;  %2469 = vrot.lane.b32.xlu1 %v2456_v31, %s5666_s13 }
0x1ed7   :  { %5198 = vpush %v5428_v33 }
0x1f08   :  { %s5199_s12 = spop %5198 }
0x1f09   :  { %2340 = sst [smem:[#allocation18]] %s5199_s12 }
0x1f52   :  { %v2331_v1 = vpop.xlane.xlu1 %2330 }
0x1f53   :  { %v2332_v44 = vcvt.f32.s32 %v2331_v1 }
0x1f55   :  { %v2335_v37 = vadd.s32 %v2334_v53, %v2332_v44  ;;  %v5287_v53 = vld [vmem:[%s6728_s11] sm:$0xff]  }
0x1f56   :  { %v2470_v55 = vpop.permute.xlu1 %2469 }
0x1f57   :  { %5200 = vpush %v2335_v37  ;;  %v5288_v37 = vld [vmem:[%s6728_s11 + $0x8] sm:$0xff]  }
0x1f88   :  { %s5201_s28 = spop %5200 }
0x1f89   :  { %2338 = sst [smem:[#allocation17]] %s5201_s28  ;;  %s2341_s7 = scalar_lea.vmem %s6751_s9, %s5201_s28 }
0x1f8a   :  { %v2342_v32 = vld [vmem:[%s2341_s7] sm:$0x1] }
0x1f8b   :  { %v2343_v29 = vpack.c.bf16 %v2342_v32, %v2342_v32  ;;  %v2781_v32 = vld [vmem:[%s6735_s18] sm:$0x1] }
0x1f8d   :  { %5003 = vmatmul.mubr.msk.bf16.vlgmr.msra.gmra.mrb[48].mxu1 %vm161_vm1, %v2343_v29 }
0x1f8e   :  { %5015 = vmatpush3.xpose.msk.msra.mxu1 %vm161_vm1, %v6275_v23  ;;  %5016 = vmatprep.mubr.msk.f32.mxu1 %vm5664_vm0, %v5663_v0 }
0x1f8f   :  { %5019 = vmatprep.subr.mxu1 %v5663_v0 }
0x2060   :  { %v2398_v38 = vpop.f32.mrb[48].mxu1 }
0x2061   :  { %v2399_v42 = vadd.f32 %v2398_v38, %v2348_v28  ;;  %v5004_v43 = vpop.f32.mrb[49].mxu1 }
0x2062   :  { %v2401_v45 = vpop.f32.mrb[50].mxu1 }
0x2063   :  { %v2461_v47 = vadd.f32 %v2456_v31, %v2399_v42  ;;  %v5005_v48 = vpop.f32.mrb[51].mxu1 }
0x2065   :  { %v4585_v49 = vmul.f32 -1.442695, %v2461_v47 }
0x2067   :  { %5429 = vpow2.f32 %v4585_v49 }
0x2071   :  { %v5430_v50 = vpop.eup %5429 }
0x2072   :  { %v2465_v51 = vadd.f32 1.0, %v5430_v50 }
0x2074   :  { %5431 = vrcp.f32 %v2465_v51 }
0x207e   :  { %v5432_v54 = vpop.eup %5431 }
0x207f   :  { %v2472_v56 = vmul.f32 %v5432_v54, %v2470_v55  ;;  %v2479_v60 = vsub.f32 1.0, %v5432_v54  ;;  %v2485_v63 = vmul.f32 %v5432_v54, %v6262_v13 }
0x2081   :  { %2474 = vrot.lane.b32.xlu0 %v2472_v56, %s5666_s13 }
0x20f3   :  { %v2475_v57 = vpop.permute.xlu0 %2474 }
0x20f4   :  { %v2477_v58 = vadd.f32 %v2475_v57, %v2399_v42 }
0x20f6   :  { %5433 = vtanh.f32 %v2477_v58 }
0x2100   :  { %v5434_v59 = vpop.eup %5433 }
0x2101   :  { %2481 = vrot.lane.b32.xlu0 %v5434_v59, %s5667_s8 }
0x2173   :  { %v2482_v62 = vpop.permute.xlu0 %2481 }
0x2174   :  { %v2484_v2 = vmul.f32 %v2482_v62, %v2479_v60 }
0x2176   :  { %v6370_v3 = vadd.f32 %v2485_v63, %v2484_v2 }
0x2178   :  { %2489 = vrot.lane.b32.xlu0 %v6370_v3, %s5667_s8  ;;  %v2650_v7 = vpack.c.bf16 %v6370_v3, %v6370_v3 }
0x21ea   :  { %v2490_v4 = vpop.permute.xlu0 %2489 }
0x21eb   :  { %5017 = vmatmul.mubr.msk.f32.vlgmr.msra.gmra.mrb[52].mxu1 %vm161_vm1, %v2490_v4 }
0x21ec   :  { %5020 = vmatpush3.msra.mxu1 %v6275_v23  ;;  %5021 = vmatprep.mubr.msk.f32.mxu1 %vm5664_vm0, %v5663_v0 }
0x21ed   :  { %5032 = vmatprep.subr.bf16.mxu1 %v5663_v0 }
0x22be   :  { %v2562_v5 = vpop.f32.mrb[52].mxu1 }
0x22bf   :  { %v5018_v6 = vpop.f32.mrb[53].mxu1  ;;  %v2566_v13 = vsel %vm2034_vm4, %v2562_v5, -inf }
0x22c0   :  { %2567 = vmax.xlane.f32.xlu0 %v2566_v13  ;;  %v2937_v13 = vld [vmem:[#allocation15] sm:$0x1] }
0x22d6   :  { %2716 = vrot.lane.b32.xlu0 %v2650_v7, %s5667_s8 }
0x234d   :  { %v2568_v8 = vpop.xlane.xlu0 %2567 }
0x234e   :  { %v2569_v10 = vsub.f32 %v2562_v5, %v2568_v8 }
0x2350   :  { %v2570_v11 = vmul.f32 1.442695, %v2569_v10  ;;  %v5289_v10 = vld [vmem:[%s6727_s10] sm:$0xff]  }
0x2351   :  { %v2717_v15 = vpop.permute.xlu0 %2716 }
0x2352   :  { %5435 = vpow2.f32 %v2570_v11  ;;  %v5290_v11 = vld [vmem:[%s6727_s10 + $0x8] sm:$0xff]  }
0x235c   :  { %v5436_v9 = vpop.eup %5435 }
0x235d   :  { %v2572_v61 = vsel %vm2034_vm4, %v5436_v9, 0.0 }
0x235e   :  { %2573 = vadd.xlane.f32.xlu1 %v2572_v61 }
0x23eb   :  { %v2574_v46 = vpop.xlane.xlu1 %2573 }
0x23ec   :  { %5437 = vrcp.f32 %v2574_v46 }
0x23f6   :  { %v5438_v12 = vpop.eup %5437 }
0x23f7   :  { %v2576_v39 = vmul.f32 %v5438_v12, %v5436_v9 }
0x23f9   :  { %5022 = vmatmul.mubr.msk.f32.vlgmr.msra.gmra.mrb[54].mxu1 %vm2046_vm5, %v2576_v39 }
0x23fa   :  { %5033 = vmatpush3.bf16.msra.mxu1 %v5281_v41  ;;  %5036 = vmatprep.mubr.msk.bf16.mxu1 %vm5664_vm0, %v5663_v0 }
0x23fb   :  { %5034 = vmatprep.subr.bf16.mxu1 %v5663_v0 }
0x23fe   :  { %5035 = vmatpush3.bf16.msra.mxu1 %v5282_v40  ;;  %v2877_v40 = vld [vmem:[#allocation14] sm:$0x1] }
0x23ff   :  { %5048 = vmatprep.subr.bf16.mxu1 %v5663_v0 }
0x2401   :  { %5037 = vmatmul.mubr.msk.bf16.vlgmr.msra.gmra.mrb[56].mxu1 %vm161_vm1, %v2717_v15 }
0x2402   :  { %5052 = vmatprep.mubr.msk.bf16.mxu1 %vm5664_vm0, %v5663_v0  ;;  %5049 = vmatpush3.bf16.msra.mxu1 %v5289_v10 }
0x2403   :  { %5050 = vmatprep.subr.bf16.mxu1 %v5663_v0 }
0x2406   :  { %5051 = vmatpush3.bf16.msra.mxu1 %v5290_v11 }
0x2407   :  { %5064 = vmatprep.subr.mxu1 %v5663_v0 }
0x24cc   :  { %v2646_v17 = vpop.f32.mrb[54].mxu1 }
0x24cd   :  { %v2655_v18 = vpack.c.bf16 %v2646_v17, %v2646_v17  ;;  %v5023_v19 = vpop.f32.mrb[55].mxu1 }
0x24cf   :  { %5029 = vmatmul.mubr.msk.bf16.vlgmr.msra.gmra.mrb[52].mxu0 %vm161_vm1, %v2655_v18 }
0x24d0   :  { %5044 = vmatprep.mubr.msk.bf16.mxu0 %vm5664_vm0, %v5663_v0  ;;  %5041 = vmatpush3.bf16.msra.mxu0 %v5285_v25 }
0x24d1   :  { %5042 = vmatprep.subr.bf16.mxu0 %v5663_v0 }
0x24d4   :  { %v2767_v20 = vpop.f32.mrb[56].mxu1  ;;  %5043 = vmatpush3.bf16.msra.mxu0 %v5286_v26 }
0x24d5   :  { %v5038_v21 = vpop.f32.mrb[57].mxu1  ;;  %5056 = vmatprep.subr.bf16.mxu0 %v5663_v0 }
0x24d6   :  { %v2770_v22 = vpop.f32.mrb[58].mxu1 }
0x24d7   :  { %v5039_v24 = vpop.f32.mrb[59].mxu1 }
0x25a2   :  { %v2709_v27 = vpop.f32.mrb[52].mxu0 }
0x25a3   :  { %v2768_v31 = vadd.f32 %v2767_v20, %v2709_v27  ;;  %v5030_v33 = vpop.f32.mrb[53].mxu0 }
0x25a4   :  { %v2712_v34 = vpop.f32.mrb[54].mxu0 }
0x25a5   :  { %v2774_v35 = vadd.f32 %v2773_v30, %v2768_v31  ;;  %v5031_v36 = vpop.f32.mrb[55].mxu0 }
0x25a7   :  { %5439 = vtanh.f32 %v2774_v35 }
0x25b1   :  { %v5440_v1 = vpop.eup %5439 }
0x25b2   :  { %v2776_v44 = vpack.c.bf16 %v5440_v1, %v5440_v1 }
0x25b4   :  { %5045 = vmatmul.mubr.msk.bf16.vlgmr.msra.gmra.mrb[56].mxu0 %vm161_vm1, %v2776_v44 }
0x25b5   :  { %5057 = vmatpush3.bf16.msra.mxu0 %v5287_v53  ;;  %5060 = vmatprep.mubr.msk.bf16.mxu0 %vm5664_vm0, %v5663_v0 }
0x25b6   :  { %5058 = vmatprep.subr.bf16.mxu0 %v5663_v0 }
0x25b9   :  { %5059 = vmatpush3.bf16.msra.mxu0 %v5288_v37 }
0x25ba   :  { %5069 = vmatprep.subr.mxu0 %v5663_v0 }
0x25bc   :  { %5061 = vmatmul.mubr.msk.bf16.vlgmr.msra.gmra.mrb[60].mxu0 %vm161_vm1, %v2717_v15 }
0x25bd   :  { %5070 = vmatpush3.msra.mxu0 %v6275_v23  ;;  %5071 = vmatprep.mubr.msk.f32.mxu0 %vm5664_vm0, %v5663_v0 }
0x25be   :  { %5082 = vmatprep.subr.bf16.mxu0 %v5663_v0 }
0x2687   :  { %v2831_v29 = vpop.f32.mrb[56].mxu0 }
0x2688   :  { %v2832_v28 = vadd.f32 %v2831_v29, %v2781_v32  ;;  %v5046_v38 = vpop.f32.mrb[57].mxu0 }
0x2689   :  { %v2834_v42 = vpop.f32.mrb[58].mxu0 }
0x268a   :  { %v5047_v43 = vpop.f32.mrb[59].mxu0  ;;  %v2837_v45 = vsel %vm2307_vm6, %v2832_v28, -inf }
0x268b   :  { %2838 = vmax.xlane.f32.xlu1 %v2837_v45 }
0x268f   :  { %v2984_v47 = vpop.f32.mrb[60].mxu0 }
0x2690   :  { %v5062_v48 = vpop.f32.mrb[61].mxu0  ;;  %v2985_v7 = vadd.f32 %v2984_v47, %v2937_v13  ;;  %v5293_v47 = vld [vmem:[%s6732_s15] sm:$0xff]  }
0x2691   :  { %v2987_v49 = vpop.f32.mrb[62].mxu0  ;;  %v3302_v13 = vld [vmem:[%s6733_s16] sm:$0x1] }
0x2692   :  { %v5063_v50 = vpop.f32.mrb[63].mxu0 }
0x2693   :  { %v5291_v50 = vld [vmem:[%s6731_s14] sm:$0xff]  }
0x2718   :  { %v2839_v51 = vpop.xlane.xlu1 %2838 }
0x2719   :  { %v2840_v54 = vsub.f32 %v2832_v28, %v2839_v51  ;;  %vm2848_vm9 = vcmp.ge.f32.partialorder %v2832_v28, %v2839_v51 }
0x271a   :  { %v2849_v55 = vsel %vm2848_vm9, %v6344_v14, 64 }
0x271b   :  { %v2841_v56 = vmul.f32 1.442695, %v2840_v54  ;;  %v2850_v57 = vsel %vm2307_vm6, %v2849_v55, 2147483647  ;;  %v5292_v54 = vld [vmem:[%s6731_s14 + $0x8] sm:$0xff]  }
0x271c   :  { %v2852_v58 = vshra.s32 %v2850_v57, 16  ;;  %v2851_v63 = vand.u32 65535, %v2850_v57 }
0x271d   :  { %5441 = vpow2.f32 %v2841_v56  ;;  %v5294_v56 = vld [vmem:[%s6732_s15 + $0x8] sm:$0xff]  }
0x271e   :  { %v2854_v59 = vcvt.s32.f32 %v2852_v58  ;;  %v2853_v4 = vcvt.s32.f32 %v2851_v63 }
0x2720   :  { %2855 = vmin.xlane.f32.xlu1 %v2854_v59 }
0x2727   :  { %v5442_v60 = vpop.eup %5441 }
0x2728   :  { %v2843_v62 = vsel %vm2307_vm6, %v5442_v60, 0.0 }
0x2729   :  { %2844 = vadd.xlane.f32.xlu1 %v2843_v62 }
0x27ad   :  { %v2856_v2 = vpop.xlane.xlu1 %2855 }
0x27ae   :  { %vm2857_vm10 = vcmp.eq.f32.partialorder %v2854_v59, %v2856_v2  ;;  %v2862_v9 = vcvt.f32.s32 %v2856_v2 }
0x27af   :  { %v2858_v5 = vsel %vm2857_vm10, %v2853_v4, inf  ;;  %v5295_v4 = vld [vmem:[%s6734_s17] sm:$0xff]  }
0x27b0   :  { %2859 = vmin.xlane.f32.xlu1 %v2858_v5  ;;  %v2863_v52 = vshll.u32 %v2862_v9, 16  ;;  %v5296_v5 = vld [vmem:[%s6734_s17 + $0x8] sm:$0xff]  }
0x27b6   :  { %v2845_v6 = vpop.xlane.xlu1 %2844 }
0x27b7   :  { %5443 = vrcp.f32 %v2845_v6 }
0x27c1   :  { %v5444_v8 = vpop.eup %5443  ;;  %2998 = vrot.lane.b32.xlu1 %v2985_v7, %s5666_s13 }
0x27c2   :  { %5202 = vpush %v5444_v8 }
0x27f3   :  { %s5203_s3 = spop %5202 }
0x27f4   :  { %2869 = sst [smem:[#allocation18 + $0x1]] %s5203_s3 }
0x283d   :  { %v2860_v61 = vpop.xlane.xlu1 %2859 }
0x283e   :  { %v2861_v46 = vcvt.f32.s32 %v2860_v61 }
0x2840   :  { %v2864_v12 = vadd.s32 %v2863_v52, %v2861_v46  ;;  %v5297_v52 = vld [vmem:[%s6728_s11] sm:$0xff]  }
0x2841   :  { %v2999_v26 = vpop.permute.xlu1 %2998 }
0x2842   :  { %5204 = vpush %v2864_v12  ;;  %v5298_v12 = vld [vmem:[%s6728_s11 + $0x8] sm:$0xff]  }
0x2873   :  { %s5205_s30 = spop %5204 }
0x2874   :  { %2867 = sst [smem:[#allocation17 + $0x1]] %s5205_s30  ;;  %s2870_s4 = scalar_lea.vmem %s6751_s9, %s5205_s30 }
0x2875   :  { %v2871_v41 = vld [vmem:[%s2870_s4] sm:$0x1] }
0x2876   :  { %v2872_v39 = vpack.c.bf16 %v2871_v41, %v2871_v41  ;;  %v3310_v41 = vld [vmem:[%s6735_s18] sm:$0x1] }
0x2878   :  { %5053 = vmatmul.mubr.msk.bf16.vlgmr.msra.gmra.mrb[60].mxu1 %vm161_vm1, %v2872_v39 }
0x2879   :  { %5065 = vmatpush3.xpose.msk.msra.mxu1 %vm161_vm1, %v6275_v23  ;;  %5066 = vmatprep.mubr.msk.f32.mxu1 %vm5664_vm0, %v5663_v0 }
0x287a   :  { %5074 = vmatprep.subr.bf16.mxu1 %v5663_v0 }
0x294b   :  { %v2927_v15 = vpop.f32.mrb[60].mxu1 }
0x294c   :  { %v2928_v16 = vadd.f32 %v2927_v15, %v2877_v40  ;;  %v5054_v17 = vpop.f32.mrb[61].mxu1 }
0x294d   :  { %v2930_v18 = vpop.f32.mrb[62].mxu1 }
0x294e   :  { %v2990_v19 = vadd.f32 %v2985_v7, %v2928_v16  ;;  %v5055_v20 = vpop.f32.mrb[63].mxu1 }
0x2950   :  { %v4604_v21 = vmul.f32 -1.442695, %v2990_v19  ;;  %v3466_v19 = vld [vmem:[#allocation15] sm:$0x1] }
0x2952   :  { %5445 = vpow2.f32 %v4604_v21 }
0x295c   :  { %v5446_v22 = vpop.eup %5445 }
0x295d   :  { %v2994_v24 = vadd.f32 1.0, %v5446_v22 }
0x295f   :  { %5447 = vrcp.f32 %v2994_v24 }
0x2969   :  { %v5448_v25 = vpop.eup %5447 }
0x296a   :  { %v3001_v27 = vmul.f32 %v5448_v25, %v2999_v26  ;;  %v3008_v34 = vsub.f32 1.0, %v5448_v25  ;;  %v3014_v36 = vmul.f32 %v5448_v25, %v6370_v3 }
0x296c   :  { %3003 = vrot.lane.b32.xlu0 %v3001_v27, %s5666_s13 }
0x29de   :  { %v3004_v30 = vpop.permute.xlu0 %3003 }
0x29df   :  { %v3006_v31 = vadd.f32 %v3004_v30, %v2928_v16 }
0x29e1   :  { %5449 = vtanh.f32 %v3006_v31 }
0x29eb   :  { %v5450_v33 = vpop.eup %5449 }
0x29ec   :  { %3010 = vrot.lane.b32.xlu0 %v5450_v33, %s5667_s8 }
0x2a5e   :  { %v3011_v35 = vpop.permute.xlu0 %3010 }
0x2a5f   :  { %v3013_v1 = vmul.f32 %v3011_v35, %v3008_v34 }
0x2a61   :  { %v6464_v53 = vadd.f32 %v3014_v36, %v3013_v1 }
0x2a63   :  { %3018 = vrot.lane.b32.xlu0 %v6464_v53, %s5667_s8  ;;  %v3179_v3 = vpack.c.bf16 %v6464_v53, %v6464_v53 }
0x2ad5   :  { %v3019_v44 = vpop.permute.xlu0 %3018 }
0x2ad6   :  { %5067 = vmatmul.mubr.msk.f32.vlgmr.msra.gmra.mrb[64].mxu1 %vm161_vm1, %v3019_v44 }
0x2ad7   :  { %5078 = vmatprep.mubr.msk.bf16.mxu1 %vm5664_vm0, %v5663_v0  ;;  %5075 = vmatpush3.bf16.msra.mxu1 %v5293_v47 }
0x2ad8   :  { %5076 = vmatprep.subr.bf16.mxu1 %v5663_v0 }
0x2adb   :  { %5077 = vmatpush3.bf16.msra.mxu1 %v5294_v56 }
0x2adc   :  { %5090 = vmatprep.subr.bf16.mxu1 %v5663_v0 }
0x2ba9   :  { %v3091_v37 = vpop.f32.mrb[64].mxu1 }
0x2baa   :  { %v5068_v32 = vpop.f32.mrb[65].mxu1  ;;  %v3095_v29 = vsel %vm2034_vm4, %v3091_v37, -inf }
0x2bab   :  { %3096 = vmax.xlane.f32.xlu0 %v3095_v29 }
0x2bc1   :  { %3245 = vrot.lane.b32.xlu0 %v3179_v3, %s5667_s8 }
0x2c38   :  { %v3097_v28 = vpop.xlane.xlu0 %3096 }
0x2c39   :  { %v3098_v38 = vsub.f32 %v3091_v37, %v3097_v28 }
0x2c3b   :  { %v3099_v42 = vmul.f32 1.442695, %v3098_v38  ;;  %v5299_v38 = vld [vmem:[%s6727_s10] sm:$0xff]  }
0x2c3c   :  { %v3246_v55 = vpop.permute.xlu0 %3245 }
0x2c3d   :  { %5451 = vpow2.f32 %v3099_v42  ;;  %v5300_v42 = vld [vmem:[%s6727_s10 + $0x8] sm:$0xff]  }
0x2c47   :  { %v5452_v43 = vpop.eup %5451 }
0x2c48   :  { %v3101_v45 = vsel %vm2034_vm4, %v5452_v43, 0.0 }
0x2c49   :  { %3102 = vadd.xlane.f32.xlu1 %v3101_v45 }
0x2cd6   :  { %v3103_v48 = vpop.xlane.xlu1 %3102 }
0x2cd7   :  { %5453 = vrcp.f32 %v3103_v48 }
0x2ce1   :  { %v5454_v49 = vpop.eup %5453 }
0x2ce2   :  { %v3105_v51 = vmul.f32 %v5454_v49, %v5452_v43 }
0x2ce4   :  { %5072 = vmatmul.mubr.msk.f32.vlgmr.msra.gmra.mrb[64].mxu0 %vm2046_vm5, %v3105_v51 }
0x2ce5   :  { %5083 = vmatpush3.bf16.msra.mxu0 %v5291_v50  ;;  %5086 = vmatprep.mubr.msk.bf16.mxu0 %vm5664_vm0, %v5663_v0 }
0x2ce6   :  { %5084 = vmatprep.subr.bf16.mxu0 %v5663_v0 }
0x2ce9   :  { %5085 = vmatpush3.bf16.msra.mxu0 %v5292_v54  ;;  %v3406_v54 = vld [vmem:[#allocation14] sm:$0x1] }
0x2cea   :  { %5098 = vmatprep.subr.bf16.mxu0 %v5663_v0 }
0x2cec   :  { %5087 = vmatmul.mubr.msk.bf16.vlgmr.msra.gmra.mrb[68].mxu0 %vm161_vm1, %v3246_v55 }
0x2ced   :  { %5102 = vmatprep.mubr.msk.bf16.mxu0 %vm5664_vm0, %v5663_v0  ;;  %5099 = vmatpush3.bf16.msra.mxu0 %v5299_v38 }
0x2cee   :  { %5100 = vmatprep.subr.bf16.mxu0 %v5663_v0 }
0x2cf1   :  { %5101 = vmatpush3.bf16.msra.mxu0 %v5300_v42 }
0x2cf2   :  { %5114 = vmatprep.subr.mxu0 %v5663_v0 }
0x2db7   :  { %v3175_v57 = vpop.f32.mrb[64].mxu0 }
0x2db8   :  { %v3184_v58 = vpack.c.bf16 %v3175_v57, %v3175_v57  ;;  %v5073_v59 = vpop.f32.mrb[65].mxu0 }
0x2dba   :  { %5079 = vmatmul.mubr.msk.bf16.vlgmr.msra.gmra.mrb[68].mxu1 %vm161_vm1, %v3184_v58 }
0x2dbb   :  { %5094 = vmatprep.mubr.msk.bf16.mxu1 %vm5664_vm0, %v5663_v0  ;;  %5091 = vmatpush3.bf16.msra.mxu1 %v5295_v4 }
0x2dbc   :  { %5092 = vmatprep.subr.bf16.mxu1 %v5663_v0 }
0x2dbf   :  { %v3296_v60 = vpop.f32.mrb[68].mxu0  ;;  %5093 = vmatpush3.bf16.msra.mxu1 %v5296_v5 }
0x2dc0   :  { %v5088_v62 = vpop.f32.mrb[69].mxu0  ;;  %5106 = vmatprep.subr.bf16.mxu1 %v5663_v0 }
0x2dc1   :  { %v3299_v63 = vpop.f32.mrb[70].mxu0 }
0x2dc2   :  { %v5089_v2 = vpop.f32.mrb[71].mxu0 }
0x2e8d   :  { %v3238_v6 = vpop.f32.mrb[68].mxu1 }
0x2e8e   :  { %v3297_v7 = vadd.f32 %v3296_v60, %v3238_v6  ;;  %v5080_v8 = vpop.f32.mrb[69].mxu1 }
0x2e8f   :  { %v3241_v10 = vpop.f32.mrb[70].mxu1 }
0x2e90   :  { %v3303_v11 = vadd.f32 %v3302_v13, %v3297_v7  ;;  %v5081_v9 = vpop.f32.mrb[71].mxu1 }
0x2e92   :  { %5455 = vtanh.f32 %v3303_v11 }
0x2e9c   :  { %v5456_v61 = vpop.eup %5455 }
0x2e9d   :  { %v3305_v46 = vpack.c.bf16 %v5456_v61, %v5456_v61 }
0x2e9f   :  { %5095 = vmatmul.mubr.msk.bf16.vlgmr.msra.gmra.mrb[72].mxu1 %vm161_vm1, %v3305_v46 }
0x2ea0   :  { %5107 = vmatpush3.bf16.msra.mxu1 %v5297_v52  ;;  %5110 = vmatprep.mubr.msk.bf16.mxu1 %vm5664_vm0, %v5663_v0 }
0x2ea1   :  { %5108 = vmatprep.subr.bf16.mxu1 %v5663_v0 }
0x2ea4   :  { %5109 = vmatpush3.bf16.msra.mxu1 %v5298_v12 }
0x2ea5   :  { %5124 = vmatprep.subr.bf16.mxu1 %v5663_v0 }
0x2ea7   :  { %5111 = vmatmul.mubr.msk.bf16.vlgmr.msra.gmra.mrb[76].mxu1 %vm161_vm1, %v3246_v55 }
0x2ea8   :  { %5128 = vmatprep.mubr.msk.bf16.mxu1 %vm5664_vm0, %v5663_v0 }
0x2f72   :  { %v3360_v39 = vpop.f32.mrb[72].mxu1 }
0x2f73   :  { %v3361_v40 = vadd.f32 %v3360_v39, %v3310_v41  ;;  %v5096_v15 = vpop.f32.mrb[73].mxu1 }
0x2f74   :  { %v3363_v16 = vpop.f32.mrb[74].mxu1 }
0x2f75   :  { %v5097_v17 = vpop.f32.mrb[75].mxu1  ;;  %v3366_v18 = vsel %vm2307_vm6, %v3361_v40, -inf }
0x2f76   :  { %3367 = vmax.xlane.f32.xlu1 %v3366_v18  ;;  %v5303_v18 = vld [vmem:[%s6732_s15] sm:$0xff]  }
0x2f77   :  { %5125 = vmatpush3.bf16.msra.mxu1 %v5303_v18 }
0x2f78   :  { %5126 = vmatprep.subr.bf16.mxu1 %v5663_v0 }
0x2f7a   :  { %v3513_v20 = vpop.f32.mrb[76].mxu1 }
0x2f7b   :  { %v3514_v21 = vadd.f32 %v3513_v20, %v3466_v19  ;;  %v5112_v22 = vpop.f32.mrb[77].mxu1 }
0x2f7c   :  { %v3516_v24 = vpop.f32.mrb[78].mxu1 }
0x2f7d   :  { %3527 = vrot.lane.b32.xlu0 %v3514_v21, %s5666_s13  ;;  %v5113_v25 = vpop.f32.mrb[79].mxu1  ;;  %v5302_v24 = vld [vmem:[%s6731_s14 + $0x8] sm:$0xff]  }
0x2fef   :  { %v3528_v5 = vpop.permute.xlu0 %3527 }
0x3003   :  { %v3368_v26 = vpop.xlane.xlu1 %3367 }
0x3004   :  { %v3369_v27 = vsub.f32 %v3361_v40, %v3368_v26  ;;  %vm3377_vm11 = vcmp.ge.f32.partialorder %v3361_v40, %v3368_v26  ;;  %v5304_v26 = vld [vmem:[%s6732_s15 + $0x8] sm:$0xff]  }
0x3005   :  { %v3378_v30 = vsel %vm3377_vm11, %v6344_v14, 64  ;;  %5127 = vmatpush3.bf16.msra.mxu1 %v5304_v26 }
0x3006   :  { %v3370_v31 = vmul.f32 1.442695, %v3369_v27  ;;  %v3379_v33 = vsel %vm2307_vm6, %v3378_v30, 2147483647  ;;  %5140 = vmatprep.subr.bf16.mxu1 %v5663_v0 }
0x3007   :  { %v3381_v34 = vshra.s32 %v3379_v33, 16  ;;  %v3380_v44 = vand.u32 65535, %v3379_v33 }
0x3008   :  { %5457 = vpow2.f32 %v3370_v31 }
0x3009   :  { %v3383_v35 = vcvt.s32.f32 %v3381_v34  ;;  %v3382_v32 = vcvt.s32.f32 %v3380_v44  ;;  %v5306_v44 = vld [vmem:[%s6734_s17 + $0x8] sm:$0xff]  }
0x300b   :  { %3384 = vmin.xlane.f32.xlu1 %v3383_v35 }
0x3012   :  { %v5458_v36 = vpop.eup %5457 }
0x3013   :  { %v3372_v1 = vsel %vm2307_vm6, %v5458_v36, 0.0 }
0x3014   :  { %3373 = vadd.xlane.f32.xlu1 %v3372_v1  ;;  %v5305_v1 = vld [vmem:[%s6734_s17] sm:$0xff]  }
0x3098   :  { %v3385_v37 = vpop.xlane.xlu1 %3384 }
0x3099   :  { %vm3386_vm12 = vcmp.eq.f32.partialorder %v3383_v35, %v3385_v37  ;;  %v3391_v43 = vcvt.f32.s32 %v3385_v37 }
0x309a   :  { %v3387_v29 = vsel %vm3386_vm12, %v3382_v32, inf  ;;  %v3831_v32 = vld [vmem:[%s6733_s16] sm:$0x1] }
0x309b   :  { %3388 = vmin.xlane.f32.xlu1 %v3387_v29  ;;  %v3392_v47 = vshll.u32 %v3391_v43, 16 }
0x30a1   :  { %v3374_v3 = vpop.xlane.xlu1 %3373 }
0x30a2   :  { %5459 = vrcp.f32 %v3374_v3 }
0x30ac   :  { %v5460_v28 = vpop.eup %5459 }
0x30ad   :  { %5206 = vpush %v5460_v28 }
0x30de   :  { %s5207_s28 = spop %5206 }
0x30df   :  { %3398 = sst [smem:[#allocation18 + $0x2]] %s5207_s28 }
0x3128   :  { %v3389_v45 = vpop.xlane.xlu1 %3388 }
0x3129   :  { %v3390_v48 = vcvt.f32.s32 %v3389_v45  ;;  %v5307_v45 = vld [vmem:[%s6728_s11] sm:$0xff]  }
0x312b   :  { %v3393_v49 = vadd.s32 %v3392_v47, %v3390_v48  ;;  %v5308_v48 = vld [vmem:[%s6728_s11 + $0x8] sm:$0xff]  }
0x312d   :  { %5208 = vpush %v3393_v49  ;;  %v4074_v49 = vld [vmem:[#allocation4] sm:$0xff] }
0x315e   :  { %s5209_s26 = spop %5208 }
0x315f   :  { %3396 = sst [smem:[#allocation17 + $0x2]] %s5209_s26  ;;  %s3399_s0 = scalar_lea.vmem %s6751_s9, %s5209_s26 }
0x3160   :  { %v3400_v50 = vld [vmem:[%s3399_s0] sm:$0x1] }
0x3161   :  { %v3401_v51 = vpack.c.bf16 %v3400_v50, %v3400_v50  ;;  %v3839_v50 = vld [vmem:[%s6735_s18] sm:$0x1] }
0x3163   :  { %5103 = vmatmul.mubr.msk.bf16.vlgmr.msra.gmra.mrb[72].mxu0 %vm161_vm1, %v3401_v51 }
0x3164   :  { %5115 = vmatpush3.xpose.msk.msra.mxu0 %vm161_vm1, %v6275_v23  ;;  %5116 = vmatprep.mubr.msk.f32.mxu0 %vm5664_vm0, %v5663_v0 }
0x3165   :  { %5119 = vmatprep.subr.mxu0 %v5663_v0 }
0x3236   :  { %v3456_v55 = vpop.f32.mrb[72].mxu0 }
0x3237   :  { %v3457_v56 = vadd.f32 %v3456_v55, %v3406_v54  ;;  %v5104_v57 = vpop.f32.mrb[73].mxu0 }
0x3238   :  { %v3459_v58 = vpop.f32.mrb[74].mxu0 }
0x3239   :  { %v3519_v59 = vadd.f32 %v3514_v21, %v3457_v56  ;;  %v5105_v60 = vpop.f32.mrb[75].mxu0  ;;  %v5301_v21 = vld [vmem:[%s6731_s14] sm:$0xff]  }
0x323b   :  { %v4623_v62 = vmul.f32 -1.442695, %v3519_v59 }
0x323d   :  { %5461 = vpow2.f32 %v4623_v62 }
0x3247   :  { %v5462_v63 = vpop.eup %5461 }
0x3248   :  { %v3523_v2 = vadd.f32 1.0, %v5462_v63 }
0x324a   :  { %5463 = vrcp.f32 %v3523_v2 }
0x3254   :  { %v5464_v4 = vpop.eup %5463 }
0x3255   :  { %v3530_v6 = vmul.f32 %v5464_v4, %v3528_v5  ;;  %v3537_v10 = vsub.f32 1.0, %v5464_v4  ;;  %v3543_v9 = vmul.f32 %v5464_v4, %v6464_v53 }
0x3257   :  { %3532 = vrot.lane.b32.xlu1 %v3530_v6, %s5666_s13 }
0x32c9   :  { %v3533_v13 = vpop.permute.xlu1 %3532 }
0x32ca   :  { %v3535_v7 = vadd.f32 %v3533_v13, %v3457_v56 }
0x32cc   :  { %5465 = vtanh.f32 %v3535_v7 }
0x32d6   :  { %v5466_v8 = vpop.eup %5465 }
0x32d7   :  { %3539 = vrot.lane.b32.xlu0 %v5466_v8, %s5667_s8 }
0x3349   :  { %v3540_v11 = vpop.permute.xlu0 %3539 }
0x334a   :  { %v3542_v61 = vmul.f32 %v3540_v11, %v3537_v10 }
0x334c   :  { %v6554_v52 = vadd.f32 %v3543_v9, %v3542_v61  ;;  %v3995_v9 = vld [vmem:[#allocation15] sm:$0x1] }
0x334e   :  { %3547 = vrot.lane.b32.xlu0 %v6554_v52, %s5667_s8  ;;  %v3708_v39 = vpack.c.bf16 %v6554_v52, %v6554_v52 }
0x33c0   :  { %v3548_v46 = vpop.permute.xlu0 %3547 }
0x33c1   :  { %5117 = vmatmul.mubr.msk.f32.vlgmr.msra.gmra.mrb[66].mxu0 %vm161_vm1, %v3548_v46 }
0x33c2   :  { %5120 = vmatpush3.msra.mxu0 %v6275_v23  ;;  %5121 = vmatprep.mubr.msk.f32.mxu0 %vm5664_vm0, %v5663_v0 }
0x33c3   :  { %5132 = vmatprep.subr.bf16.mxu0 %v5663_v0 }
0x3494   :  { %v3620_v12 = vpop.f32.mrb[66].mxu0 }
0x3495   :  { %v5118_v41 = vpop.f32.mrb[67].mxu0  ;;  %v3624_v53 = vsel %vm2034_vm4, %v3620_v12, -inf }
0x3496   :  { %3625 = vmax.xlane.f32.xlu0 %v3624_v53 }
0x34ac   :  { %3774 = vrot.lane.b32.xlu0 %v3708_v39, %s5667_s8 }
0x3523   :  { %v3626_v40 = vpop.xlane.xlu0 %3625 }
0x3524   :  { %v3627_v15 = vsub.f32 %v3620_v12, %v3626_v40 }
0x3526   :  { %v3628_v16 = vmul.f32 1.442695, %v3627_v15  ;;  %v5309_v15 = vld [vmem:[%s6727_s10] sm:$0xff]  }
0x3527   :  { %v3775_v25 = vpop.permute.xlu0 %3774 }
0x3528   :  { %5467 = vpow2.f32 %v3628_v16  ;;  %v5310_v16 = vld [vmem:[%s6727_s10 + $0x8] sm:$0xff]  }
0x3532   :  { %v5468_v23 = vpop.eup %5467 }
0x3533   :  { %v3630_v17 = vsel %vm2034_vm4, %v5468_v23, 0.0 }
0x3534   :  { %3631 = vadd.xlane.f32.xlu1 %v3630_v17 }
0x35c1   :  { %v3632_v19 = vpop.xlane.xlu1 %3631 }
0x35c2   :  { %5469 = vrcp.f32 %v3632_v19 }
0x35cc   :  { %v5470_v20 = vpop.eup %5469 }
0x35cd   :  { %v3634_v22 = vmul.f32 %v5470_v20, %v5468_v23 }
0x35cf   :  { %5122 = vmatmul.mubr.msk.f32.vlgmr.msra.gmra.mrb[76].mxu0 %vm2046_vm5, %v3634_v22 }
0x35d0   :  { %5133 = vmatpush3.bf16.msra.mxu0 %v5301_v21  ;;  %5136 = vmatprep.mubr.msk.bf16.mxu0 %vm5664_vm0, %v5663_v0 }
0x35d1   :  { %5134 = vmatprep.subr.bf16.mxu0 %v5663_v0 }
0x35d4   :  { %5135 = vmatpush3.bf16.msra.mxu0 %v5302_v24  ;;  %v3935_v24 = vld [vmem:[#allocation14] sm:$0x1] }
0x35d5   :  { %5148 = vmatprep.subr.bf16.mxu0 %v5663_v0 }
0x35d7   :  { %5137 = vmatmul.mubr.msk.bf16.vlgmr.msra.gmra.mrb[80].mxu0 %vm161_vm1, %v3775_v25 }
0x35d8   :  { %5152 = vmatprep.mubr.msk.bf16.mxu0 %vm5664_vm0, %v5663_v0  ;;  %5149 = vmatpush3.bf16.msra.mxu0 %v5309_v15 }
0x35d9   :  { %5150 = vmatprep.subr.bf16.mxu0 %v5663_v0 }
0x35dc   :  { %5151 = vmatpush3.bf16.msra.mxu0 %v5310_v16 }
0x35dd   :  { %5164 = vmatprep.subr.mxu0 %v5663_v0 }
0x36a2   :  { %v3704_v27 = vpop.f32.mrb[76].mxu0 }
0x36a3   :  { %v3713_v30 = vpack.c.bf16 %v3704_v27, %v3704_v27  ;;  %v5123_v31 = vpop.f32.mrb[77].mxu0 }
0x36a5   :  { %5129 = vmatmul.mubr.msk.bf16.vlgmr.msra.gmra.mrb[80].mxu1 %vm161_vm1, %v3713_v30 }
0x36a6   :  { %5144 = vmatprep.mubr.msk.bf16.mxu1 %vm5664_vm0, %v5663_v0  ;;  %5141 = vmatpush3.bf16.msra.mxu1 %v5305_v1 }
0x36a7   :  { %5142 = vmatprep.subr.bf16.mxu1 %v5663_v0 }
0x36aa   :  { %v3825_v33 = vpop.f32.mrb[80].mxu0  ;;  %5143 = vmatpush3.bf16.msra.mxu1 %v5306_v44 }
0x36ab   :  { %v5138_v34 = vpop.f32.mrb[81].mxu0  ;;  %5156 = vmatprep.subr.bf16.mxu1 %v5663_v0 }
0x36ac   :  { %v3828_v35 = vpop.f32.mrb[82].mxu0 }
0x36ad   :  { %v5139_v36 = vpop.f32.mrb[83].mxu0 }
0x3778   :  { %v3767_v37 = vpop.f32.mrb[80].mxu1 }
0x3779   :  { %v3826_v29 = vadd.f32 %v3825_v33, %v3767_v37  ;;  %v5130_v3 = vpop.f32.mrb[81].mxu1 }
0x377a   :  { %v3770_v28 = vpop.f32.mrb[82].mxu1 }
0x377b   :  { %v3832_v38 = vadd.f32 %v3831_v32, %v3826_v29  ;;  %v5131_v42 = vpop.f32.mrb[83].mxu1 }
0x377d   :  { %5471 = vtanh.f32 %v3832_v38 }
0x3787   :  { %v5472_v43 = vpop.eup %5471 }
0x3788   :  { %v3834_v47 = vpack.c.bf16 %v5472_v43, %v5472_v43 }
0x378a   :  { %5145 = vmatmul.mubr.msk.bf16.vlgmr.msra.gmra.mrb[84].mxu1 %vm161_vm1, %v3834_v47 }
0x378b   :  { %5157 = vmatpush3.bf16.msra.mxu1 %v5307_v45  ;;  %5160 = vmatprep.mubr.msk.bf16.mxu1 %vm5664_vm0, %v5663_v0 }
0x378c   :  { %5158 = vmatprep.subr.bf16.mxu1 %v5663_v0 }
0x378f   :  { %5159 = vmatpush3.bf16.msra.mxu1 %v5308_v48 }
0x3790   :  { %5169 = vmatprep.subr.mxu1 %v5663_v0 }
0x3792   :  { %5161 = vmatmul.mubr.msk.bf16.vlgmr.msra.gmra.mrb[88].mxu1 %vm161_vm1, %v3775_v25 }
0x3793   :  { %5170 = vmatpush3.msra.mxu1 %v4074_v49  ;;  %5171 = vmatprep.mubr.msk.f32.mxu1 %vm5664_vm0, %v5663_v0 }
0x3794   :  { %5182 = vmatprep.subr.bf16.mxu1 %v5663_v0 }
0x385d   :  { %v3889_v51 = vpop.f32.mrb[84].mxu1 }
0x385e   :  { %v3890_v54 = vadd.f32 %v3889_v51, %v3839_v50  ;;  %v5146_v55 = vpop.f32.mrb[85].mxu1 }
0x385f   :  { %v3892_v56 = vpop.f32.mrb[86].mxu1 }
0x3860   :  { %v5147_v57 = vpop.f32.mrb[87].mxu1  ;;  %v3895_v58 = vsel %vm2307_vm6, %v3890_v54, -inf }
0x3861   :  { %3896 = vmax.xlane.f32.xlu1 %v3895_v58  ;;  %v5313_v58 = vld [vmem:[%s6732_s15] sm:$0xff]  }
0x3865   :  { %v4042_v59 = vpop.f32.mrb[88].mxu1 }
0x3866   :  { %v5162_v60 = vpop.f32.mrb[89].mxu1  ;;  %v4043_v61 = vadd.f32 %v4042_v59, %v3995_v9 }
0x3867   :  { %v4045_v62 = vpop.f32.mrb[90].mxu1 }
0x3868   :  { %v5163_v63 = vpop.f32.mrb[91].mxu1  ;;  %v5311_v62 = vld [vmem:[%s6731_s14] sm:$0xff]  }
0x38ee   :  { %v3897_v2 = vpop.xlane.xlu1 %3896 }
0x38ef   :  { %v3898_v4 = vsub.f32 %v3890_v54, %v3897_v2  ;;  %vm3906_vm13 = vcmp.ge.f32.partialorder %v3890_v54, %v3897_v2  ;;  %v5312_v2 = vld [vmem:[%s6731_s14 + $0x8] sm:$0xff]  }
0x38f0   :  { %v3907_v5 = vsel %vm3906_vm13, %v6344_v14, 64 }
0x38f1   :  { %v3899_v6 = vmul.f32 1.442695, %v3898_v4  ;;  %v3908_v13 = vsel %vm2307_vm6, %v3907_v5, 2147483647  ;;  %v5314_v5 = vld [vmem:[%s6732_s15 + $0x8] sm:$0xff]  }
0x38f2   :  { %v3910_v7 = vshra.s32 %v3908_v13, 16  ;;  %v3909_v46 = vand.u32 65535, %v3908_v13 }
0x38f3   :  { %5473 = vpow2.f32 %v3899_v6 }
0x38f4   :  { %v3912_v8 = vcvt.s32.f32 %v3910_v7  ;;  %v3911_v41 = vcvt.s32.f32 %v3909_v46  ;;  %v5316_v46 = vld [vmem:[%s6734_s17 + $0x8] sm:$0xff]  }
0x38f6   :  { %3913 = vmin.xlane.f32.xlu1 %v3912_v8 }
0x38fd   :  { %v5474_v10 = vpop.eup %5473 }
0x38fe   :  { %v3901_v11 = vsel %vm2307_vm6, %v5474_v10, 0.0 }
0x38ff   :  { %3902 = vadd.xlane.f32.xlu1 %v3901_v11 }
0x3910   :  { %4056 = vrot.lane.b32.xlu1 %v4043_v61, %s5666_s13 }
0x3983   :  { %v3914_v12 = vpop.xlane.xlu1 %3913 }
0x3984   :  { %vm3915_vm14 = vcmp.eq.f32.partialorder %v3912_v8, %v3914_v12  ;;  %v3920_v23 = vcvt.f32.s32 %v3914_v12 }
0x3985   :  { %v3916_v53 = vsel %vm3915_vm14, %v3911_v41, inf  ;;  %v4360_v41 = vld [vmem:[%s6733_s16] sm:$0x1] }
0x3986   :  { %3917 = vmin.xlane.f32.xlu0 %v3916_v53  ;;  %v3921_v18 = vshll.u32 %v3920_v23, 16 }
0x398c   :  { %v3903_v39 = vpop.xlane.xlu1 %3902 }
0x398d   :  { %5475 = vrcp.f32 %v3903_v39 }
0x3990   :  { %v4057_v44 = vpop.permute.xlu1 %4056 }
0x3997   :  { %v5476_v40 = vpop.eup %5475 }
0x3998   :  { %5210 = vpush %v5476_v40 }
0x39c9   :  { %s5211_s3 = spop %5210 }
0x39ca   :  { %3927 = sst [smem:[#allocation18 + $0x3]] %s5211_s3 }
0x3a13   :  { %v3918_v17 = vpop.xlane.xlu0 %3917 }
0x3a14   :  { %v3919_v19 = vcvt.f32.s32 %v3918_v17 }
0x3a16   :  { %v3922_v20 = vadd.s32 %v3921_v18, %v3919_v19 }
0x3a18   :  { %5212 = vpush %v3922_v20 }
0x3a49   :  { %s5213_s30 = spop %5212 }
0x3a4a   :  { %3925 = sst [smem:[#allocation17 + $0x3]] %s5213_s30  ;;  %s3928_s4 = scalar_lea.vmem %s6751_s9, %s5213_s30 }
0x3a4b   :  { %v3929_v21 = vld [vmem:[%s3928_s4] sm:$0x1] }
0x3a4c   :  { %v3930_v22 = vpack.c.bf16 %v3929_v21, %v3929_v21 }
0x3a4e   :  { %5153 = vmatmul.mubr.msk.bf16.vlgmr.msra.gmra.mrb[84].mxu0 %vm161_vm1, %v3930_v22 }
0x3a4f   :  { %5165 = vmatpush3.xpose.msk.msra.mxu0 %vm161_vm1, %v4074_v49  ;;  %5166 = vmatprep.mubr.msk.f32.mxu0 %vm5664_vm0, %v5663_v0 }
0x3a50   :  { %5174 = vmatprep.subr.bf16.mxu0 %v5663_v0 }
0x3b21   :  { %v3985_v25 = vpop.f32.mrb[84].mxu0 }
0x3b22   :  { %v3986_v26 = vadd.f32 %v3985_v25, %v3935_v24  ;;  %v5154_v27 = vpop.f32.mrb[85].mxu0 }
0x3b23   :  { %v3988_v30 = vpop.f32.mrb[86].mxu0 }
0x3b24   :  { %v4048_v31 = vadd.f32 %v4043_v61, %v3986_v26  ;;  %v5155_v33 = vpop.f32.mrb[87].mxu0  ;;  %v5315_v61 = vld [vmem:[%s6734_s17] sm:$0xff]  }
0x3b26   :  { %v4642_v34 = vmul.f32 -1.442695, %v4048_v31 }
0x3b28   :  { %5477 = vpow2.f32 %v4642_v34 }
0x3b32   :  { %v5478_v35 = vpop.eup %5477 }
0x3b33   :  { %v4052_v36 = vadd.f32 1.0, %v5478_v35 }
0x3b35   :  { %5479 = vrcp.f32 %v4052_v36 }
0x3b3f   :  { %v5480_v1 = vpop.eup %5479 }
0x3b40   :  { %v4059_v37 = vmul.f32 %v5480_v1, %v4057_v44  ;;  %v4066_v28 = vsub.f32 1.0, %v5480_v1  ;;  %v4072_v42 = vmul.f32 %v5480_v1, %v6554_v52 }
0x3b42   :  { %4061 = vrot.lane.b32.xlu1 %v4059_v37, %s5666_s13 }
0x3bb4   :  { %v4062_v32 = vpop.permute.xlu1 %4061 }
0x3bb5   :  { %v4064_v29 = vadd.f32 %v4062_v32, %v3986_v26 }
0x3bb7   :  { %5481 = vtanh.f32 %v4064_v29 }
0x3bc1   :  { %v5482_v3 = vpop.eup %5481 }
0x3bc2   :  { %4068 = vrot.lane.b32.xlu1 %v5482_v3, %s5667_s8 }
0x3c34   :  { %v4069_v38 = vpop.permute.xlu1 %4068 }
0x3c35   :  { %v4071_v43 = vmul.f32 %v4069_v38, %v4066_v28 }
0x3c37   :  { %v4073_v45 = vadd.f32 %v4072_v42, %v4071_v43 }
0x3c39   :  { %4076 = vrot.lane.b32.xlu1 %v4073_v45, %s5667_s8  ;;  %v4237_v51 = vpack.c.bf16 %v4073_v45, %v4073_v45 }
0x3cab   :  { %v4077_v47 = vpop.permute.xlu1 %4076 }
0x3cac   :  { %5167 = vmatmul.mubr.msk.f32.vlgmr.msra.gmra.mrb[78].mxu0 %vm161_vm1, %v4077_v47 }
0x3cad   :  { %5178 = vmatprep.mubr.msk.bf16.mxu0 %vm5664_vm0, %v5663_v0  ;;  %5175 = vmatpush3.bf16.msra.mxu0 %v5313_v58 }
0x3cae   :  { %5176 = vmatprep.subr.bf16.mxu0 %v5663_v0 }
0x3cb1   :  { %5177 = vmatpush3.bf16.msra.mxu0 %v5314_v5 }
0x3cb2   :  { %5190 = vmatprep.subr.bf16.mxu0 %v5663_v0 }
0x3d7f   :  { %v4149_v48 = vpop.f32.mrb[78].mxu0 }
0x3d80   :  { %v5168_v49 = vpop.f32.mrb[79].mxu0  ;;  %v4153_v50 = vsel %vm2034_vm4, %v4149_v48, -inf }
0x3d81   :  { %4154 = vmax.xlane.f32.xlu0 %v4153_v50 }
0x3d97   :  { %4303 = vrot.lane.b32.xlu0 %v4237_v51, %s5667_s8 }
0x3e0e   :  { %v4155_v54 = vpop.xlane.xlu0 %4154 }
0x3e0f   :  { %v4156_v52 = vsub.f32 %v4149_v48, %v4155_v54 }
0x3e11   :  { %v4157_v55 = vmul.f32 1.442695, %v4156_v52 }
0x3e12   :  { %v4304_v4 = vpop.permute.xlu0 %4303 }
0x3e13   :  { %5483 = vpow2.f32 %v4157_v55 }
0x3e1d   :  { %v5484_v56 = vpop.eup %5483 }
0x3e1e   :  { %v4159_v57 = vsel %vm2034_vm4, %v5484_v56, 0.0 }
0x3e1f   :  { %4160 = vadd.xlane.f32.xlu1 %v4159_v57 }
0x3eac   :  { %v4161_v59 = vpop.xlane.xlu1 %4160 }
0x3ead   :  { %5485 = vrcp.f32 %v4161_v59 }
0x3eb7   :  { %v5486_v60 = vpop.eup %5485 }
0x3eb8   :  { %v4163_v63 = vmul.f32 %v5486_v60, %v5484_v56 }
0x3eba   :  { %5172 = vmatmul.mubr.msk.f32.vlgmr.msra.gmra.mrb[66].mxu1 %vm2046_vm5, %v4163_v63 }
0x3ebb   :  { %5183 = vmatpush3.bf16.msra.mxu1 %v5311_v62  ;;  %5186 = vmatprep.mubr.msk.bf16.mxu1 %vm5664_vm0, %v5663_v0 }
0x3ebc   :  { %5184 = vmatprep.subr.bf16.mxu1 %v5663_v0 }
0x3ebf   :  { %5185 = vmatpush3.bf16.msra.mxu1 %v5312_v2 }
0x3ec2   :  { %5187 = vmatmul.mubr.msk.bf16.vlgmr.msra.gmra.mrb[92].mxu1 %vm161_vm1, %v4304_v4 }
0x3f8d   :  { %v4233_v6 = vpop.f32.mrb[66].mxu1 }
0x3f8e   :  { %v4242_v13 = vpack.c.bf16 %v4233_v6, %v4233_v6  ;;  %v5173_v7 = vpop.f32.mrb[67].mxu1 }
0x3f90   :  { %5179 = vmatmul.mubr.msk.bf16.vlgmr.msra.gmra.mrb[88].mxu0 %vm161_vm1, %v4242_v13 }
0x3f91   :  { %5194 = vmatprep.mubr.msk.bf16.mxu0 %vm5664_vm0, %v5663_v0  ;;  %5191 = vmatpush3.bf16.msra.mxu0 %v5315_v61 }
0x3f92   :  { %5192 = vmatprep.subr.bf16.mxu0 %v5663_v0  ;;  %v4368_v0 = vld [vmem:[%s6735_s18] sm:$0x1] }
0x3f95   :  { %v4354_v8 = vpop.f32.mrb[92].mxu1  ;;  %5193 = vmatpush3.bf16.msra.mxu0 %v5316_v46 }
0x3f96   :  { %v5188_v10 = vpop.f32.mrb[93].mxu1 }
0x3f97   :  { %v4357_v11 = vpop.f32.mrb[94].mxu1 }
0x3f98   :  { %v5189_v9 = vpop.f32.mrb[95].mxu1 }
0x4063   :  { %v4296_v12 = vpop.f32.mrb[88].mxu0 }
0x4064   :  { %v4355_v53 = vadd.f32 %v4354_v8, %v4296_v12  ;;  %v5180_v39 = vpop.f32.mrb[89].mxu0 }
0x4065   :  { %v4299_v40 = vpop.f32.mrb[90].mxu0 }
0x4066   :  { %v4361_v15 = vadd.f32 %v4360_v41, %v4355_v53  ;;  %v5181_v16 = vpop.f32.mrb[91].mxu0 }
0x4068   :  { %5487 = vtanh.f32 %v4361_v15 }
0x4072   :  { %v5488_v23 = vpop.eup %5487 }
0x4073   :  { %v4363_v17 = vpack.c.bf16 %v5488_v23, %v5488_v23 }
0x4075   :  { %5195 = vmatmul.mubr.msk.bf16.vlgmr.msra.gmra.mrb[92].mxu0 %vm161_vm1, %v4363_v17 }
0x4148   :  { %v4418_v18 = vpop.f32.mrb[92].mxu0 }
0x4149   :  { %v4419_v19 = vadd.f32 %v4418_v18, %v4368_v0  ;;  %v5196_v20 = vpop.f32.mrb[93].mxu0 }
0x414a   :  { %v4421_v21 = vpop.f32.mrb[94].mxu0 }
0x414b   :  { %v5197_v22 = vpop.f32.mrb[95].mxu0  ;;  %v4424_v24 = vsel %vm2307_vm6, %v4419_v19, -inf }
0x414c   :  { %4425 = vmax.xlane.f32.xlu0 %v4424_v24 }
0x41d9   :  { %v4426_v25 = vpop.xlane.xlu0 %4425 }
0x41da   :  { %v4427_v26 = vsub.f32 %v4419_v19, %v4426_v25  ;;  %vm4435_vm15 = vcmp.ge.f32.partialorder %v4419_v19, %v4426_v25 }
0x41db   :  { %v4436_v27 = vsel %vm4435_vm15, %v6344_v14, 64 }
0x41dc   :  { %v4428_v30 = vmul.f32 1.442695, %v4427_v26  ;;  %v4437_v31 = vsel %vm2307_vm6, %v4436_v27, 2147483647 }
0x41dd   :  { %v4439_v33 = vshra.s32 %v4437_v31, 16  ;;  %v4438_v1 = vand.u32 65535, %v4437_v31 }
0x41de   :  { %5489 = vpow2.f32 %v4428_v30 }
0x41df   :  { %v4441_v34 = vcvt.s32.f32 %v4439_v33  ;;  %v4440_v37 = vcvt.s32.f32 %v4438_v1 }
0x41e1   :  { %4442 = vmin.xlane.f32.xlu1 %v4441_v34 }
0x41e8   :  { %v5490_v35 = vpop.eup %5489 }
0x41e9   :  { %v4430_v36 = vsel %vm2307_vm6, %v5490_v35, 0.0 }
0x41ea   :  { %4431 = vadd.xlane.f32.xlu1 %v4430_v36 }
0x426e   :  { %v4443_v44 = vpop.xlane.xlu1 %4442 }
0x426f   :  { %vm4444_vm0 = vcmp.eq.f32.partialorder %v4441_v34, %v4443_v44 }
0x4270   :  { %v4445_v32 = vsel %vm4444_vm0, %v4440_v37, inf }
0x4271   :  { %4446 = vmin.xlane.f32.xlu1 %v4445_v32 }
0x4277   :  { %v4432_v29 = vpop.xlane.xlu1 %4431 }
0x4278   :  { %5491 = vrcp.f32 %v4432_v29 }
0x4282   :  { %v5492_v14 = vpop.eup %5491 }
0x4283   :  { %5214 = vpush %v5492_v14 }
0x42b4   :  { %s5215_s16 = spop %5214 }
0x42b5   :  { %4456 = sst [smem:[#allocation18 + $0x4]] %s5215_s16 }
0x42b6   :  { %5634 = shalt.err (!%p5631_p8)
}
0x42b7   :  { %s5668_s3 = smov [#allocation18]   ;;  %v4449_v3 = vcvt.f32.s32 %v4443_v44  ;;  %s5635_s13 = scalar_lea.hbm %s6736_s19, 16 }
0x42b8   :  { %4472 = dma.smem_to_hbm %s5668_s3, 16, %s6737_s20, [#allocation19]  }
0x42b9   :  { %v4450_v38 = vshll.u32 %v4449_v3, 16  ;;  %p5636_p9 = scmp.ne.s32.totalorder %s6736_s19, %s5635_s13  ;;  %p5639_p10 = scmp.lt.u32.totalorder %s5635_s13, %s6736_s19 }
0x42bb   :  { %p5641_p11 = pnand %p5639_p10, %p5636_p9 }
0x42fe   :  { %v4447_v28 = vpop.xlane.xlu1 %4446 }
0x42ff   :  { %v4448_v42 = vcvt.f32.s32 %v4447_v28 }
0x4301   :  { %v4451_v43 = vadd.s32 %v4450_v38, %v4448_v42 }
0x4303   :  { %5216 = vpush %v4451_v43 }
0x4334   :  { %s5217_s27 = spop %5216 }
0x4335   :  { %4454 = sst [smem:[#allocation17 + $0x4]] %s5217_s27 }
0x4336   :  { %5644 = shalt.err (!%p5641_p11)
}
0x4337   :  { %s5669_s20 = smov [#allocation17]  }
0x4338   :  { %4464 = dma.smem_to_hbm %s5669_s20, 16, %s6736_s19, [#allocation8]  }
0x4339   :  { %5653 = dma.done.wait [#allocation8], 16  }
0x433a   :  { %5654 = vsyncadd [#allocation8], 4294967280 }
0x433b   :  { %5655 = dma.done.wait [#allocation19], 16  }
0x433c   :  { %5656 = vsyncadd [#allocation19], 4294967280 }
0x433d   :  { %4479 = sfence }
0x433e   :  { %4480 = vsyncpa [#allocation7], 1 }
0x433f   :  { %4481 = vsyncpa [#allocation10], 1 }
0x4340   :  { %4482 = vsyncpa [#allocation13], 1 }
0x4341   :  { %4483 = vsyncpa [#allocation16], 1 }
0x4342   :  { %4484 = vsyncpa [#allocation8], 1 }
0x4343   :  { %4485 = vsyncpa [#allocation19], 1 }

</bundles_post_ra>
